<compile_context>
chip_gen: v5e
topology: v5e:2x2
jax: 0.10.0
libtpu: 0.0.40
codegen_flags: <defaults>
</compile_context>

<pallas_src>
import functools
import math

import jax
import jax.numpy as jnp
from jax import lax
from jax.experimental import pallas as pl
from jax.experimental.pallas import tpu as pltpu

VMEM = pl.BlockSpec(memory_space=pltpu.MemorySpace.VMEM)
LN_EPS = 1e-12
CLS_PAD = 128  # lane-dense padded classifier width (real logits = first 2 lanes)


# ----------------------------- in-kernel helpers ----------------------------
def _gelu(x):
    # TODO(synk): HF BERT uses exact erf-GELU; tanh approximation used here for
    # Mosaic-safe elementwise lowering (numerically ~1e-3 close).
    c = math.sqrt(2.0 / math.pi)
    return 0.5 * x * (1.0 + jnp.tanh(c * (x + 0.044715 * x * x * x)))


def _layernorm(y, g, b, eps):
    # y: (rows, H) f32; g, b: (1, H) f32
    inv_h = 1.0 / y.shape[-1]
    mu = jnp.sum(y, axis=-1, keepdims=True) * inv_h
    d = y - mu
    var = jnp.sum(d * d, axis=-1, keepdims=True) * inv_h
    return d * lax.rsqrt(var + eps) * g + b


def _vmem_limit(*arrays, extra_bytes=0):
    # Conservative scoped-VMEM budget: double-buffered operands + headroom,
    # clamped to [16 MiB, 64 MiB] (64 MiB = v7x physical VMEM per TC).
    total = sum(math.prod(a.shape) * a.dtype.itemsize for a in arrays) + extra_bytes
    return int(min(64 << 20, max(16 << 20, 2 * total + (8 << 20))))


# ----------------------------- Pallas kernels -------------------------------
def _emb_ln_kernel(w_ref, p_ref, t_ref, g_ref, b_ref, o_ref, *, eps):
    # Fused positional + token-type add + LayerNorm (all f32 statistics).
    y = w_ref[...] + p_ref[...] + t_ref[...]
    o_ref[...] = _layernorm(y, g_ref[...], b_ref[...], eps).astype(o_ref.dtype)


def _layer_kernel(x_ref, wqkv_ref, bqkv_ref, mask_ref, wo_ref, bo_ref,
                  g1_ref, b1_ref, wi_ref, bi_ref, wf_ref, bf_ref,
                  g2_ref, b2_ref, o_ref, *, nh, eps):
    # One full encoder layer for one batch element per grid step.
    # x: (S, H) bf16; wqkv: (H, 3H) bf16 (Q columns pre-scaled by 1/sqrt(dh));
    # mask: (1, 1, S) f32 additive.
    S, H = x_ref.shape
    dh = H // nh
    x = x_ref[...]                                              # (S, H) bf16

    # Fused QKV projection: one bf16 MXU matmul, f32 accumulation + bias add,
    # then cast to bf16 once so all downstream attention matmuls are bf16.
    qkv = jnp.dot(x, wqkv_ref[...], preferred_element_type=jnp.float32)
    qkv = (qkv + bqkv_ref[...]).astype(jnp.bfloat16)            # (S, 3H) bf16

    m = mask_ref[0]                                             # (1, S) f32

    # Per-head attention. Heads are static lane slices; per-head contexts are
    # lane-concatenated in vregs (XLU) -- no masked 32-lane scratch stores.
    ctx_heads = []
    for h in range(nh):
        q = qkv[:, h * dh:(h + 1) * dh]                         # (S, dh) bf16
        k = qkv[:, H + h * dh:H + (h + 1) * dh]
        v = qkv[:, 2 * H + h * dh:2 * H + (h + 1) * dh]
        # Scale already folded into Q weights -> no (S,S) VPU multiply here.
        s = jnp.einsum("qd,kd->qk", q, k,
                       preferred_element_type=jnp.float32)      # bf16 MXU, f32 acc
        s = s + m                                               # f32 mask add
        s = s - jnp.max(s, axis=-1, keepdims=True)
        p = jnp.exp(s)
        p = p * pl.reciprocal(jnp.sum(p, axis=-1, keepdims=True), approx=True)
        ctx_heads.append(jnp.dot(p.astype(jnp.bfloat16), v,
                                 preferred_element_type=jnp.float32))
    ctx = jnp.concatenate(ctx_heads, axis=-1).astype(jnp.bfloat16)   # (S, H)

    # Attention output projection + residual + LayerNorm.
    attn = jnp.dot(ctx, wo_ref[...],
                   preferred_element_type=jnp.float32) + bo_ref[...]
    h1 = _layernorm(attn + x.astype(jnp.float32), g1_ref[...], b1_ref[...], eps)

    # FFN (GELU) + residual + LayerNorm, fused in the same grid step.
    h1_bf = h1.astype(jnp.bfloat16)
    inter = jnp.dot(h1_bf, wi_ref[...],
                    preferred_element_type=jnp.float32) + bi_ref[...]
    inter = _gelu(inter.astype(jnp.bfloat16))                   # bf16 VPU/EUP GELU
    ffn = jnp.dot(inter, wf_ref[...],
                  preferred_element_type=jnp.float32) + bf_ref[...]
    o_ref[...] = _layernorm(ffn + h1, g2_ref[...], b2_ref[...],
                            eps).astype(o_ref.dtype)


def _head_kernel(x_ref, wp_ref, bp_ref, wc_ref, bc_ref, o_ref, *, seq_len):
    # Fused pooler (dense + tanh on CLS rows) + classifier (padded to 128 lanes).
    # CLS rows gathered in-kernel with static row slices -- no XLA reshape/slice.
    B = o_ref.shape[0]
    cls = jnp.concatenate(
        [x_ref[b * seq_len:b * seq_len + 1, :] for b in range(B)], axis=0)
    pooled = jnp.tanh(
        jnp.dot(cls, wp_ref[...], preferred_element_type=jnp.float32) + bp_ref[...])
    logits = jnp.dot(pooled.astype(jnp.bfloat16), wc_ref[...],
                     preferred_element_type=jnp.float32) + bc_ref[...]
    o_ref[...] = logits


# ----------------------------- kernel wrappers -------------------------------
def embedding_block(word_rows, pos_emb, type_row, gamma, beta, B, S):
    M, H = word_rows.shape
    return pl.pallas_call(
        functools.partial(_emb_ln_kernel, eps=LN_EPS),
        out_shape=jax.ShapeDtypeStruct((M, H), jnp.bfloat16),
        grid=(B,),
        in_specs=[
            pl.BlockSpec((S, H), lambda b: (b, 0)),      # gathered word embeddings
            pl.BlockSpec((S, H), lambda b: (0, 0)),      # positions 0..S-1
            pl.BlockSpec((1, H), lambda b: (0, 0)),      # token-type-0 row
            pl.BlockSpec((1, H), lambda b: (0, 0)),      # LN gamma
            pl.BlockSpec((1, H), lambda b: (0, 0)),      # LN beta
        ],
        out_specs=pl.BlockSpec((S, H), lambda b: (b, 0)),
        compiler_params=pltpu.CompilerParams(
            dimension_semantics=("parallel",),
            vmem_limit_bytes=_vmem_limit(word_rows, pos_emb, type_row, gamma, beta,
                                         extra_bytes=M * H * 2)),
    )(word_rows, pos_emb, type_row, gamma, beta)


def transformer_layer(x, mask_add, layer, B, S, nh):
    M, H = x.shape
    ID = layer["i_w"].shape[1]
    wts = (layer["qkv_w"], layer["qkv_b"], layer["ao_w"], layer["ao_b"],
           layer["attn_ln_g"], layer["attn_ln_b"], layer["i_w"], layer["i_b"],
           layer["o_w"], layer["o_b"], layer["out_ln_g"], layer["out_ln_b"])
    return pl.pallas_call(
        functools.partial(_layer_kernel, nh=nh, eps=LN_EPS),
        out_shape=jax.ShapeDtypeStruct((M, H), jnp.bfloat16),
        grid=(B,),
        in_specs=[
            pl.BlockSpec((S, H), lambda b: (b, 0)),          # x (per-batch rows)
            pl.BlockSpec((H, 3 * H), lambda b: (0, 0)),      # fused qkv weight
            pl.BlockSpec((1, 3 * H), lambda b: (0, 0)),      # fused qkv bias
            pl.BlockSpec((1, 1, S), lambda b: (b, 0, 0)),    # additive mask
            pl.BlockSpec((H, H), lambda b: (0, 0)),          # attn output weight
            pl.BlockSpec((1, H), lambda b: (0, 0)),          # attn output bias
            pl.BlockSpec((1, H), lambda b: (0, 0)),          # attn LN gamma
            pl.BlockSpec((1, H), lambda b: (0, 0)),          # attn LN beta
            pl.BlockSpec((H, ID), lambda b: (0, 0)),         # ffn in weight
            pl.BlockSpec((1, ID), lambda b: (0, 0)),         # ffn in bias
            pl.BlockSpec((ID, H), lambda b: (0, 0)),         # ffn out weight
            pl.BlockSpec((1, H), lambda b: (0, 0)),          # ffn out bias
            pl.BlockSpec((1, H), lambda b: (0, 0)),          # out LN gamma
            pl.BlockSpec((1, H), lambda b: (0, 0)),          # out LN beta
        ],
        out_specs=pl.BlockSpec((S, H), lambda b: (b, 0)),
        compiler_params=pltpu.CompilerParams(
            dimension_semantics=("parallel",),
            vmem_limit_bytes=_vmem_limit(x, mask_add, *wts, extra_bytes=M * H * 2)),
    )(x, layer["qkv_w"], layer["qkv_b"], mask_add,
      layer["ao_w"], layer["ao_b"], layer["attn_ln_g"], layer["attn_ln_b"],
      layer["i_w"], layer["i_b"], layer["o_w"], layer["o_b"],
      layer["out_ln_g"], layer["out_ln_b"])


def classifier_head(x, params, B, S):
    out = pl.pallas_call(
        functools.partial(_head_kernel, seq_len=S),
        out_shape=jax.ShapeDtypeStruct((B, CLS_PAD), jnp.float32),
        in_specs=[VMEM, VMEM, VMEM, VMEM, VMEM],
        out_specs=VMEM,
        compiler_params=pltpu.CompilerParams(
            vmem_limit_bytes=_vmem_limit(x, params["pool_w"], params["pool_b"],
                                         params["cls_w_pad"], params["cls_b_pad"],
                                         extra_bytes=B * CLS_PAD * 4)),
    )(x, params["pool_w"], params["pool_b"],
      params["cls_w_pad"], params["cls_b_pad"])
    return out[:, :2]


# ----------------------------- parameter init -------------------------------
def init_params(key, cfg):
    H, I = cfg["hidden"], cfg["intermediate"]
    V, P, L = cfg["vocab"], cfg["max_pos"], cfg["layers"]
    nh = cfg["heads"]
    scale = 1.0 / math.sqrt(H // nh)
    keys = iter(jax.random.split(key, 16 + 8 * L))

    def randw(in_dim, out_dim):
        # Pre-transposed ONCE to (K, N) layout.
        return 0.02 * jax.random.normal(next(keys), (in_dim, out_dim), jnp.float32)

    params = {
        "word_emb": 0.02 * jax.random.normal(next(keys), (V, H), jnp.float32),
        "pos_emb": 0.02 * jax.random.normal(next(keys), (P, H), jnp.float32),
        "type_emb": 0.02 * jax.random.normal(next(keys), (2, H), jnp.float32),
        "emb_ln_g": jnp.ones((1, H), jnp.float32),
        "emb_ln_b": jnp.zeros((1, H), jnp.float32),
        "layers": [],
        "pool_w": randw(H, H).astype(jnp.bfloat16),
        "pool_b": jnp.zeros((1, H), jnp.float32),
    }
    # Classifier Linear(H, 2): padded to a lane-dense (H, 128) weight; the real
    # logits live in the first 2 output lanes and are sliced out after the kernel.
    cls_w = randw(H, 2)
    params["cls_w_pad"] = (jnp.zeros((H, CLS_PAD), jnp.bfloat16)
                           .at[:, :2].set(cls_w.astype(jnp.bfloat16)))
    params["cls_b_pad"] = jnp.zeros((1, CLS_PAD), jnp.float32)

    for _ in range(L):
        wq, wk, wv = randw(H, H), randw(H, H), randw(H, H)
        # Fold the 1/sqrt(dh) attention scale into the Q third of the fused QKV
        # weight (and bias) so the kernel has no per-head scale multiply.
        qkv_w = jnp.concatenate([wq * scale, wk, wv], axis=1).astype(jnp.bfloat16)
        qkv_b = jnp.zeros((1, 3 * H), jnp.float32)  # Q-third would also be scaled
        params["layers"].append({
            "qkv_w": qkv_w, "qkv_b": qkv_b,
            "ao_w": randw(H, H).astype(jnp.bfloat16),
            "ao_b": jnp.zeros((1, H), jnp.float32),
            "attn_ln_g": jnp.ones((1, H), jnp.float32),
            "attn_ln_b": jnp.zeros((1, H), jnp.float32),
            "i_w": randw(H, I).astype(jnp.bfloat16),
            "i_b": jnp.zeros((1, I), jnp.float32),
            "o_w": randw(I, H).astype(jnp.bfloat16),
            "o_b": jnp.zeros((1, H), jnp.float32),
            "out_ln_g": jnp.ones((1, H), jnp.float32),
            "out_ln_b": jnp.zeros((1, H), jnp.float32),
        })
    return params


# ----------------------------- forward pass ---------------------------------
def sentiment_classifier_forward(params, input_ids, attention_mask, cfg):
    B, S = input_ids.shape
    H = cfg["hidden"]
    nh = cfg["heads"]

    # Word-embedding token gather stays in XLA; positional/type adds + LayerNorm
    # are fused into one Pallas kernel (one fewer full activation HBM round trip).
    # TODO(synk): token_type hard-coded to segment 0 (matches reference usage).
    word_rows = params["word_emb"][input_ids].reshape(B * S, H)      # (B*S, H) f32
    x = embedding_block(word_rows, params["pos_emb"], params["type_emb"][0:1],
                        params["emb_ln_g"], params["emb_ln_b"], B, S)  # bf16

    # BERT-style additive extended attention mask, kept in f32 for the softmax.
    mask_add = (1.0 - attention_mask.astype(jnp.float32))[:, None, :] * -1e9  # (B,1,S)

    # One fused Pallas call per encoder layer (attention + FFN + both LayerNorms).
    for layer in params["layers"]:
        x = transformer_layer(x, mask_add, layer, B, S, nh)

    # Pooler (dense + tanh on [CLS]) + classifier, fused; CLS rows read in-kernel.
    # TODO(synk): Dropout(0.3) before the classifier is identity at inference.
    return classifier_head(x, params, B, S)


# ----------------------------- main ------------------------------------------
if __name__ == "__main__":
    # Mini-BERT config; hidden kept a multiple of 128 so every matmul output is
    # lane-dense on the MXU.
    cfg = dict(hidden=128, intermediate=512, heads=4, layers=2, vocab=100, max_pos=16)
    key = jax.random.PRNGKey(0)
    k_param, k_ids = jax.random.split(key)

    params = init_params(k_param, cfg)

    B, S = 2, 8
    input_ids = jax.random.randint(k_ids, (B, S), 0, cfg["vocab"], dtype=jnp.int32)
    attention_mask = jnp.ones((B, S), dtype=jnp.int32).at[1, 6:].set(0)  # some padding

    fwd = jax.jit(lambda p, ids, m: sentiment_classifier_forward(p, ids, m, cfg))
    logits = jax.block_until_ready(fwd(params, input_ids, attention_mask))

    assert logits.shape == (B, 2), logits.shape
    assert jnp.all(jnp.isfinite(logits))
    print("KERNEL_OK")
</pallas_src>

<mosaic_0001>
module attributes {stable_mosaic.version = 11 : i64} {
  func.func @_emb_ln_kernel(%arg0: i32, %arg1: memref<8x128xf32, #tpu.memory_space<vmem>>, %arg2: memref<8x128xf32, #tpu.memory_space<vmem>>, %arg3: memref<1x128xf32, #tpu.memory_space<vmem>>, %arg4: memref<1x128xf32, #tpu.memory_space<vmem>>, %arg5: memref<1x128xf32, #tpu.memory_space<vmem>>, %arg6: memref<8x128xbf16, #tpu.memory_space<vmem>>) attributes {dimension_semantics = [#tpu.dimension_semantics<parallel>], iteration_bounds = array<i64: 2>, scalar_prefetch = 0 : i64, scratch_operands = 0 : i64, tpu.core_type = #tpu.core_type<tc>, window_params = [{transform_indices = @transform_0, window_bounds = array<i64: 8, 128>}, {transform_indices = @transform_1, window_bounds = array<i64: 8, 128>}, {pipeline_mode = #tpu.pipeline_mode<synchronous>, transform_indices = @transform_2, window_bounds = array<i64: 1, 128>}, {pipeline_mode = #tpu.pipeline_mode<synchronous>, transform_indices = @transform_3, window_bounds = array<i64: 1, 128>}, {pipeline_mode = #tpu.pipeline_mode<synchronous>, transform_indices = @transform_4, window_bounds = array<i64: 1, 128>}, {transform_indices = @transform_5, window_bounds = array<i64: 8, 128>}]} {
    %c0 = arith.constant 0 : index
    %c0_0 = arith.constant 0 : index
    %0 = vector.load %arg1[%c0, %c0_0] : memref<8x128xf32, #tpu.memory_space<vmem>>, vector<8x128xf32>
    %c0_1 = arith.constant 0 : index
    %c0_2 = arith.constant 0 : index
    %1 = vector.load %arg2[%c0_1, %c0_2] : memref<8x128xf32, #tpu.memory_space<vmem>>, vector<8x128xf32>
    %2 = arith.addf %0, %1 : vector<8x128xf32>
    %c0_3 = arith.constant 0 : index
    %c0_4 = arith.constant 0 : index
    %3 = vector.load %arg3[%c0_3, %c0_4] : memref<1x128xf32, #tpu.memory_space<vmem>>, vector<1x128xf32>
    %4 = vector.broadcast %3 : vector<1x128xf32> to vector<8x128xf32>
    %5 = arith.addf %2, %4 : vector<8x128xf32>
    %c0_5 = arith.constant 0 : index
    %c0_6 = arith.constant 0 : index
    %6 = vector.load %arg4[%c0_5, %c0_6] : memref<1x128xf32, #tpu.memory_space<vmem>>, vector<1x128xf32>
    %c0_7 = arith.constant 0 : index
    %c0_8 = arith.constant 0 : index
    %7 = vector.load %arg5[%c0_7, %c0_8] : memref<1x128xf32, #tpu.memory_space<vmem>>, vector<1x128xf32>
    %cst = arith.constant dense<0.000000e+00> : vector<8xf32>
    %8 = vector.multi_reduction <add>, %5, %cst [1] : vector<8x128xf32> to vector<8xf32>
    %9 = vector.shape_cast %8 : vector<8xf32> to vector<8x1xf32>
    %cst_9 = arith.constant 7.812500e-03 : f32
    %10 = vector.broadcast %cst_9 : f32 to vector<8x1xf32>
    %11 = arith.mulf %9, %10 : vector<8x1xf32>
    %12 = vector.broadcast %11 : vector<8x1xf32> to vector<8x128xf32>
    %13 = arith.subf %5, %12 : vector<8x128xf32>
    %14 = arith.mulf %13, %13 : vector<8x128xf32>
    %cst_10 = arith.constant dense<0.000000e+00> : vector<8xf32>
    %15 = vector.multi_reduction <add>, %14, %cst_10 [1] : vector<8x128xf32> to vector<8xf32>
    %16 = vector.shape_cast %15 : vector<8xf32> to vector<8x1xf32>
    %cst_11 = arith.constant 7.812500e-03 : f32
    %17 = vector.broadcast %cst_11 : f32 to vector<8x1xf32>
    %18 = arith.mulf %16, %17 : vector<8x1xf32>
    %cst_12 = arith.constant 9.99999996E-13 : f32
    %19 = vector.broadcast %cst_12 : f32 to vector<8x1xf32>
    %20 = arith.addf %18, %19 : vector<8x1xf32>
    %21 = math.rsqrt %20 : vector<8x1xf32>
    %22 = vector.broadcast %21 : vector<8x1xf32> to vector<8x128xf32>
    %23 = arith.mulf %13, %22 : vector<8x128xf32>
    %24 = vector.broadcast %6 : vector<1x128xf32> to vector<8x128xf32>
    %25 = arith.mulf %23, %24 : vector<8x128xf32>
    %26 = vector.broadcast %7 : vector<1x128xf32> to vector<8x128xf32>
    %27 = arith.addf %25, %26 : vector<8x128xf32>
    %28 = arith.truncf %27 : vector<8x128xf32> to vector<8x128xbf16>
    %c0_13 = arith.constant 0 : index
    %c0_14 = arith.constant 0 : index
    %29 = vector.load %arg6[%c0_13, %c0_14] : memref<8x128xbf16, #tpu.memory_space<vmem>>, vector<8x128xbf16>
    tpu.vector_store %arg6[%c0_13, %c0_14], %28 {strides = array<i32>} : memref<8x128xbf16, #tpu.memory_space<vmem>>, vector<8x128xbf16>,
    return
  }
  func.func @transform_0(%arg0: i32) -> (i32, i32) {
    %c0_i32 = arith.constant 0 : i32
    %c0_i32_0 = arith.constant 0 : i32
    return %arg0, %c0_i32 : i32, i32
  }
  func.func @transform_1(%arg0: i32) -> (i32, i32) {
    %c0_i32 = arith.constant 0 : i32
    %c0_i32_0 = arith.constant 0 : i32
    %c0_i32_1 = arith.constant 0 : i32
    return %c0_i32, %c0_i32_0 : i32, i32
  }
  func.func @transform_2(%arg0: i32) -> (i32, i32) {
    %c0_i32 = arith.constant 0 : i32
    %c0_i32_0 = arith.constant 0 : i32
    %c0_i32_1 = arith.constant 0 : i32
    return %c0_i32, %c0_i32_0 : i32, i32
  }
  func.func @transform_3(%arg0: i32) -> (i32, i32) {
    %c0_i32 = arith.constant 0 : i32
    %c0_i32_0 = arith.constant 0 : i32
    %c0_i32_1 = arith.constant 0 : i32
    return %c0_i32, %c0_i32_0 : i32, i32
  }
  func.func @transform_4(%arg0: i32) -> (i32, i32) {
    %c0_i32 = arith.constant 0 : i32
    %c0_i32_0 = arith.constant 0 : i32
    %c0_i32_1 = arith.constant 0 : i32
    return %c0_i32, %c0_i32_0 : i32, i32
  }
  func.func @transform_5(%arg0: i32) -> (i32, i32) {
    %c0_i32 = arith.constant 0 : i32
    %c0_i32_0 = arith.constant 0 : i32
    return %arg0, %c0_i32 : i32, i32
  }
}

module attributes {stable_mosaic.version = 11 : i64} {
  func.func @_head_kernel(%arg0: memref<16x128xbf16, #tpu.memory_space<vmem>>, %arg1: memref<128x128xbf16, #tpu.memory_space<vmem>>, %arg2: memref<1x128xf32, #tpu.memory_space<vmem>>, %arg3: memref<128x128xbf16, #tpu.memory_space<vmem>>, %arg4: memref<1x128xf32, #tpu.memory_space<vmem>>, %arg5: memref<2x128xf32, #tpu.memory_space<vmem>>) attributes {dimension_semantics = [], scalar_prefetch = 0 : i64, scratch_operands = 0 : i64, tpu.core_type = #tpu.core_type<tc>} {
    %c0 = arith.constant 0 : index
    %c0_0 = arith.constant 0 : index
    %0 = vector.load %arg0[%c0, %c0_0] : memref<16x128xbf16, #tpu.memory_space<vmem>>, vector<1x128xbf16>
    %c8 = arith.constant 8 : index
    %c0_1 = arith.constant 0 : index
    %1 = vector.load %arg0[%c8, %c0_1] : memref<16x128xbf16, #tpu.memory_space<vmem>>, vector<1x128xbf16>
    %2 = tpu.concatenate %0, %1 in 0 : vector<1x128xbf16>, vector<1x128xbf16> -> vector<2x128xbf16>
    %c0_2 = arith.constant 0 : index
    %c0_3 = arith.constant 0 : index
    %3 = vector.load %arg1[%c0_2, %c0_3] : memref<128x128xbf16, #tpu.memory_space<vmem>>, vector<128x128xbf16>
    %cst = arith.constant dense<0.000000e+00> : vector<2x128xf32>
    %4 = tpu.matmul %2, %3, %cst {dimension_numbers = #tpu.dot_dimension_numbers<[1], [0], [0], [1], [0, 0, 1, 1], [], []>} : vector<2x128xbf16>, vector<128x128xbf16>, vector<2x128xf32> -> vector<2x128xf32>
    %c0_4 = arith.constant 0 : index
    %c0_5 = arith.constant 0 : index
    %5 = vector.load %arg2[%c0_4, %c0_5] : memref<1x128xf32, #tpu.memory_space<vmem>>, vector<1x128xf32>
    %6 = vector.broadcast %5 : vector<1x128xf32> to vector<2x128xf32>
    %7 = arith.addf %4, %6 : vector<2x128xf32>
    %8 = math.tanh %7 : vector<2x128xf32>
    %9 = arith.truncf %8 : vector<2x128xf32> to vector<2x128xbf16>
    %c0_6 = arith.constant 0 : index
    %c0_7 = arith.constant 0 : index
    %10 = vector.load %arg3[%c0_6, %c0_7] : memref<128x128xbf16, #tpu.memory_space<vmem>>, vector<128x128xbf16>
    %cst_8 = arith.constant dense<0.000000e+00> : vector<2x128xf32>
    %11 = tpu.matmul %9, %10, %cst_8 {dimension_numbers = #tpu.dot_dimension_numbers<[1], [0], [0], [1], [0, 0, 1, 1], [], []>} : vector<2x128xbf16>, vector<128x128xbf16>, vector<2x128xf32> -> vector<2x128xf32>
    %c0_9 = arith.constant 0 : index
    %c0_10 = arith.constant 0 : index
    %12 = vector.load %arg4[%c0_9, %c0_10] : memref<1x128xf32, #tpu.memory_space<vmem>>, vector<1x128xf32>
    %13 = vector.broadcast %12 : vector<1x128xf32> to vector<2x128xf32>
    %14 = arith.addf %11, %13 : vector<2x128xf32>
    %c0_11 = arith.constant 0 : index
    %c0_12 = arith.constant 0 : index
    %15 = vector.load %arg5[%c0_11, %c0_12] : memref<2x128xf32, #tpu.memory_space<vmem>>, vector<2x128xf32>
    tpu.vector_store %arg5[%c0_11, %c0_12], %14 {strides = array<i32>} : memref<2x128xf32, #tpu.memory_space<vmem>>, vector<2x128xf32>,
    return
  }
}

module attributes {stable_mosaic.version = 11 : i64} {
  func.func @_layer_kernel(%arg0: i32, %arg1: memref<8x128xbf16, #tpu.memory_space<vmem>>, %arg2: memref<128x384xbf16, #tpu.memory_space<vmem>>, %arg3: memref<1x384xf32, #tpu.memory_space<vmem>>, %arg4: memref<1x1x8xf32, #tpu.memory_space<vmem>>, %arg5: memref<128x128xbf16, #tpu.memory_space<vmem>>, %arg6: memref<1x128xf32, #tpu.memory_space<vmem>>, %arg7: memref<1x128xf32, #tpu.memory_space<vmem>>, %arg8: memref<1x128xf32, #tpu.memory_space<vmem>>, %arg9: memref<128x512xbf16, #tpu.memory_space<vmem>>, %arg10: memref<1x512xf32, #tpu.memory_space<vmem>>, %arg11: memref<512x128xbf16, #tpu.memory_space<vmem>>, %arg12: memref<1x128xf32, #tpu.memory_space<vmem>>, %arg13: memref<1x128xf32, #tpu.memory_space<vmem>>, %arg14: memref<1x128xf32, #tpu.memory_space<vmem>>, %arg15: memref<8x128xbf16, #tpu.memory_space<vmem>>) attributes {dimension_semantics = [#tpu.dimension_semantics<parallel>], iteration_bounds = array<i64: 2>, scalar_prefetch = 0 : i64, scratch_operands = 0 : i64, tpu.core_type = #tpu.core_type<tc>, window_params = [{transform_indices = @transform_0, window_bounds = array<i64: 8, 128>}, {pipeline_mode = #tpu.pipeline_mode<synchronous>, transform_indices = @transform_1, window_bounds = array<i64: 128, 384>}, {pipeline_mode = #tpu.pipeline_mode<synchronous>, transform_indices = @transform_2, window_bounds = array<i64: 1, 384>}, {transform_indices = @transform_3, window_bounds = array<i64: 1, 1, 8>}, {pipeline_mode = #tpu.pipeline_mode<synchronous>, transform_indices = @transform_4, window_bounds = array<i64: 128, 128>}, {pipeline_mode = #tpu.pipeline_mode<synchronous>, transform_indices = @transform_5, window_bounds = array<i64: 1, 128>}, {pipeline_mode = #tpu.pipeline_mode<synchronous>, transform_indices = @transform_6, window_bounds = array<i64: 1, 128>}, {pipeline_mode = #tpu.pipeline_mode<synchronous>, transform_indices = @transform_7, window_bounds = array<i64: 1, 128>}, {pipeline_mode = #tpu.pipeline_mode<synchronous>, transform_indices = @transform_8, window_bounds = array<i64: 128, 512>}, {pipeline_mode = #tpu.pipeline_mode<synchronous>, transform_indices = @transform_9, window_bounds = array<i64: 1, 512>}, {pipeline_mode = #tpu.pipeline_mode<synchronous>, transform_indices = @transform_10, window_bounds = array<i64: 512, 128>}, {pipeline_mode = #tpu.pipeline_mode<synchronous>, transform_indices = @transform_11, window_bounds = array<i64: 1, 128>}, {pipeline_mode = #tpu.pipeline_mode<synchronous>, transform_indices = @transform_12, window_bounds = array<i64: 1, 128>}, {pipeline_mode = #tpu.pipeline_mode<synchronous>, transform_indices = @transform_13, window_bounds = array<i64: 1, 128>}, {transform_indices = @transform_14, window_bounds = array<i64: 8, 128>}]} {
    %c0 = arith.constant 0 : index
    %c0_0 = arith.constant 0 : index
    %0 = vector.load %arg1[%c0, %c0_0] : memref<8x128xbf16, #tpu.memory_space<vmem>>, vector<8x128xbf16>
    %c0_1 = arith.constant 0 : index
    %c0_2 = arith.constant 0 : index
    %1 = vector.load %arg2[%c0_1, %c0_2] : memref<128x384xbf16, #tpu.memory_space<vmem>>, vector<128x384xbf16>
    %cst = arith.constant dense<0.000000e+00> : vector<8x384xf32>
    %2 = tpu.matmul %0, %1, %cst {dimension_numbers = #tpu.dot_dimension_numbers<[1], [0], [0], [1], [0, 0, 1, 1], [], []>} : vector<8x128xbf16>, vector<128x384xbf16>, vector<8x384xf32> -> vector<8x384xf32>
    %c0_3 = arith.constant 0 : index
    %c0_4 = arith.constant 0 : index
    %3 = vector.load %arg3[%c0_3, %c0_4] : memref<1x384xf32, #tpu.memory_space<vmem>>, vector<1x384xf32>
    %4 = vector.broadcast %3 : vector<1x384xf32> to vector<8x384xf32>
    %5 = arith.addf %2, %4 : vector<8x384xf32>
    %6 = arith.truncf %5 : vector<8x384xf32> to vector<8x384xbf16>
    %c0_5 = arith.constant 0 : index
    %c0_6 = arith.constant 0 : index
    %c0_7 = arith.constant 0 : index
    %7 = vector.load %arg4[%c0_5, %c0_6, %c0_7] : memref<1x1x8xf32, #tpu.memory_space<vmem>>, vector<1x1x8xf32>
    %8 = vector.shape_cast %7 : vector<1x1x8xf32> to vector<1x8xf32>
    %9 = vector.extract_strided_slice %6 {offsets = [0, 0], sizes = [8, 32], strides = [1, 1]} : vector<8x384xbf16> to vector<8x32xbf16>
    %10 = vector.extract_strided_slice %6 {offsets = [0, 128], sizes = [8, 32], strides = [1, 1]} : vector<8x384xbf16> to vector<8x32xbf16>
    %11 = vector.extract_strided_slice %6 {offsets = [0, 256], sizes = [8, 32], strides = [1, 1]} : vector<8x384xbf16> to vector<8x32xbf16>
    "tpu.trace_start"() <{level = 10 : i32, message = "qd,kd->qk"}> : () -> ()
    %cst_8 = arith.constant dense<0.000000e+00> : vector<8x8xf32>
    %12 = tpu.matmul %9, %10, %cst_8 {dimension_numbers = #tpu.dot_dimension_numbers<[1], [1], [0], [0], [0, 0, 1, 0], [], []>} : vector<8x32xbf16>, vector<8x32xbf16>, vector<8x8xf32> -> vector<8x8xf32>
    "tpu.trace_stop"() : () -> ()
    %13 = vector.broadcast %8 : vector<1x8xf32> to vector<8x8xf32>
    %14 = arith.addf %12, %13 : vector<8x8xf32>
    %cst_9 = arith.constant dense<0xFF800000> : vector<8xf32>
    %15 = vector.multi_reduction <maximumf>, %14, %cst_9 [1] : vector<8x8xf32> to vector<8xf32>
    %16 = vector.shape_cast %15 : vector<8xf32> to vector<8x1xf32>
    %17 = vector.broadcast %16 : vector<8x1xf32> to vector<8x8xf32>
    %18 = arith.subf %14, %17 : vector<8x8xf32>
    %19 = math.exp %18 : vector<8x8xf32>
    %cst_10 = arith.constant dense<0.000000e+00> : vector<8xf32>
    %20 = vector.multi_reduction <add>, %19, %cst_10 [1] : vector<8x8xf32> to vector<8xf32>
    %21 = vector.shape_cast %20 : vector<8xf32> to vector<8x1xf32>
    %22 = tpu.reciprocal %21 {approx = true} : vector<8x1xf32> -> vector<8x1xf32>
    %23 = vector.broadcast %22 : vector<8x1xf32> to vector<8x8xf32>
    %24 = arith.mulf %19, %23 : vector<8x8xf32>
    %25 = arith.truncf %24 : vector<8x8xf32> to vector<8x8xbf16>
    %cst_11 = arith.constant dense<0.000000e+00> : vector<8x32xf32>
    %26 = tpu.matmul %25, %11, %cst_11 {dimension_numbers = #tpu.dot_dimension_numbers<[1], [0], [0], [1], [0, 0, 1, 1], [], []>} : vector<8x8xbf16>, vector<8x32xbf16>, vector<8x32xf32> -> vector<8x32xf32>
    %27 = vector.extract_strided_slice %6 {offsets = [0, 32], sizes = [8, 32], strides = [1, 1]} : vector<8x384xbf16> to vector<8x32xbf16>
    %28 = vector.extract_strided_slice %6 {offsets = [0, 160], sizes = [8, 32], strides = [1, 1]} : vector<8x384xbf16> to vector<8x32xbf16>
    %29 = vector.extract_strided_slice %6 {offsets = [0, 288], sizes = [8, 32], strides = [1, 1]} : vector<8x384xbf16> to vector<8x32xbf16>
    "tpu.trace_start"() <{level = 10 : i32, message = "qd,kd->qk"}> : () -> ()
    %cst_12 = arith.constant dense<0.000000e+00> : vector<8x8xf32>
    %30 = tpu.matmul %27, %28, %cst_12 {dimension_numbers = #tpu.dot_dimension_numbers<[1], [1], [0], [0], [0, 0, 1, 0], [], []>} : vector<8x32xbf16>, vector<8x32xbf16>, vector<8x8xf32> -> vector<8x8xf32>
    "tpu.trace_stop"() : () -> ()
    %31 = vector.broadcast %8 : vector<1x8xf32> to vector<8x8xf32>
    %32 = arith.addf %30, %31 : vector<8x8xf32>
    %cst_13 = arith.constant dense<0xFF800000> : vector<8xf32>
    %33 = vector.multi_reduction <maximumf>, %32, %cst_13 [1] : vector<8x8xf32> to vector<8xf32>
    %34 = vector.shape_cast %33 : vector<8xf32> to vector<8x1xf32>
    %35 = vector.broadcast %34 : vector<8x1xf32> to vector<8x8xf32>
    %36 = arith.subf %32, %35 : vector<8x8xf32>
    %37 = math.exp %36 : vector<8x8xf32>
    %cst_14 = arith.constant dense<0.000000e+00> : vector<8xf32>
    %38 = vector.multi_reduction <add>, %37, %cst_14 [1] : vector<8x8xf32> to vector<8xf32>
    %39 = vector.shape_cast %38 : vector<8xf32> to vector<8x1xf32>
    %40 = tpu.reciprocal %39 {approx = true} : vector<8x1xf32> -> vector<8x1xf32>
    %41 = vector.broadcast %40 : vector<8x1xf32> to vector<8x8xf32>
    %42 = arith.mulf %37, %41 : vector<8x8xf32>
    %43 = arith.truncf %42 : vector<8x8xf32> to vector<8x8xbf16>
    %cst_15 = arith.constant dense<0.000000e+00> : vector<8x32xf32>
    %44 = tpu.matmul %43, %29, %cst_15 {dimension_numbers = #tpu.dot_dimension_numbers<[1], [0], [0], [1], [0, 0, 1, 1], [], []>} : vector<8x8xbf16>, vector<8x32xbf16>, vector<8x32xf32> -> vector<8x32xf32>
    %45 = vector.extract_strided_slice %6 {offsets = [0, 64], sizes = [8, 32], strides = [1, 1]} : vector<8x384xbf16> to vector<8x32xbf16>
    %46 = vector.extract_strided_slice %6 {offsets = [0, 192], sizes = [8, 32], strides = [1, 1]} : vector<8x384xbf16> to vector<8x32xbf16>
    %47 = vector.extract_strided_slice %6 {offsets = [0, 320], sizes = [8, 32], strides = [1, 1]} : vector<8x384xbf16> to vector<8x32xbf16>
    "tpu.trace_start"() <{level = 10 : i32, message = "qd,kd->qk"}> : () -> ()
    %cst_16 = arith.constant dense<0.000000e+00> : vector<8x8xf32>
    %48 = tpu.matmul %45, %46, %cst_16 {dimension_numbers = #tpu.dot_dimension_numbers<[1], [1], [0], [0], [0, 0, 1, 0], [], []>} : vector<8x32xbf16>, vector<8x32xbf16>, vector<8x8xf32> -> vector<8x8xf32>
    "tpu.trace_stop"() : () -> ()
    %49 = vector.broadcast %8 : vector<1x8xf32> to vector<8x8xf32>
    %50 = arith.addf %48, %49 : vector<8x8xf32>
    %cst_17 = arith.constant dense<0xFF800000> : vector<8xf32>
    %51 = vector.multi_reduction <maximumf>, %50, %cst_17 [1] : vector<8x8xf32> to vector<8xf32>
    %52 = vector.shape_cast %51 : vector<8xf32> to vector<8x1xf32>
    %53 = vector.broadcast %52 : vector<8x1xf32> to vector<8x8xf32>
    %54 = arith.subf %50, %53 : vector<8x8xf32>
    %55 = math.exp %54 : vector<8x8xf32>
    %cst_18 = arith.constant dense<0.000000e+00> : vector<8xf32>
    %56 = vector.multi_reduction <add>, %55, %cst_18 [1] : vector<8x8xf32> to vector<8xf32>
    %57 = vector.shape_cast %56 : vector<8xf32> to vector<8x1xf32>
    %58 = tpu.reciprocal %57 {approx = true} : vector<8x1xf32> -> vector<8x1xf32>
    %59 = vector.broadcast %58 : vector<8x1xf32> to vector<8x8xf32>
    %60 = arith.mulf %55, %59 : vector<8x8xf32>
    %61 = arith.truncf %60 : vector<8x8xf32> to vector<8x8xbf16>
    %cst_19 = arith.constant dense<0.000000e+00> : vector<8x32xf32>
    %62 = tpu.matmul %61, %47, %cst_19 {dimension_numbers = #tpu.dot_dimension_numbers<[1], [0], [0], [1], [0, 0, 1, 1], [], []>} : vector<8x8xbf16>, vector<8x32xbf16>, vector<8x32xf32> -> vector<8x32xf32>
    %63 = vector.extract_strided_slice %6 {offsets = [0, 96], sizes = [8, 32], strides = [1, 1]} : vector<8x384xbf16> to vector<8x32xbf16>
    %64 = vector.extract_strided_slice %6 {offsets = [0, 224], sizes = [8, 32], strides = [1, 1]} : vector<8x384xbf16> to vector<8x32xbf16>
    %65 = vector.extract_strided_slice %6 {offsets = [0, 352], sizes = [8, 32], strides = [1, 1]} : vector<8x384xbf16> to vector<8x32xbf16>
    "tpu.trace_start"() <{level = 10 : i32, message = "qd,kd->qk"}> : () -> ()
    %cst_20 = arith.constant dense<0.000000e+00> : vector<8x8xf32>
    %66 = tpu.matmul %63, %64, %cst_20 {dimension_numbers = #tpu.dot_dimension_numbers<[1], [1], [0], [0], [0, 0, 1, 0], [], []>} : vector<8x32xbf16>, vector<8x32xbf16>, vector<8x8xf32> -> vector<8x8xf32>
    "tpu.trace_stop"() : () -> ()
    %67 = vector.broadcast %8 : vector<1x8xf32> to vector<8x8xf32>
    %68 = arith.addf %66, %67 : vector<8x8xf32>
    %cst_21 = arith.constant dense<0xFF800000> : vector<8xf32>
    %69 = vector.multi_reduction <maximumf>, %68, %cst_21 [1] : vector<8x8xf32> to vector<8xf32>
    %70 = vector.shape_cast %69 : vector<8xf32> to vector<8x1xf32>
    %71 = vector.broadcast %70 : vector<8x1xf32> to vector<8x8xf32>
    %72 = arith.subf %68, %71 : vector<8x8xf32>
    %73 = math.exp %72 : vector<8x8xf32>
    %cst_22 = arith.constant dense<0.000000e+00> : vector<8xf32>
    %74 = vector.multi_reduction <add>, %73, %cst_22 [1] : vector<8x8xf32> to vector<8xf32>
    %75 = vector.shape_cast %74 : vector<8xf32> to vector<8x1xf32>
    %76 = tpu.reciprocal %75 {approx = true} : vector<8x1xf32> -> vector<8x1xf32>
    %77 = vector.broadcast %76 : vector<8x1xf32> to vector<8x8xf32>
    %78 = arith.mulf %73, %77 : vector<8x8xf32>
    %79 = arith.truncf %78 : vector<8x8xf32> to vector<8x8xbf16>
    %cst_23 = arith.constant dense<0.000000e+00> : vector<8x32xf32>
    %80 = tpu.matmul %79, %65, %cst_23 {dimension_numbers = #tpu.dot_dimension_numbers<[1], [0], [0], [1], [0, 0, 1, 1], [], []>} : vector<8x8xbf16>, vector<8x32xbf16>, vector<8x32xf32> -> vector<8x32xf32>
    %81 = tpu.concatenate %26, %44, %62, %80 in 1 : vector<8x32xf32>, vector<8x32xf32>, vector<8x32xf32>, vector<8x32xf32> -> vector<8x128xf32>
    %82 = arith.truncf %81 : vector<8x128xf32> to vector<8x128xbf16>
    %c0_24 = arith.constant 0 : index
    %c0_25 = arith.constant 0 : index
    %83 = vector.load %arg5[%c0_24, %c0_25] : memref<128x128xbf16, #tpu.memory_space<vmem>>, vector<128x128xbf16>
    %cst_26 = arith.constant dense<0.000000e+00> : vector<8x128xf32>
    %84 = tpu.matmul %82, %83, %cst_26 {dimension_numbers = #tpu.dot_dimension_numbers<[1], [0], [0], [1], [0, 0, 1, 1], [], []>} : vector<8x128xbf16>, vector<128x128xbf16>, vector<8x128xf32> -> vector<8x128xf32>
    %c0_27 = arith.constant 0 : index
    %c0_28 = arith.constant 0 : index
    %85 = vector.load %arg6[%c0_27, %c0_28] : memref<1x128xf32, #tpu.memory_space<vmem>>, vector<1x128xf32>
    %86 = vector.broadcast %85 : vector<1x128xf32> to vector<8x128xf32>
    %87 = arith.addf %84, %86 : vector<8x128xf32>
    %88 = arith.extf %0 : vector<8x128xbf16> to vector<8x128xf32>
    %89 = arith.addf %87, %88 : vector<8x128xf32>
    %c0_29 = arith.constant 0 : index
    %c0_30 = arith.constant 0 : index
    %90 = vector.load %arg7[%c0_29, %c0_30] : memref<1x128xf32, #tpu.memory_space<vmem>>, vector<1x128xf32>
    %c0_31 = arith.constant 0 : index
    %c0_32 = arith.constant 0 : index
    %91 = vector.load %arg8[%c0_31, %c0_32] : memref<1x128xf32, #tpu.memory_space<vmem>>, vector<1x128xf32>
    %cst_33 = arith.constant dense<0.000000e+00> : vector<8xf32>
    %92 = vector.multi_reduction <add>, %89, %cst_33 [1] : vector<8x128xf32> to vector<8xf32>
    %93 = vector.shape_cast %92 : vector<8xf32> to vector<8x1xf32>
    %cst_34 = arith.constant 7.812500e-03 : f32
    %94 = vector.broadcast %cst_34 : f32 to vector<8x1xf32>
    %95 = arith.mulf %93, %94 : vector<8x1xf32>
    %96 = vector.broadcast %95 : vector<8x1xf32> to vector<8x128xf32>
    %97 = arith.subf %89, %96 : vector<8x128xf32>
    %98 = arith.mulf %97, %97 : vector<8x128xf32>
    %cst_35 = arith.constant dense<0.000000e+00> : vector<8xf32>
    %99 = vector.multi_reduction <add>, %98, %cst_35 [1] : vector<8x128xf32> to vector<8xf32>
    %100 = vector.shape_cast %99 : vector<8xf32> to vector<8x1xf32>
    %cst_36 = arith.constant 7.812500e-03 : f32
    %101 = vector.broadcast %cst_36 : f32 to vector<8x1xf32>
    %102 = arith.mulf %100, %101 : vector<8x1xf32>
    %cst_37 = arith.constant 9.99999996E-13 : f32
    %103 = vector.broadcast %cst_37 : f32 to vector<8x1xf32>
    %104 = arith.addf %102, %103 : vector<8x1xf32>
    %105 = math.rsqrt %104 : vector<8x1xf32>
    %106 = vector.broadcast %105 : vector<8x1xf32> to vector<8x128xf32>
    %107 = arith.mulf %97, %106 : vector<8x128xf32>
    %108 = vector.broadcast %90 : vector<1x128xf32> to vector<8x128xf32>
    %109 = arith.mulf %107, %108 : vector<8x128xf32>
    %110 = vector.broadcast %91 : vector<1x128xf32> to vector<8x128xf32>
    %111 = arith.addf %109, %110 : vector<8x128xf32>
    %112 = arith.truncf %111 : vector<8x128xf32> to vector<8x128xbf16>
    %c0_38 = arith.constant 0 : index
    %c0_39 = arith.constant 0 : index
    %113 = vector.load %arg9[%c0_38, %c0_39] : memref<128x512xbf16, #tpu.memory_space<vmem>>, vector<128x512xbf16>
    %cst_40 = arith.constant dense<0.000000e+00> : vector<8x512xf32>
    %114 = tpu.matmul %112, %113, %cst_40 {dimension_numbers = #tpu.dot_dimension_numbers<[1], [0], [0], [1], [0, 0, 1, 1], [], []>} : vector<8x128xbf16>, vector<128x512xbf16>, vector<8x512xf32> -> vector<8x512xf32>
    %c0_41 = arith.constant 0 : index
    %c0_42 = arith.constant 0 : index
    %115 = vector.load %arg10[%c0_41, %c0_42] : memref<1x512xf32, #tpu.memory_space<vmem>>, vector<1x512xf32>
    %116 = vector.broadcast %115 : vector<1x512xf32> to vector<8x512xf32>
    %117 = arith.addf %114, %116 : vector<8x512xf32>
    %118 = arith.truncf %117 : vector<8x512xf32> to vector<8x512xbf16>
    %cst_43 = arith.constant 5.000000e-01 : bf16
    %119 = vector.broadcast %cst_43 : bf16 to vector<8x512xbf16>
    %120 = arith.mulf %119, %118 : vector<8x512xbf16>
    %cst_44 = arith.constant 4.467770e-02 : bf16
    %121 = vector.broadcast %cst_44 : bf16 to vector<8x512xbf16>
    %122 = arith.mulf %121, %118 : vector<8x512xbf16>
    %123 = arith.mulf %122, %118 : vector<8x512xbf16>
    %124 = arith.mulf %123, %118 : vector<8x512xbf16>
    %125 = arith.addf %118, %124 : vector<8x512xbf16>
    %cst_45 = arith.constant 7.968750e-01 : bf16
    %126 = vector.broadcast %cst_45 : bf16 to vector<8x512xbf16>
    %127 = arith.mulf %126, %125 : vector<8x512xbf16>
    %128 = math.tanh %127 : vector<8x512xbf16>
    %cst_46 = arith.constant 1.000000e+00 : bf16
    %129 = vector.broadcast %cst_46 : bf16 to vector<8x512xbf16>
    %130 = arith.addf %129, %128 : vector<8x512xbf16>
    %131 = arith.mulf %120, %130 : vector<8x512xbf16>
    %c0_47 = arith.constant 0 : index
    %c0_48 = arith.constant 0 : index
    %132 = vector.load %arg11[%c0_47, %c0_48] : memref<512x128xbf16, #tpu.memory_space<vmem>>, vector<512x128xbf16>
    %cst_49 = arith.constant dense<0.000000e+00> : vector<8x128xf32>
    %133 = tpu.matmul %131, %132, %cst_49 {dimension_numbers = #tpu.dot_dimension_numbers<[1], [0], [0], [1], [0, 0, 1, 1], [], []>} : vector<8x512xbf16>, vector<512x128xbf16>, vector<8x128xf32> -> vector<8x128xf32>
    %c0_50 = arith.constant 0 : index
    %c0_51 = arith.constant 0 : index
    %134 = vector.load %arg12[%c0_50, %c0_51] : memref<1x128xf32, #tpu.memory_space<vmem>>, vector<1x128xf32>
    %135 = vector.broadcast %134 : vector<1x128xf32> to vector<8x128xf32>
    %136 = arith.addf %133, %135 : vector<8x128xf32>
    %137 = arith.addf %136, %111 : vector<8x128xf32>
    %c0_52 = arith.constant 0 : index
    %c0_53 = arith.constant 0 : index
    %138 = vector.load %arg13[%c0_52, %c0_53] : memref<1x128xf32, #tpu.memory_space<vmem>>, vector<1x128xf32>
    %c0_54 = arith.constant 0 : index
    %c0_55 = arith.constant 0 : index
    %139 = vector.load %arg14[%c0_54, %c0_55] : memref<1x128xf32, #tpu.memory_space<vmem>>, vector<1x128xf32>
    %cst_56 = arith.constant dense<0.000000e+00> : vector<8xf32>
    %140 = vector.multi_reduction <add>, %137, %cst_56 [1] : vector<8x128xf32> to vector<8xf32>
    %141 = vector.shape_cast %140 : vector<8xf32> to vector<8x1xf32>
    %cst_57 = arith.constant 7.812500e-03 : f32
    %142 = vector.broadcast %cst_57 : f32 to vector<8x1xf32>
    %143 = arith.mulf %141, %142 : vector<8x1xf32>
    %144 = vector.broadcast %143 : vector<8x1xf32> to vector<8x128xf32>
    %145 = arith.subf %137, %144 : vector<8x128xf32>
    %146 = arith.mulf %145, %145 : vector<8x128xf32>
    %cst_58 = arith.constant dense<0.000000e+00> : vector<8xf32>
    %147 = vector.multi_reduction <add>, %146, %cst_58 [1] : vector<8x128xf32> to vector<8xf32>
    %148 = vector.shape_cast %147 : vector<8xf32> to vector<8x1xf32>
    %cst_59 = arith.constant 7.812500e-03 : f32
    %149 = vector.broadcast %cst_59 : f32 to vector<8x1xf32>
    %150 = arith.mulf %148, %149 : vector<8x1xf32>
    %cst_60 = arith.constant 9.99999996E-13 : f32
    %151 = vector.broadcast %cst_60 : f32 to vector<8x1xf32>
    %152 = arith.addf %150, %151 : vector<8x1xf32>
    %153 = math.rsqrt %152 : vector<8x1xf32>
    %154 = vector.broadcast %153 : vector<8x1xf32> to vector<8x128xf32>
    %155 = arith.mulf %145, %154 : vector<8x128xf32>
    %156 = vector.broadcast %138 : vector<1x128xf32> to vector<8x128xf32>
    %157 = arith.mulf %155, %156 : vector<8x128xf32>
    %158 = vector.broadcast %139 : vector<1x128xf32> to vector<8x128xf32>
    %159 = arith.addf %157, %158 : vector<8x128xf32>
    %160 = arith.truncf %159 : vector<8x128xf32> to vector<8x128xbf16>
    %c0_61 = arith.constant 0 : index
    %c0_62 = arith.constant 0 : index
    %161 = vector.load %arg15[%c0_61, %c0_62] : memref<8x128xbf16, #tpu.memory_space<vmem>>, vector<8x128xbf16>
    tpu.vector_store %arg15[%c0_61, %c0_62], %160 {strides = array<i32>} : memref<8x128xbf16, #tpu.memory_space<vmem>>, vector<8x128xbf16>,
    return
  }
  func.func @transform_0(%arg0: i32) -> (i32, i32) {
    %c0_i32 = arith.constant 0 : i32
    %c0_i32_0 = arith.constant 0 : i32
    return %arg0, %c0_i32 : i32, i32
  }
  func.func @transform_1(%arg0: i32) -> (i32, i32) {
    %c0_i32 = arith.constant 0 : i32
    %c0_i32_0 = arith.constant 0 : i32
    %c0_i32_1 = arith.constant 0 : i32
    return %c0_i32, %c0_i32_0 : i32, i32
  }
  func.func @transform_2(%arg0: i32) -> (i32, i32) {
    %c0_i32 = arith.constant 0 : i32
    %c0_i32_0 = arith.constant 0 : i32
    %c0_i32_1 = arith.constant 0 : i32
    return %c0_i32, %c0_i32_0 : i32, i32
  }
  func.func @transform_3(%arg0: i32) -> (i32, i32, i32) {
    %c0_i32 = arith.constant 0 : i32
    %c0_i32_0 = arith.constant 0 : i32
    %c0_i32_1 = arith.constant 0 : i32
    return %arg0, %c0_i32, %c0_i32_0 : i32, i32, i32
  }
  func.func @transform_4(%arg0: i32) -> (i32, i32) {
    %c0_i32 = arith.constant 0 : i32
    %c0_i32_0 = arith.constant 0 : i32
    %c0_i32_1 = arith.constant 0 : i32
    return %c0_i32, %c0_i32_0 : i32, i32
  }
  func.func @transform_5(%arg0: i32) -> (i32, i32) {
    %c0_i32 = arith.constant 0 : i32
    %c0_i32_0 = arith.constant 0 : i32
    %c0_i32_1 = arith.constant 0 : i32
    return %c0_i32, %c0_i32_0 : i32, i32
  }
  func.func @transform_6(%arg0: i32) -> (i32, i32) {
    %c0_i32 = arith.constant 0 : i32
    %c0_i32_0 = arith.constant 0 : i32
    %c0_i32_1 = arith.constant 0 : i32
    return %c0_i32, %c0_i32_0 : i32, i32
  }
  func.func @transform_7(%arg0: i32) -> (i32, i32) {
    %c0_i32 = arith.constant 0 : i32
    %c0_i32_0 = arith.constant 0 : i32
    %c0_i32_1 = arith.constant 0 : i32
    return %c0_i32, %c0_i32_0 : i32, i32
  }
  func.func @transform_8(%arg0: i32) -> (i32, i32) {
    %c0_i32 = arith.constant 0 : i32
    %c0_i32_0 = arith.constant 0 : i32
    %c0_i32_1 = arith.constant 0 : i32
    return %c0_i32, %c0_i32_0 : i32, i32
  }
  func.func @transform_9(%arg0: i32) -> (i32, i32) {
    %c0_i32 = arith.constant 0 : i32
    %c0_i32_0 = arith.constant 0 : i32
    %c0_i32_1 = arith.constant 0 : i32
    return %c0_i32, %c0_i32_0 : i32, i32
  }
  func.func @transform_10(%arg0: i32) -> (i32, i32) {
    %c0_i32 = arith.constant 0 : i32
    %c0_i32_0 = arith.constant 0 : i32
    %c0_i32_1 = arith.constant 0 : i32
    return %c0_i32, %c0_i32_0 : i32, i32
  }
  func.func @transform_11(%arg0: i32) -> (i32, i32) {
    %c0_i32 = arith.constant 0 : i32
    %c0_i32_0 = arith.constant 0 : i32
    %c0_i32_1 = arith.constant 0 : i32
    return %c0_i32, %c0_i32_0 : i32, i32
  }
  func.func @transform_12(%arg0: i32) -> (i32, i32) {
    %c0_i32 = arith.constant 0 : i32
    %c0_i32_0 = arith.constant 0 : i32
    %c0_i32_1 = arith.constant 0 : i32
    return %c0_i32, %c0_i32_0 : i32, i32
  }
  func.func @transform_13(%arg0: i32) -> (i32, i32) {
    %c0_i32 = arith.constant 0 : i32
    %c0_i32_0 = arith.constant 0 : i32
    %c0_i32_1 = arith.constant 0 : i32
    return %c0_i32, %c0_i32_0 : i32, i32
  }
  func.func @transform_14(%arg0: i32) -> (i32, i32) {
    %c0_i32 = arith.constant 0 : i32
    %c0_i32_0 = arith.constant 0 : i32
    return %arg0, %c0_i32 : i32, i32
  }
}

module attributes {stable_mosaic.version = 11 : i64} {
  func.func @_layer_kernel(%arg0: i32, %arg1: memref<8x128xbf16, #tpu.memory_space<vmem>>, %arg2: memref<128x384xbf16, #tpu.memory_space<vmem>>, %arg3: memref<1x384xf32, #tpu.memory_space<vmem>>, %arg4: memref<1x1x8xf32, #tpu.memory_space<vmem>>, %arg5: memref<128x128xbf16, #tpu.memory_space<vmem>>, %arg6: memref<1x128xf32, #tpu.memory_space<vmem>>, %arg7: memref<1x128xf32, #tpu.memory_space<vmem>>, %arg8: memref<1x128xf32, #tpu.memory_space<vmem>>, %arg9: memref<128x512xbf16, #tpu.memory_space<vmem>>, %arg10: memref<1x512xf32, #tpu.memory_space<vmem>>, %arg11: memref<512x128xbf16, #tpu.memory_space<vmem>>, %arg12: memref<1x128xf32, #tpu.memory_space<vmem>>, %arg13: memref<1x128xf32, #tpu.memory_space<vmem>>, %arg14: memref<1x128xf32, #tpu.memory_space<vmem>>, %arg15: memref<8x128xbf16, #tpu.memory_space<vmem>>) attributes {dimension_semantics = [#tpu.dimension_semantics<parallel>], iteration_bounds = array<i64: 2>, scalar_prefetch = 0 : i64, scratch_operands = 0 : i64, tpu.core_type = #tpu.core_type<tc>, window_params = [{transform_indices = @transform_0, window_bounds = array<i64: 8, 128>}, {pipeline_mode = #tpu.pipeline_mode<synchronous>, transform_indices = @transform_1, window_bounds = array<i64: 128, 384>}, {pipeline_mode = #tpu.pipeline_mode<synchronous>, transform_indices = @transform_2, window_bounds = array<i64: 1, 384>}, {transform_indices = @transform_3, window_bounds = array<i64: 1, 1, 8>}, {pipeline_mode = #tpu.pipeline_mode<synchronous>, transform_indices = @transform_4, window_bounds = array<i64: 128, 128>}, {pipeline_mode = #tpu.pipeline_mode<synchronous>, transform_indices = @transform_5, window_bounds = array<i64: 1, 128>}, {pipeline_mode = #tpu.pipeline_mode<synchronous>, transform_indices = @transform_6, window_bounds = array<i64: 1, 128>}, {pipeline_mode = #tpu.pipeline_mode<synchronous>, transform_indices = @transform_7, window_bounds = array<i64: 1, 128>}, {pipeline_mode = #tpu.pipeline_mode<synchronous>, transform_indices = @transform_8, window_bounds = array<i64: 128, 512>}, {pipeline_mode = #tpu.pipeline_mode<synchronous>, transform_indices = @transform_9, window_bounds = array<i64: 1, 512>}, {pipeline_mode = #tpu.pipeline_mode<synchronous>, transform_indices = @transform_10, window_bounds = array<i64: 512, 128>}, {pipeline_mode = #tpu.pipeline_mode<synchronous>, transform_indices = @transform_11, window_bounds = array<i64: 1, 128>}, {pipeline_mode = #tpu.pipeline_mode<synchronous>, transform_indices = @transform_12, window_bounds = array<i64: 1, 128>}, {pipeline_mode = #tpu.pipeline_mode<synchronous>, transform_indices = @transform_13, window_bounds = array<i64: 1, 128>}, {transform_indices = @transform_14, window_bounds = array<i64: 8, 128>}]} {
    %c0 = arith.constant 0 : index
    %c0_0 = arith.constant 0 : index
    %0 = vector.load %arg1[%c0, %c0_0] : memref<8x128xbf16, #tpu.memory_space<vmem>>, vector<8x128xbf16>
    %c0_1 = arith.constant 0 : index
    %c0_2 = arith.constant 0 : index
    %1 = vector.load %arg2[%c0_1, %c0_2] : memref<128x384xbf16, #tpu.memory_space<vmem>>, vector<128x384xbf16>
    %cst = arith.constant dense<0.000000e+00> : vector<8x384xf32>
    %2 = tpu.matmul %0, %1, %cst {dimension_numbers = #tpu.dot_dimension_numbers<[1], [0], [0], [1], [0, 0, 1, 1], [], []>} : vector<8x128xbf16>, vector<128x384xbf16>, vector<8x384xf32> -> vector<8x384xf32>
    %c0_3 = arith.constant 0 : index
    %c0_4 = arith.constant 0 : index
    %3 = vector.load %arg3[%c0_3, %c0_4] : memref<1x384xf32, #tpu.memory_space<vmem>>, vector<1x384xf32>
    %4 = vector.broadcast %3 : vector<1x384xf32> to vector<8x384xf32>
    %5 = arith.addf %2, %4 : vector<8x384xf32>
    %6 = arith.truncf %5 : vector<8x384xf32> to vector<8x384xbf16>
    %c0_5 = arith.constant 0 : index
    %c0_6 = arith.constant 0 : index
    %c0_7 = arith.constant 0 : index
    %7 = vector.load %arg4[%c0_5, %c0_6, %c0_7] : memref<1x1x8xf32, #tpu.memory_space<vmem>>, vector<1x1x8xf32>
    %8 = vector.shape_cast %7 : vector<1x1x8xf32> to vector<1x8xf32>
    %9 = vector.extract_strided_slice %6 {offsets = [0, 0], sizes = [8, 32], strides = [1, 1]} : vector<8x384xbf16> to vector<8x32xbf16>
    %10 = vector.extract_strided_slice %6 {offsets = [0, 128], sizes = [8, 32], strides = [1, 1]} : vector<8x384xbf16> to vector<8x32xbf16>
    %11 = vector.extract_strided_slice %6 {offsets = [0, 256], sizes = [8, 32], strides = [1, 1]} : vector<8x384xbf16> to vector<8x32xbf16>
    "tpu.trace_start"() <{level = 10 : i32, message = "qd,kd->qk"}> : () -> ()
    %cst_8 = arith.constant dense<0.000000e+00> : vector<8x8xf32>
    %12 = tpu.matmul %9, %10, %cst_8 {dimension_numbers = #tpu.dot_dimension_numbers<[1], [1], [0], [0], [0, 0, 1, 0], [], []>} : vector<8x32xbf16>, vector<8x32xbf16>, vector<8x8xf32> -> vector<8x8xf32>
    "tpu.trace_stop"() : () -> ()
    %13 = vector.broadcast %8 : vector<1x8xf32> to vector<8x8xf32>
    %14 = arith.addf %12, %13 : vector<8x8xf32>
    %cst_9 = arith.constant dense<0xFF800000> : vector<8xf32>
    %15 = vector.multi_reduction <maximumf>, %14, %cst_9 [1] : vector<8x8xf32> to vector<8xf32>
    %16 = vector.shape_cast %15 : vector<8xf32> to vector<8x1xf32>
    %17 = vector.broadcast %16 : vector<8x1xf32> to vector<8x8xf32>
    %18 = arith.subf %14, %17 : vector<8x8xf32>
    %19 = math.exp %18 : vector<8x8xf32>
    %cst_10 = arith.constant dense<0.000000e+00> : vector<8xf32>
    %20 = vector.multi_reduction <add>, %19, %cst_10 [1] : vector<8x8xf32> to vector<8xf32>
    %21 = vector.shape_cast %20 : vector<8xf32> to vector<8x1xf32>
    %22 = tpu.reciprocal %21 {approx = true} : vector<8x1xf32> -> vector<8x1xf32>
    %23 = vector.broadcast %22 : vector<8x1xf32> to vector<8x8xf32>
    %24 = arith.mulf %19, %23 : vector<8x8xf32>
    %25 = arith.truncf %24 : vector<8x8xf32> to vector<8x8xbf16>
    %cst_11 = arith.constant dense<0.000000e+00> : vector<8x32xf32>
    %26 = tpu.matmul %25, %11, %cst_11 {dimension_numbers = #tpu.dot_dimension_numbers<[1], [0], [0], [1], [0, 0, 1, 1], [], []>} : vector<8x8xbf16>, vector<8x32xbf16>, vector<8x32xf32> -> vector<8x32xf32>
    %27 = vector.extract_strided_slice %6 {offsets = [0, 32], sizes = [8, 32], strides = [1, 1]} : vector<8x384xbf16> to vector<8x32xbf16>
    %28 = vector.extract_strided_slice %6 {offsets = [0, 160], sizes = [8, 32], strides = [1, 1]} : vector<8x384xbf16> to vector<8x32xbf16>
    %29 = vector.extract_strided_slice %6 {offsets = [0, 288], sizes = [8, 32], strides = [1, 1]} : vector<8x384xbf16> to vector<8x32xbf16>
    "tpu.trace_start"() <{level = 10 : i32, message = "qd,kd->qk"}> : () -> ()
    %cst_12 = arith.constant dense<0.000000e+00> : vector<8x8xf32>
    %30 = tpu.matmul %27, %28, %cst_12 {dimension_numbers = #tpu.dot_dimension_numbers<[1], [1], [0], [0], [0, 0, 1, 0], [], []>} : vector<8x32xbf16>, vector<8x32xbf16>, vector<8x8xf32> -> vector<8x8xf32>
    "tpu.trace_stop"() : () -> ()
    %31 = vector.broadcast %8 : vector<1x8xf32> to vector<8x8xf32>
    %32 = arith.addf %30, %31 : vector<8x8xf32>
    %cst_13 = arith.constant dense<0xFF800000> : vector<8xf32>
    %33 = vector.multi_reduction <maximumf>, %32, %cst_13 [1] : vector<8x8xf32> to vector<8xf32>
    %34 = vector.shape_cast %33 : vector<8xf32> to vector<8x1xf32>
    %35 = vector.broadcast %34 : vector<8x1xf32> to vector<8x8xf32>
    %36 = arith.subf %32, %35 : vector<8x8xf32>
    %37 = math.exp %36 : vector<8x8xf32>
    %cst_14 = arith.constant dense<0.000000e+00> : vector<8xf32>
    %38 = vector.multi_reduction <add>, %37, %cst_14 [1] : vector<8x8xf32> to vector<8xf32>
    %39 = vector.shape_cast %38 : vector<8xf32> to vector<8x1xf32>
    %40 = tpu.reciprocal %39 {approx = true} : vector<8x1xf32> -> vector<8x1xf32>
    %41 = vector.broadcast %40 : vector<8x1xf32> to vector<8x8xf32>
    %42 = arith.mulf %37, %41 : vector<8x8xf32>
    %43 = arith.truncf %42 : vector<8x8xf32> to vector<8x8xbf16>
    %cst_15 = arith.constant dense<0.000000e+00> : vector<8x32xf32>
    %44 = tpu.matmul %43, %29, %cst_15 {dimension_numbers = #tpu.dot_dimension_numbers<[1], [0], [0], [1], [0, 0, 1, 1], [], []>} : vector<8x8xbf16>, vector<8x32xbf16>, vector<8x32xf32> -> vector<8x32xf32>
    %45 = vector.extract_strided_slice %6 {offsets = [0, 64], sizes = [8, 32], strides = [1, 1]} : vector<8x384xbf16> to vector<8x32xbf16>
    %46 = vector.extract_strided_slice %6 {offsets = [0, 192], sizes = [8, 32], strides = [1, 1]} : vector<8x384xbf16> to vector<8x32xbf16>
    %47 = vector.extract_strided_slice %6 {offsets = [0, 320], sizes = [8, 32], strides = [1, 1]} : vector<8x384xbf16> to vector<8x32xbf16>
    "tpu.trace_start"() <{level = 10 : i32, message = "qd,kd->qk"}> : () -> ()
    %cst_16 = arith.constant dense<0.000000e+00> : vector<8x8xf32>
    %48 = tpu.matmul %45, %46, %cst_16 {dimension_numbers = #tpu.dot_dimension_numbers<[1], [1], [0], [0], [0, 0, 1, 0], [], []>} : vector<8x32xbf16>, vector<8x32xbf16>, vector<8x8xf32> -> vector<8x8xf32>
    "tpu.trace_stop"() : () -> ()
    %49 = vector.broadcast %8 : vector<1x8xf32> to vector<8x8xf32>
    %50 = arith.addf %48, %49 : vector<8x8xf32>
    %cst_17 = arith.constant dense<0xFF800000> : vector<8xf32>
    %51 = vector.multi_reduction <maximumf>, %50, %cst_17 [1] : vector<8x8xf32> to vector<8xf32>
    %52 = vector.shape_cast %51 : vector<8xf32> to vector<8x1xf32>
    %53 = vector.broadcast %52 : vector<8x1xf32> to vector<8x8xf32>
    %54 = arith.subf %50, %53 : vector<8x8xf32>
    %55 = math.exp %54 : vector<8x8xf32>
    %cst_18 = arith.constant dense<0.000000e+00> : vector<8xf32>
    %56 = vector.multi_reduction <add>, %55, %cst_18 [1] : vector<8x8xf32> to vector<8xf32>
    %57 = vector.shape_cast %56 : vector<8xf32> to vector<8x1xf32>
    %58 = tpu.reciprocal %57 {approx = true} : vector<8x1xf32> -> vector<8x1xf32>
    %59 = vector.broadcast %58 : vector<8x1xf32> to vector<8x8xf32>
    %60 = arith.mulf %55, %59 : vector<8x8xf32>
    %61 = arith.truncf %60 : vector<8x8xf32> to vector<8x8xbf16>
    %cst_19 = arith.constant dense<0.000000e+00> : vector<8x32xf32>
    %62 = tpu.matmul %61, %47, %cst_19 {dimension_numbers = #tpu.dot_dimension_numbers<[1], [0], [0], [1], [0, 0, 1, 1], [], []>} : vector<8x8xbf16>, vector<8x32xbf16>, vector<8x32xf32> -> vector<8x32xf32>
    %63 = vector.extract_strided_slice %6 {offsets = [0, 96], sizes = [8, 32], strides = [1, 1]} : vector<8x384xbf16> to vector<8x32xbf16>
    %64 = vector.extract_strided_slice %6 {offsets = [0, 224], sizes = [8, 32], strides = [1, 1]} : vector<8x384xbf16> to vector<8x32xbf16>
    %65 = vector.extract_strided_slice %6 {offsets = [0, 352], sizes = [8, 32], strides = [1, 1]} : vector<8x384xbf16> to vector<8x32xbf16>
    "tpu.trace_start"() <{level = 10 : i32, message = "qd,kd->qk"}> : () -> ()
    %cst_20 = arith.constant dense<0.000000e+00> : vector<8x8xf32>
    %66 = tpu.matmul %63, %64, %cst_20 {dimension_numbers = #tpu.dot_dimension_numbers<[1], [1], [0], [0], [0, 0, 1, 0], [], []>} : vector<8x32xbf16>, vector<8x32xbf16>, vector<8x8xf32> -> vector<8x8xf32>
    "tpu.trace_stop"() : () -> ()
    %67 = vector.broadcast %8 : vector<1x8xf32> to vector<8x8xf32>
    %68 = arith.addf %66, %67 : vector<8x8xf32>
    %cst_21 = arith.constant dense<0xFF800000> : vector<8xf32>
    %69 = vector.multi_reduction <maximumf>, %68, %cst_21 [1] : vector<8x8xf32> to vector<8xf32>
    %70 = vector.shape_cast %69 : vector<8xf32> to vector<8x1xf32>
    %71 = vector.broadcast %70 : vector<8x1xf32> to vector<8x8xf32>
    %72 = arith.subf %68, %71 : vector<8x8xf32>
    %73 = math.exp %72 : vector<8x8xf32>
    %cst_22 = arith.constant dense<0.000000e+00> : vector<8xf32>
    %74 = vector.multi_reduction <add>, %73, %cst_22 [1] : vector<8x8xf32> to vector<8xf32>
    %75 = vector.shape_cast %74 : vector<8xf32> to vector<8x1xf32>
    %76 = tpu.reciprocal %75 {approx = true} : vector<8x1xf32> -> vector<8x1xf32>
    %77 = vector.broadcast %76 : vector<8x1xf32> to vector<8x8xf32>
    %78 = arith.mulf %73, %77 : vector<8x8xf32>
    %79 = arith.truncf %78 : vector<8x8xf32> to vector<8x8xbf16>
    %cst_23 = arith.constant dense<0.000000e+00> : vector<8x32xf32>
    %80 = tpu.matmul %79, %65, %cst_23 {dimension_numbers = #tpu.dot_dimension_numbers<[1], [0], [0], [1], [0, 0, 1, 1], [], []>} : vector<8x8xbf16>, vector<8x32xbf16>, vector<8x32xf32> -> vector<8x32xf32>
    %81 = tpu.concatenate %26, %44, %62, %80 in 1 : vector<8x32xf32>, vector<8x32xf32>, vector<8x32xf32>, vector<8x32xf32> -> vector<8x128xf32>
    %82 = arith.truncf %81 : vector<8x128xf32> to vector<8x128xbf16>
    %c0_24 = arith.constant 0 : index
    %c0_25 = arith.constant 0 : index
    %83 = vector.load %arg5[%c0_24, %c0_25] : memref<128x128xbf16, #tpu.memory_space<vmem>>, vector<128x128xbf16>
    %cst_26 = arith.constant dense<0.000000e+00> : vector<8x128xf32>
    %84 = tpu.matmul %82, %83, %cst_26 {dimension_numbers = #tpu.dot_dimension_numbers<[1], [0], [0], [1], [0, 0, 1, 1], [], []>} : vector<8x128xbf16>, vector<128x128xbf16>, vector<8x128xf32> -> vector<8x128xf32>
    %c0_27 = arith.constant 0 : index
    %c0_28 = arith.constant 0 : index
    %85 = vector.load %arg6[%c0_27, %c0_28] : memref<1x128xf32, #tpu.memory_space<vmem>>, vector<1x128xf32>
    %86 = vector.broadcast %85 : vector<1x128xf32> to vector<8x128xf32>
    %87 = arith.addf %84, %86 : vector<8x128xf32>
    %88 = arith.extf %0 : vector<8x128xbf16> to vector<8x128xf32>
    %89 = arith.addf %87, %88 : vector<8x128xf32>
    %c0_29 = arith.constant 0 : index
    %c0_30 = arith.constant 0 : index
    %90 = vector.load %arg7[%c0_29, %c0_30] : memref<1x128xf32, #tpu.memory_space<vmem>>, vector<1x128xf32>
    %c0_31 = arith.constant 0 : index
    %c0_32 = arith.constant 0 : index
    %91 = vector.load %arg8[%c0_31, %c0_32] : memref<1x128xf32, #tpu.memory_space<vmem>>, vector<1x128xf32>
    %cst_33 = arith.constant dense<0.000000e+00> : vector<8xf32>
    %92 = vector.multi_reduction <add>, %89, %cst_33 [1] : vector<8x128xf32> to vector<8xf32>
    %93 = vector.shape_cast %92 : vector<8xf32> to vector<8x1xf32>
    %cst_34 = arith.constant 7.812500e-03 : f32
    %94 = vector.broadcast %cst_34 : f32 to vector<8x1xf32>
    %95 = arith.mulf %93, %94 : vector<8x1xf32>
    %96 = vector.broadcast %95 : vector<8x1xf32> to vector<8x128xf32>
    %97 = arith.subf %89, %96 : vector<8x128xf32>
    %98 = arith.mulf %97, %97 : vector<8x128xf32>
    %cst_35 = arith.constant dense<0.000000e+00> : vector<8xf32>
    %99 = vector.multi_reduction <add>, %98, %cst_35 [1] : vector<8x128xf32> to vector<8xf32>
    %100 = vector.shape_cast %99 : vector<8xf32> to vector<8x1xf32>
    %cst_36 = arith.constant 7.812500e-03 : f32
    %101 = vector.broadcast %cst_36 : f32 to vector<8x1xf32>
    %102 = arith.mulf %100, %101 : vector<8x1xf32>
    %cst_37 = arith.constant 9.99999996E-13 : f32
    %103 = vector.broadcast %cst_37 : f32 to vector<8x1xf32>
    %104 = arith.addf %102, %103 : vector<8x1xf32>
    %105 = math.rsqrt %104 : vector<8x1xf32>
    %106 = vector.broadcast %105 : vector<8x1xf32> to vector<8x128xf32>
    %107 = arith.mulf %97, %106 : vector<8x128xf32>
    %108 = vector.broadcast %90 : vector<1x128xf32> to vector<8x128xf32>
    %109 = arith.mulf %107, %108 : vector<8x128xf32>
    %110 = vector.broadcast %91 : vector<1x128xf32> to vector<8x128xf32>
    %111 = arith.addf %109, %110 : vector<8x128xf32>
    %112 = arith.truncf %111 : vector<8x128xf32> to vector<8x128xbf16>
    %c0_38 = arith.constant 0 : index
    %c0_39 = arith.constant 0 : index
    %113 = vector.load %arg9[%c0_38, %c0_39] : memref<128x512xbf16, #tpu.memory_space<vmem>>, vector<128x512xbf16>
    %cst_40 = arith.constant dense<0.000000e+00> : vector<8x512xf32>
    %114 = tpu.matmul %112, %113, %cst_40 {dimension_numbers = #tpu.dot_dimension_numbers<[1], [0], [0], [1], [0, 0, 1, 1], [], []>} : vector<8x128xbf16>, vector<128x512xbf16>, vector<8x512xf32> -> vector<8x512xf32>
    %c0_41 = arith.constant 0 : index
    %c0_42 = arith.constant 0 : index
    %115 = vector.load %arg10[%c0_41, %c0_42] : memref<1x512xf32, #tpu.memory_space<vmem>>, vector<1x512xf32>
    %116 = vector.broadcast %115 : vector<1x512xf32> to vector<8x512xf32>
    %117 = arith.addf %114, %116 : vector<8x512xf32>
    %118 = arith.truncf %117 : vector<8x512xf32> to vector<8x512xbf16>
    %cst_43 = arith.constant 5.000000e-01 : bf16
    %119 = vector.broadcast %cst_43 : bf16 to vector<8x512xbf16>
    %120 = arith.mulf %119, %118 : vector<8x512xbf16>
    %cst_44 = arith.constant 4.467770e-02 : bf16
    %121 = vector.broadcast %cst_44 : bf16 to vector<8x512xbf16>
    %122 = arith.mulf %121, %118 : vector<8x512xbf16>
    %123 = arith.mulf %122, %118 : vector<8x512xbf16>
    %124 = arith.mulf %123, %118 : vector<8x512xbf16>
    %125 = arith.addf %118, %124 : vector<8x512xbf16>
    %cst_45 = arith.constant 7.968750e-01 : bf16
    %126 = vector.broadcast %cst_45 : bf16 to vector<8x512xbf16>
    %127 = arith.mulf %126, %125 : vector<8x512xbf16>
    %128 = math.tanh %127 : vector<8x512xbf16>
    %cst_46 = arith.constant 1.000000e+00 : bf16
    %129 = vector.broadcast %cst_46 : bf16 to vector<8x512xbf16>
    %130 = arith.addf %129, %128 : vector<8x512xbf16>
    %131 = arith.mulf %120, %130 : vector<8x512xbf16>
    %c0_47 = arith.constant 0 : index
    %c0_48 = arith.constant 0 : index
    %132 = vector.load %arg11[%c0_47, %c0_48] : memref<512x128xbf16, #tpu.memory_space<vmem>>, vector<512x128xbf16>
    %cst_49 = arith.constant dense<0.000000e+00> : vector<8x128xf32>
    %133 = tpu.matmul %131, %132, %cst_49 {dimension_numbers = #tpu.dot_dimension_numbers<[1], [0], [0], [1], [0, 0, 1, 1], [], []>} : vector<8x512xbf16>, vector<512x128xbf16>, vector<8x128xf32> -> vector<8x128xf32>
    %c0_50 = arith.constant 0 : index
    %c0_51 = arith.constant 0 : index
    %134 = vector.load %arg12[%c0_50, %c0_51] : memref<1x128xf32, #tpu.memory_space<vmem>>, vector<1x128xf32>
    %135 = vector.broadcast %134 : vector<1x128xf32> to vector<8x128xf32>
    %136 = arith.addf %133, %135 : vector<8x128xf32>
    %137 = arith.addf %136, %111 : vector<8x128xf32>
    %c0_52 = arith.constant 0 : index
    %c0_53 = arith.constant 0 : index
    %138 = vector.load %arg13[%c0_52, %c0_53] : memref<1x128xf32, #tpu.memory_space<vmem>>, vector<1x128xf32>
    %c0_54 = arith.constant 0 : index
    %c0_55 = arith.constant 0 : index
    %139 = vector.load %arg14[%c0_54, %c0_55] : memref<1x128xf32, #tpu.memory_space<vmem>>, vector<1x128xf32>
    %cst_56 = arith.constant dense<0.000000e+00> : vector<8xf32>
    %140 = vector.multi_reduction <add>, %137, %cst_56 [1] : vector<8x128xf32> to vector<8xf32>
    %141 = vector.shape_cast %140 : vector<8xf32> to vector<8x1xf32>
    %cst_57 = arith.constant 7.812500e-03 : f32
    %142 = vector.broadcast %cst_57 : f32 to vector<8x1xf32>
    %143 = arith.mulf %141, %142 : vector<8x1xf32>
    %144 = vector.broadcast %143 : vector<8x1xf32> to vector<8x128xf32>
    %145 = arith.subf %137, %144 : vector<8x128xf32>
    %146 = arith.mulf %145, %145 : vector<8x128xf32>
    %cst_58 = arith.constant dense<0.000000e+00> : vector<8xf32>
    %147 = vector.multi_reduction <add>, %146, %cst_58 [1] : vector<8x128xf32> to vector<8xf32>
    %148 = vector.shape_cast %147 : vector<8xf32> to vector<8x1xf32>
    %cst_59 = arith.constant 7.812500e-03 : f32
    %149 = vector.broadcast %cst_59 : f32 to vector<8x1xf32>
    %150 = arith.mulf %148, %149 : vector<8x1xf32>
    %cst_60 = arith.constant 9.99999996E-13 : f32
    %151 = vector.broadcast %cst_60 : f32 to vector<8x1xf32>
    %152 = arith.addf %150, %151 : vector<8x1xf32>
    %153 = math.rsqrt %152 : vector<8x1xf32>
    %154 = vector.broadcast %153 : vector<8x1xf32> to vector<8x128xf32>
    %155 = arith.mulf %145, %154 : vector<8x128xf32>
    %156 = vector.broadcast %138 : vector<1x128xf32> to vector<8x128xf32>
    %157 = arith.mulf %155, %156 : vector<8x128xf32>
    %158 = vector.broadcast %139 : vector<1x128xf32> to vector<8x128xf32>
    %159 = arith.addf %157, %158 : vector<8x128xf32>
    %160 = arith.truncf %159 : vector<8x128xf32> to vector<8x128xbf16>
    %c0_61 = arith.constant 0 : index
    %c0_62 = arith.constant 0 : index
    %161 = vector.load %arg15[%c0_61, %c0_62] : memref<8x128xbf16, #tpu.memory_space<vmem>>, vector<8x128xbf16>
    tpu.vector_store %arg15[%c0_61, %c0_62], %160 {strides = array<i32>} : memref<8x128xbf16, #tpu.memory_space<vmem>>, vector<8x128xbf16>,
    return
  }
  func.func @transform_0(%arg0: i32) -> (i32, i32) {
    %c0_i32 = arith.constant 0 : i32
    %c0_i32_0 = arith.constant 0 : i32
    return %arg0, %c0_i32 : i32, i32
  }
  func.func @transform_1(%arg0: i32) -> (i32, i32) {
    %c0_i32 = arith.constant 0 : i32
    %c0_i32_0 = arith.constant 0 : i32
    %c0_i32_1 = arith.constant 0 : i32
    return %c0_i32, %c0_i32_0 : i32, i32
  }
  func.func @transform_2(%arg0: i32) -> (i32, i32) {
    %c0_i32 = arith.constant 0 : i32
    %c0_i32_0 = arith.constant 0 : i32
    %c0_i32_1 = arith.constant 0 : i32
    return %c0_i32, %c0_i32_0 : i32, i32
  }
  func.func @transform_3(%arg0: i32) -> (i32, i32, i32) {
    %c0_i32 = arith.constant 0 : i32
    %c0_i32_0 = arith.constant 0 : i32
    %c0_i32_1 = arith.constant 0 : i32
    return %arg0, %c0_i32, %c0_i32_0 : i32, i32, i32
  }
  func.func @transform_4(%arg0: i32) -> (i32, i32) {
    %c0_i32 = arith.constant 0 : i32
    %c0_i32_0 = arith.constant 0 : i32
    %c0_i32_1 = arith.constant 0 : i32
    return %c0_i32, %c0_i32_0 : i32, i32
  }
  func.func @transform_5(%arg0: i32) -> (i32, i32) {
    %c0_i32 = arith.constant 0 : i32
    %c0_i32_0 = arith.constant 0 : i32
    %c0_i32_1 = arith.constant 0 : i32
    return %c0_i32, %c0_i32_0 : i32, i32
  }
  func.func @transform_6(%arg0: i32) -> (i32, i32) {
    %c0_i32 = arith.constant 0 : i32
    %c0_i32_0 = arith.constant 0 : i32
    %c0_i32_1 = arith.constant 0 : i32
    return %c0_i32, %c0_i32_0 : i32, i32
  }
  func.func @transform_7(%arg0: i32) -> (i32, i32) {
    %c0_i32 = arith.constant 0 : i32
    %c0_i32_0 = arith.constant 0 : i32
    %c0_i32_1 = arith.constant 0 : i32
    return %c0_i32, %c0_i32_0 : i32, i32
  }
  func.func @transform_8(%arg0: i32) -> (i32, i32) {
    %c0_i32 = arith.constant 0 : i32
    %c0_i32_0 = arith.constant 0 : i32
    %c0_i32_1 = arith.constant 0 : i32
    return %c0_i32, %c0_i32_0 : i32, i32
  }
  func.func @transform_9(%arg0: i32) -> (i32, i32) {
    %c0_i32 = arith.constant 0 : i32
    %c0_i32_0 = arith.constant 0 : i32
    %c0_i32_1 = arith.constant 0 : i32
    return %c0_i32, %c0_i32_0 : i32, i32
  }
  func.func @transform_10(%arg0: i32) -> (i32, i32) {
    %c0_i32 = arith.constant 0 : i32
    %c0_i32_0 = arith.constant 0 : i32
    %c0_i32_1 = arith.constant 0 : i32
    return %c0_i32, %c0_i32_0 : i32, i32
  }
  func.func @transform_11(%arg0: i32) -> (i32, i32) {
    %c0_i32 = arith.constant 0 : i32
    %c0_i32_0 = arith.constant 0 : i32
    %c0_i32_1 = arith.constant 0 : i32
    return %c0_i32, %c0_i32_0 : i32, i32
  }
  func.func @transform_12(%arg0: i32) -> (i32, i32) {
    %c0_i32 = arith.constant 0 : i32
    %c0_i32_0 = arith.constant 0 : i32
    %c0_i32_1 = arith.constant 0 : i32
    return %c0_i32, %c0_i32_0 : i32, i32
  }
  func.func @transform_13(%arg0: i32) -> (i32, i32) {
    %c0_i32 = arith.constant 0 : i32
    %c0_i32_0 = arith.constant 0 : i32
    %c0_i32_1 = arith.constant 0 : i32
    return %c0_i32, %c0_i32_0 : i32, i32
  }
  func.func @transform_14(%arg0: i32) -> (i32, i32) {
    %c0_i32 = arith.constant 0 : i32
    %c0_i32_0 = arith.constant 0 : i32
    return %arg0, %c0_i32 : i32, i32
  }
}

</mosaic_0001>

<bundles_post_ra>
// kernel: _lambda_.4
= control target key start
LH: loop header
LB: loop body
LE: loop exit
PB: predicated region body
PF: predicated region fallthrough
CT: control target
= control target key end

     0   :  { %s373_s18 = smov 0   ;;  %s406_s0 = inlined_call_operand.vmem [shape: f32[16,128], index: 0, kind: input, shape index: {}]   ;;  %s407_s1 = inlined_call_operand.vmem [shape: f32[16,128], index: 1, kind: input, shape index: {}]   ;;  %s408_s2 = inlined_call_operand.vmem [shape: f32[1,128], index: 2, kind: input, shape index: {}]   ;;  %s409_s3 = inlined_call_operand.vmem [shape: f32[1,128], index: 3, kind: input, shape index: {}]   ;;  %s410_s4 = inlined_call_operand.vmem [shape: f32[1,128], index: 4, kind: input, shape index: {}]   ;;  %s411_s5 = inlined_call_operand.vmem [shape: bf16[16,128], index: 5, kind: output, shape index: {}]  }
   0x1 LB: > { %s313_s19 = sadd.s32 4294967295, %s341_s18   ;;  %p317_p0 = scmp.ge.s32.totalorder %s341_s18, 1  ;;  %s341_s18 = sphi %s373_s18, %s15_s18  }
   0x2   : > { %p186_p1 = scmp.lt.s32.totalorder %s341_s18, 3 }
   0x4   : > { %p187_p2 = pnand %p317_p0, %p186_p1 }
   0x5   : > { %p212_p3 = scmp.lt.s32.totalorder (!%p187_p2), %s313_s19, 1 }
   0x6   : > { %190 = sbr.rel (%p187_p2) target bundleno = 288 (0x120), region = 40 }
   0xb   : > { %s413_s19 = smov (!%p212_p3, %s313_s19), 1  ;;  %v221_v0 = vld [vmem:[%s407_s1] sm:$0xff] }
   0xc   : > { %s318_s20 = sshll.u32 %s413_s19, 3  ;;  %v330_v1 = vld [vmem:[%s408_s2] ss:$0 sm:$0xff]  ;;  %s319_s7 = sshll.u32 %s413_s19, 2 }
   0xd   : > { %s215_s25 = scalar_lea.vmem %s406_s0, %s318_s20  ;;  %v331_v18 = vld [vmem:[%s409_s3] ss:$0 sm:$0xff]  ;;  %s219_s10 = scalar_lea.vmem %s411_s5, %s319_s7 }
   0xe   : > { %v220_v2 = vld [vmem:[%s215_s25] sm:$0xff] }
   0xf   : > { %v222_v3 = vadd.f32 %v221_v0, %v220_v2  ;;  %v332_v20 = vld [vmem:[%s410_s4] ss:$0 sm:$0xff] }
  0x11   : > { %v227_v4 = vadd.f32 %v330_v1, %v222_v3 }
  0x13   : > { %230 = vadd.xlane.f32.xlu0 %v227_v4 }
  0x86   : > { %v231_v5 = vpop.xlane.xlu0 %230 }
  0x87   : > { %v232_v6 = vmul.f32 0.0078125, %v231_v5 }
  0x89   : > { %v233_v7 = vsub.f32 %v227_v4, %v232_v6 }
  0x8b   : > { %v234_v8 = vmul.f32 %v233_v7, %v233_v7 }
  0x8d   : > { %235 = vadd.xlane.f32.xlu0 %v234_v8 }
 0x100   : > { %v236_v9 = vpop.xlane.xlu0 %235 }
 0x101   : > { %v237_v10 = vmul.f32 0.0078125, %v236_v9 }
 0x103   : > { %v238_v11 = vadd.f32 1e-12, %v237_v10 }
 0x105   : > { %333 = vrsqrt.f32 %v238_v11  ;;  %vm245_vm1 = vweird.f32 %v238_v11 }
 0x10b   : > { %v334_v12 = vpop.eup %333 }
 0x10c   : > { %v240_v13 = vmul.f32 %v334_v12, %v238_v11  ;;  %vm246_vm0 = vweird.f32 %v334_v12 }
 0x10d   : > { %vm247_vm2 = vmor %vm245_vm1, %vm246_vm0 }
 0x10e   : > { %v241_v14 = vmul.f32 %v334_v12, %v240_v13 }
 0x110   : > { %v242_v15 = vmul.f32 0.5, %v241_v14 }
 0x112   : > { %v243_v16 = vsub.f32 1.5, %v242_v15 }
 0x114   : > { %v244_v17 = vmul.f32 %v334_v12, %v243_v16 }
 0x116   : > { %v248_v19 = vsel %vm247_vm2, %v334_v12, %v244_v17 }
 0x117   : > { %v249_v21 = vmul.f32 %v248_v19, %v233_v7 }
 0x119   : > { %v253_v22 = vmul.f32 %v331_v18, %v249_v21 }
 0x11b   : > { %v257_v23 = vadd.f32 %v332_v20, %v253_v22 }
 0x11d   : > { %v258_v24 = vpack.c.bf16 %v257_v23, %v257_v23 }
 0x11f   : > { %259 = vst [vmem:[%s219_s10] sm:$0xf] %v258_v24 }
 0x120 PF: > { %s15_s18 = sadd.s32 1, %s341_s18  }
 0x121   : > { %p12_p4 = scmp.ge.s32.totalorder %s15_s18, 4  }
 0x123   :  { %14 = sbr.rel (!%p12_p4) target bundleno = 1 (0x1), region = 70 }

// kernel: _lambda_.7
= control target key start
LH: loop header
LB: loop body
LE: loop exit
PB: predicated region body
PF: predicated region fallthrough
CT: control target
= control target key end

     0   :  { %10 = vsyncpa [#allocation3], 0  ;;  %s511_s0 = inlined_call_operand.vmem [shape: bf16[16,128], index: 0, kind: input, shape index: {}]   ;;  %s512_s1 = inlined_call_operand.hbm [shape: bf16[128,128], index: 1, kind: input, shape index: {}]   ;;  %s513_s2 = inlined_call_operand.vmem [shape: f32[1,128], index: 2, kind: input, shape index: {}]   ;;  %s514_s3 = inlined_call_operand.hbm [shape: bf16[128,128], index: 3, kind: input, shape index: {}]   ;;  %s515_s4 = inlined_call_operand.hbm [shape: f32[1,128], index: 4, kind: input, shape index: {}]   ;;  %s516_s5 = inlined_call_operand.hbm [shape: f32[2,128], index: 5, kind: output, shape index: {}]  }
   0x1   :  { %11 = vsyncpa [#allocation6], 0 }
   0x2   :  { %12 = vsyncpa [#allocation4], 0  ;;  %s34_s20 = sshll.u32 %s514_s3, 4  ;;  %s454_s21 = smov [#allocation5]   ;;  %s35_s20 = int_to_ptr.hbm [resolvable:$true] %s34_s20 }
   0x3   :  { %s36_s22 = sshll.u32 %s454_s21, 4  ;;  %s19_s25 = sshll.u32 %s512_s1, 4  ;;  %s37_s22 = int_to_ptr.vmem [resolvable:$true] %s36_s22  ;;  %s20_s25 = int_to_ptr.hbm [resolvable:$true] %s19_s25 }
   0x4   :  { %s455_s26 = smov 64   ;;  %s456_s27 = smov 4  }
   0x5   :  { %42 = dma.hbm_to_vmem [thread:$0]  %s35_s20, 1024, %s37_s22, [#allocation6], %s455_s26, %s455_s26, %s456_s27  }
   0x6   :  { %s457_s28 = smov [#allocation2]   ;;  %s48_s7 = sshll.u32 %s515_s4, 4  ;;  %s49_s7 = int_to_ptr.hbm [resolvable:$true] %s48_s7 }
   0x7   :  { %s21_s29 = sshll.u32 %s457_s28, 4  ;;  %s458_s3 = smov [#allocation7]   ;;  %s22_s29 = int_to_ptr.vmem [resolvable:$true] %s21_s29 }
   0x8   :  { %27 = dma.hbm_to_vmem [thread:$0]  %s20_s25, 1024, %s22_s29, [#allocation3], %s455_s26, %s455_s26, %s456_s27  }
   0x9   :  { %s50_s8 = sshll.u32 %s458_s3, 4  ;;  %s51_s8 = int_to_ptr.vmem [resolvable:$true] %s50_s8 }
   0xa   :  { %53 = dma.hbm_to_vmem [thread:$0]  %s49_s7, 16, %s51_s8, [#allocation6]  }
   0xb   :  { %448 = dma.done.wait [#allocation3], 1024  }
   0xc   :  { %449 = vsyncadd [#allocation3], 4294966272 }
   0xd   :  { %450 = dma.done.wait [#allocation6], 1040  }
   0xe   :  { %451 = vsyncadd [#allocation6], 4294966256  ;;  %v333_v0 = vld [vmem:[#allocation2 + $0x38] sm:$0xff]  ;;  %v332_v1 = vld [vmem:[#allocation2 + $0x30] sm:$0xff]  ;;  %vm75_vm0 = vcmask 1040384   ;;  %s251_s16 = sshll.u32 %s516_s5, 4  ;;  %s252_s16 = int_to_ptr.hbm [resolvable:$true] %s251_s16 }
   0xf   :  { %147 = vmatpush.bf16.msra.mxu0 %v333_v0  ;;  %v341_v2 = vld [vmem:[#allocation5 + $0x38] sm:$0xff]  ;;  %v340_v3 = vld [vmem:[#allocation5 + $0x30] sm:$0xff]  ;;  %v331_v4 = vld [vmem:[#allocation2 + $0x28] sm:$0xff]  ;;  %vm76_vm1 = vsmask.f32 256 }
  0x10   :  { %230 = vmatpush.bf16.msra.mxu1 %v341_v2  ;;  %v339_v5 = vld [vmem:[#allocation5 + $0x28] sm:$0xff]  ;;  %v330_v6 = vld [vmem:[#allocation2 + $0x20] sm:$0xff]  ;;  %v329_v8 = vld [vmem:[#allocation2 + $0x18] sm:$0xff] }
  0x11   :  { %v338_v7 = vld [vmem:[#allocation5 + $0x20] sm:$0xff]  ;;  %v337_v10 = vld [vmem:[#allocation5 + $0x18] sm:$0xff]  ;;  %v328_v11 = vld [vmem:[#allocation2 + $0x10] sm:$0xff] }
  0x12   :  { %v67_v9 = vld [vmem:[%s511_s0 + $0x4] sm:$0x1]  ;;  %v327_v13 = vld [vmem:[#allocation2 + $0x8] sm:$0xff]  ;;  %v66_v17 = vld [vmem:[%s511_s0] sm:$0x1]  ;;  %s459_s0 = smov [#allocation8]  }
  0x13   :  { %148 = vmatpush.bf16.msra.mxu0 %v332_v1  ;;  %v69_v12 = vunpack.c.l.b16 %v67_v9  ;;  %v326_v15 = vld [vmem:[#allocation2] sm:$0xff]  ;;  %vm77_vm2 = vmand %vm75_vm0, %vm76_vm1  ;;  %v336_v19 = vld [vmem:[#allocation5 + $0x10] sm:$0xff]  ;;  %s249_s13 = sshll.u32 %s459_s0, 4  ;;  %s250_s13 = int_to_ptr.vmem [resolvable:$true] %s249_s13 }
  0x14   :  { %231 = vmatpush.bf16.msra.mxu1 %v340_v3  ;;  %v335_v20 = vld [vmem:[#allocation5 + $0x8] sm:$0xff]  ;;  %v334_v21 = vld [vmem:[#allocation5] sm:$0xff] }
  0x15   :  { %v70_v14 = vpack.c.b16 %v69_v12, %v69_v12  ;;  %v348_v22 = vld [vmem:[%s513_s2] ss:$0 sm:$0xff] }
  0x16   :  { %v349_v28 = vld [vmem:[#allocation7] ss:$0 sm:$0xff] }
  0x17   :  { %149 = vmatpush.bf16.msra.mxu0 %v331_v4  ;;  %v72_v16 = vshll.u32 %v70_v14, 16 }
  0x18   :  { %232 = vmatpush.bf16.msra.mxu1 %v339_v5 }
  0x19   :  { %v78_v18 = vsel %vm77_vm2, %v66_v17, %v72_v16 }
  0x1b   :  { %150 = vmatpush.bf16.msra.mxu0 %v330_v6 }
  0x1c   :  { %233 = vmatpush.bf16.msra.mxu1 %v338_v7 }
  0x1f   :  { %151 = vmatpush.bf16.msra.mxu0 %v329_v8 }
  0x20   :  { %234 = vmatpush.bf16.msra.mxu1 %v337_v10 }
  0x23   :  { %152 = vmatpush.bf16.msra.mxu0 %v328_v11 }
  0x24   :  { %235 = vmatpush.bf16.msra.mxu1 %v336_v19 }
  0x27   :  { %153 = vmatpush.bf16.msra.mxu0 %v327_v13 }
  0x28   :  { %236 = vmatpush.bf16.msra.mxu1 %v335_v20 }
  0x2b   :  { %154 = vmatpush.bf16.msra.mxu0 %v326_v15 }
  0x2c   :  { %237 = vmatpush.bf16.msra.mxu1 %v334_v21 }
  0x2e   :  { %155 = vmatmul.bf16.vlgmr.msra.gmra.mxu0 %v78_v18 }
  0xab   :  { %v156_v23 = vpop.f32.mrf.mxu0 }
  0xac   :  { %v157_v24 = vadd.f32 %v348_v22, %v156_v23 }
  0xae   :  { %350 = vtanh.f32 %v157_v24 }
  0xb3   :  { %v158_v25 = vpop.f32.mrf.mxu0 }
  0xb4   :  { %v351_v26 = vpop.eup %350 }
  0xb5   :  { %v161_v27 = vpack.c.bf16 %v351_v26, %v351_v26 }
  0xb7   :  { %238 = vmatmul.bf16.vlgmr.msra.gmra.mxu1 %v161_v27 }
 0x134   :  { %v239_v29 = vpop.f32.mrf.mxu1 }
 0x135   :  { %v240_v30 = vadd.f32 %v349_v28, %v239_v29 }
 0x137   :  { %243 = vst [vmem:[#allocation8] sm:$0x3] %v240_v30 }
 0x138   :  { %254 = dma.vmem_to_hbm [thread:$0]  %s250_s13, 32, %s252_s16, [#allocation4]  }
 0x13c   :  { %v241_v31 = vpop.f32.mrf.mxu1 }
 0x13d   :  { %452 = dma.done.wait [#allocation4], 32  }
 0x13e   :  { %453 = vsyncadd [#allocation4], 4294967264 }
 0x13f   :  { %259 = vsyncpa [#allocation3], 1 }
 0x140   :  { %260 = vsyncpa [#allocation6], 1 }
 0x141   :  { %261 = vsyncpa [#allocation4], 1 }

// kernel: _lambda_.5
= control target key start
LH: loop header
LB: loop body
LE: loop exit
PB: predicated region body
PF: predicated region fallthrough
CT: control target
= control target key end

     0   :  { %s2877_s0 = inlined_call_operand.vmem [shape: bf16[16,128], index: 0, kind: input, shape index: {}]   ;;  %s2878_s1 = inlined_call_operand.hbm [shape: bf16[128,384], index: 1, kind: input, shape index: {}]   ;;  %s2879_s2 = inlined_call_operand.vmem [shape: f32[1,384], index: 2, kind: input, shape index: {}]   ;;  %s2880_s3 = inlined_call_operand.vmem [shape: f32[2,1,8], index: 3, kind: input, shape index: {}]   ;;  %s2881_s4 = inlined_call_operand.vmem [shape: bf16[128,128], index: 4, kind: input, shape index: {}]   ;;  %s2882_s5 = inlined_call_operand.vmem [shape: f32[1,128], index: 5, kind: input, shape index: {}]   ;;  %s2883_s6 = inlined_call_operand.vmem [shape: f32[1,128], index: 6, kind: input, shape index: {}]   ;;  %s2884_s7 = inlined_call_operand.vmem [shape: f32[1,128], index: 7, kind: input, shape index: {}]   ;;  %s2885_s8 = inlined_call_operand.hbm [shape: bf16[128,512], index: 8, kind: input, shape index: {}]   ;;  %s2886_s9 = inlined_call_operand.vmem [shape: f32[1,512], index: 9, kind: input, shape index: {}]   ;;  %s2887_s10 = inlined_call_operand.hbm [shape: bf16[512,128], index: 10, kind: input, shape index: {}]   ;;  %s2888_s11 = inlined_call_operand.vmem [shape: f32[1,128], index: 11, kind: input, shape index: {}]   ;;  %s2889_s12 = inlined_call_operand.vmem [shape: f32[1,128], index: 12, kind: input, shape index: {}]   ;;  %s2890_s13 = inlined_call_operand.vmem [shape: f32[1,128], index: 13, kind: input, shape index: {}]   ;;  %s2891_s14 = inlined_call_operand.vmem [shape: bf16[16,128], index: 14, kind: output, shape index: {}]  }
   0x1   :  { %2893 = sst [smem:[#allocation10_spill]] %s2878_s1 }
   0x2   :  { %2894 = sst [smem:[#allocation11_spill]] %s2885_s8 }
   0x3   :  { %2895 = sst [smem:[#allocation12_spill]] %s2891_s14 }
   0x4   :  { %19 = vsyncpa [#allocation3], 0 }
   0x5   :  { %20 = vsyncpa [#allocation5], 0  ;;  %s2668_s29 = smov 0  }
   0x6 LB: > { %2896 = sst [smem:[#allocation9_spill]] %s2579_s29  ;;  %s2677_s17 = sadd.s32 4294967295, %s2579_s29   ;;  %s2579_s29 = sphi %s2668_s29, %s26_s29  }
   0x7   : > { %s2897_s8 = sld [smem:[#allocation11_spill]]  ;;  %p1891_p0 = scmp.ge.s32.totalorder %s2579_s29, 1 }
   0x8   : > { %p361_p1 = scmp.lt.s32.totalorder %s2579_s29, 3  ;;  %p2414_p2 = scmp.eq.s32.totalorder %s2677_s17, 0 }
   0x9   : > { %s2581_s19 = smov [#allocation4]   ;;  %s2899_s1 = sld [smem:[#allocation10_spill]] }
   0xa   : > { %p2682_p3 = pnand %p1891_p0, %p361_p1  ;;  %s403_s20 = sshll.u32 %s2581_s19, 4  ;;  %s404_s20 = int_to_ptr.vmem [resolvable:$true] %s403_s20 }
   0xb   : > { %s2582_s25 = smov [#allocation2]   ;;  %s2583_s27 = smov 256  }
   0xc   : > { %p2404_p4 = pneg %p2682_p3  ;;  %s374_s26 = sshll.u32 %s2582_s25, 4  ;;  %s375_s26 = int_to_ptr.vmem [resolvable:$true] %s374_s26 }
   0xd   : > { %s401_s16 = sshll.u32 %s2897_s8, 4  ;;  %s2584_s28 = smov 16   ;;  %s402_s16 = int_to_ptr.hbm [resolvable:$true] %s401_s16 }
   0xe   : > { %p2693_p5 = pnand %p2414_p2, %p2404_p4  ;;  %s418_s19 = sshll.u32 %s2887_s10, 4  ;;  %s419_s19 = int_to_ptr.hbm [resolvable:$true] %s418_s19 }
   0xf   : > { %s372_s23 = sshll.u32 %s2899_s1, 4  ;;  %s2585_s21 = smov 192   ;;  %s373_s23 = int_to_ptr.hbm [resolvable:$true] %s372_s23 }
  0x10   : > { %2410 = dma.hbm_to_vmem [thread:$0]  (!%p2693_p5), %s402_s16, 4096, %s404_s20, [#allocation5], %s2583_s27, %s2583_s27, %s2584_s28  }
  0x11   : > { %s2586_s22 = smov 12   ;;  %s2587_s1 = smov [#allocation6]  }
  0x12   : > { %2407 = dma.hbm_to_vmem [thread:$0]  (!%p2693_p5), %s373_s23, 3072, %s375_s26, [#allocation3], %s2585_s21, %s2585_s21, %s2586_s22  }
  0x13   : > { %s420_s8 = sshll.u32 %s2587_s1, 4  ;;  %s2588_s29 = smov 64   ;;  %s421_s8 = int_to_ptr.vmem [resolvable:$true] %s420_s8 }
  0x14   : > { %s2589_s14 = smov 4   ;;  %458 = sbr.rel (%p2682_p3) target bundleno = 2278 (0x8e6), region = 76 }
  0x15   : > { %2413 = dma.hbm_to_vmem [thread:$0]  (!%p2693_p5), %s419_s19, 4096, %s421_s8, [#allocation5], %s2588_s29, %s2588_s29, %s2589_s14  }
  0x19   : > { %2570 = dma.done.wait (%p2414_p2), [#allocation3], 3072  }
  0x1a   : > { %2572 = vsyncadd (%p2414_p2), [#allocation3], 4294964224 }
  0x1b   : > { %2574 = dma.done.wait (%p2414_p2), [#allocation5], 8192  }
  0x1c   : > { %2576 = vsyncadd (%p2414_p2), [#allocation5], 4294959104  ;;  %v1988_v0 = vld [vmem:[#allocation2 + $0xa8] sm:$0xf]  ;;  %v2318_v1 = vld [vmem:[#allocation2 + $0xb0] sm:$0xf0] }
  0x1d   : > { %v2317_v2 = vld [vmem:[#allocation2 + $0xac] sm:$0xf]  ;;  %v1989_v3 = vor.u32 %v2318_v1, %v1988_v0  ;;  %v1990_v4 = vld [vmem:[#allocation2 + $0xb4] sm:$0xf0]  ;;  %v1976_v5 = vld [vmem:[#allocation2 + $0x90] sm:$0xf] }
  0x1e   : > { %v2315_v6 = vld [vmem:[#allocation2 + $0x98] sm:$0xf0]  ;;  %v1993_v7 = vor.u32 %v2317_v2, %v1990_v4  ;;  %v2314_v8 = vld [vmem:[#allocation2 + $0x94] sm:$0xf]  ;;  %v1978_v9 = vld [vmem:[#allocation2 + $0x9c] sm:$0xf0] }
  0x1f   : > { %697 = vmatpush.bf16.msra.mxu0 %v1989_v3  ;;  %v1977_v10 = vor.u32 %v2315_v6, %v1976_v5  ;;  %v1981_v11 = vor.u32 %v2314_v8, %v1978_v9  ;;  %v1964_v12 = vld [vmem:[#allocation2 + $0x78] sm:$0xf]  ;;  %v2312_v13 = vld [vmem:[#allocation2 + $0x80] sm:$0xf0]  ;;  %v2311_v14 = vld [vmem:[#allocation2 + $0x7c] sm:$0xf] }
  0x20   : > { %710 = vmatpush.bf16.msra.mxu1 %v1993_v7  ;;  %v1966_v15 = vld [vmem:[#allocation2 + $0x84] sm:$0xf0]  ;;  %v1965_v16 = vor.u32 %v2312_v13, %v1964_v12  ;;  %v1952_v18 = vld [vmem:[#allocation2 + $0x60] sm:$0xf]  ;;  %v2309_v19 = vld [vmem:[#allocation2 + $0x68] sm:$0xf0] }
  0x21   : > { %v1969_v17 = vor.u32 %v2311_v14, %v1966_v15  ;;  %v2308_v20 = vld [vmem:[#allocation2 + $0x64] sm:$0xf]  ;;  %v1954_v21 = vld [vmem:[#allocation2 + $0x6c] sm:$0xf0]  ;;  %p516_p6 = scmp.lt.s32.totalorder %s2677_s17, 1  ;;  %v1953_v22 = vor.u32 %v2309_v19, %v1952_v18  ;;  %vm745_vm0 = vcmask 261120  }
  0x22   : > { %v1996_v23 = vld [vmem:[#allocation2 + $0xb0] sm:$0xf]  ;;  %v2319_v24 = vld [vmem:[#allocation2 + $0xb8] sm:$0xf0]  ;;  %v1984_v25 = vld [vmem:[#allocation2 + $0x98] sm:$0xf]  ;;  %v1957_v26 = vor.u32 %v2308_v20, %v1954_v21 }
  0x23   : > { %698 = vmatpush.bf16.msra.mxu0 %v1977_v10  ;;  %v1940_v27 = vld [vmem:[#allocation2 + $0x48] sm:$0xf]  ;;  %v2306_v28 = vld [vmem:[#allocation2 + $0x50] sm:$0xf0]  ;;  %v1997_v29 = vor.u32 %v2319_v24, %v1996_v23  ;;  %v2316_v30 = vld [vmem:[#allocation2 + $0xa0] sm:$0xf0] }
  0x24   : > { %711 = vmatpush.bf16.msra.mxu1 %v1981_v11  ;;  %v2305_v31 = vld [vmem:[#allocation2 + $0x4c] sm:$0xf]  ;;  %v1942_v32 = vld [vmem:[#allocation2 + $0x54] sm:$0xf0]  ;;  %s2904_s17 = smov (!%p516_p6, %s2677_s17), 1  ;;  %v1985_v33 = vor.u32 %v2316_v30, %v1984_v25  ;;  %v1941_v34 = vor.u32 %v2306_v28, %v1940_v27  ;;  %s2590_s25 = smov 64  }
  0x25   : > { %723 = vmatpush.bf16.msra.mxu2 %v1997_v29  ;;  %v1928_v35 = vld [vmem:[#allocation2 + $0x30] sm:$0xf]  ;;  %s522_s14 = scalar_lea.vmem %s2880_s3, %s2904_s17  ;;  %v1972_v36 = vld [vmem:[#allocation2 + $0x80] sm:$0xf]  ;;  %v2313_v37 = vld [vmem:[#allocation2 + $0x88] sm:$0xf0]  ;;  %v1945_v38 = vor.u32 %v2305_v31, %v1942_v32 }
  0x26   : > { %v2303_v39 = vld [vmem:[#allocation2 + $0x38] sm:$0xf0]  ;;  %v2302_v40 = vld [vmem:[#allocation2 + $0x34] sm:$0xf]  ;;  %v1930_v41 = vld [vmem:[#allocation2 + $0x3c] sm:$0xf0]  ;;  %v1973_v42 = vor.u32 %v2313_v37, %v1972_v36 }
  0x27   : > { %699 = vmatpush.bf16.msra.mxu0 %v1965_v16  ;;  %v1929_v43 = vor.u32 %v2303_v39, %v1928_v35  ;;  %v1960_v44 = vld [vmem:[#allocation2 + $0x68] sm:$0xf]  ;;  %v2310_v45 = vld [vmem:[#allocation2 + $0x70] sm:$0xf0]  ;;  %v1933_v46 = vor.u32 %v2302_v40, %v1930_v41  ;;  %v1916_v47 = vld [vmem:[#allocation2 + $0x18] sm:$0xf] }
  0x28   : > { %712 = vmatpush.bf16.msra.mxu1 %v1969_v17  ;;  %v2300_v48 = vld [vmem:[#allocation2 + $0x20] sm:$0xf0]  ;;  %v2299_v49 = vld [vmem:[#allocation2 + $0x1c] sm:$0xf]  ;;  %v1918_v50 = vld [vmem:[#allocation2 + $0x24] sm:$0xf0]  ;;  %v1961_v51 = vor.u32 %v2310_v45, %v1960_v44 }
  0x29   : > { %724 = vmatpush.bf16.msra.mxu2 %v1985_v33  ;;  %v1917_v52 = vor.u32 %v2300_v48, %v1916_v47  ;;  %v1948_v53 = vld [vmem:[#allocation2 + $0x50] sm:$0xf]  ;;  %v2307_v54 = vld [vmem:[#allocation2 + $0x58] sm:$0xf0]  ;;  %v1921_v55 = vor.u32 %v2299_v49, %v1918_v50  ;;  %v1904_v56 = vld [vmem:[#allocation2] sm:$0xf] }
  0x2a   : > { %v2297_v57 = vld [vmem:[#allocation2 + $0x8] sm:$0xf0]  ;;  %v2296_v58 = vld [vmem:[#allocation2 + $0x4] sm:$0xf]  ;;  %v1906_v59 = vld [vmem:[#allocation2 + $0xc] sm:$0xf0]  ;;  %v1949_v60 = vor.u32 %v2307_v54, %v1948_v53 }
  0x2b   : > { %700 = vmatpush.bf16.msra.mxu0 %v1953_v22  ;;  %s1900_s29 = sshll.u32 %s2904_s17, 2  ;;  %v1905_v61 = vor.u32 %v2297_v57, %v1904_v56  ;;  %v1936_v62 = vld [vmem:[#allocation2 + $0x38] sm:$0xf]  ;;  %v2304_v63 = vld [vmem:[#allocation2 + $0x40] sm:$0xf0]  ;;  %v1909_v0 = vor.u32 %v2296_v58, %v1906_v59  ;;  %s2591_s26 = smov 96  }
  0x2c   : > { %713 = vmatpush.bf16.msra.mxu1 %v1957_v26  ;;  %s519_s20 = scalar_lea.vmem %s2877_s0, %s1900_s29  ;;  %v1937_v1 = vor.u32 %v2304_v63, %v1936_v62  ;;  %v1924_v3 = vld [vmem:[#allocation2 + $0x20] sm:$0xf]  ;;  %v2301_v4 = vld [vmem:[#allocation2 + $0x28] sm:$0xf0]  ;;  %v1912_v6 = vld [vmem:[#allocation2 + $0x8] sm:$0xf] }
  0x2d   : > { %725 = vmatpush.bf16.msra.mxu2 %v1973_v42  ;;  %v2732_v2 = vld [vmem:[%s519_s20] sm:$0xf]  ;;  %v1925_v5 = vor.u32 %v2301_v4, %v1924_v3  ;;  %v2298_v7 = vld [vmem:[#allocation2 + $0x10] sm:$0xf0]  ;;  %s2592_s27 = smov 32   ;;  %vm781_vm1 = vcmask 1043456  }
  0x2e   : > { %v1913_v8 = vor.u32 %v2298_v7, %v1912_v6  ;;  %v561_v9 = vld [vmem:[%s2879_s2] sm:$0x7]  ;;  %vm765_vm2 = vcmask 64512   ;;  %vm984_vm3 = vcmask 523264   ;;  %vm986_vm4 = vcmask 785408   ;;  %s2901_s28 = sld [smem:[#allocation12_spill]] }
  0x2f   : > { %701 = vmatpush.bf16.msra.mxu0 %v1941_v34  ;;  %v563_v10 = vperm.slane %v561_v9, 0  ;;  %v564_v11 = vperm.slane %v561_v9, 1  ;;  %v565_v25 = vperm.slane %v561_v9, 2  ;;  %v2440_v34 = vld [vmem:[%s522_s14] ss:$0 sm:$0xff] }
  0x30   : > { %714 = vmatpush.bf16.msra.mxu1 %v1945_v38 }
  0x31   : > { %726 = vmatpush.bf16.msra.mxu2 %v1961_v51 }
  0x33   : > { %702 = vmatpush.bf16.msra.mxu0 %v1929_v43 }
  0x34   : > { %715 = vmatpush.bf16.msra.mxu1 %v1933_v46  ;;  %s526_s30 = scalar_lea.vmem %s2901_s28, %s1900_s29 }
  0x35   : > { %727 = vmatpush.bf16.msra.mxu2 %v1949_v60 }
  0x37   : > { %703 = vmatpush.bf16.msra.mxu0 %v1917_v52 }
  0x38   : > { %716 = vmatpush.bf16.msra.mxu1 %v1921_v55 }
  0x39   : > { %728 = vmatpush.bf16.msra.mxu2 %v1937_v1 }
  0x3b   : > { %704 = vmatpush.bf16.msra.mxu0 %v1905_v61 }
  0x3c   : > { %717 = vmatpush.bf16.msra.mxu1 %v1909_v0 }
  0x3d   : > { %729 = vmatpush.bf16.msra.mxu2 %v1925_v5 }
  0x3e   : > { %705 = vmatmul.bf16.vlgmr.msra.gmra.mxu0 %v2732_v2 }
  0x3f   : > { %718 = vmatmul.bf16.vlgmr.msra.gmra.mxu1 %v2732_v2 }
  0x41   : > { %730 = vmatpush.bf16.msra.mxu2 %v1913_v8 }
  0x44   : > { %731 = vmatmul.bf16.vlgmr.msra.gmra.mxu2 %v2732_v2 }
  0xbb   : > { %v706_v12 = vpop.f32.mrf.mxu0 }
  0xbc   : > { %v707_v13 = vadd.f32 %v706_v12, %v563_v10  ;;  %v719_v14 = vpop.f32.mrf.mxu1 }
  0xbd   : > { %v720_v15 = vadd.f32 %v719_v14, %v564_v11 }
  0xbf   : > { %v736_v16 = vpack.c.bf16 %v720_v15, %v707_v13 }
  0xc1   : > { %v743_v17 = vunpack.c.h.b16 %v736_v16  ;;  %v798_v22 = vunpack.c.l.b16 %v736_v16 }
  0xc3   : > { %v708_v18 = vpop.f32.mrf.mxu0  ;;  %v744_v19 = vpack.c.b16 %v743_v17, %v743_v17  ;;  %v799_v23 = vpack.c.b16 %v798_v22, %v798_v22 }
  0xc4   : > { %v721_v20 = vpop.f32.mrf.mxu1 }
  0xc5   : > { %861 = vrot.lane.b32.xlu2 %v744_v19, %s2590_s25  ;;  %802 = vrot.lane.b32.xlu1 %v744_v19, %s2591_s26  ;;  %v750_v21 = vsel %vm745_vm0, %v744_v19, 0 }
  0xc6   : > { %759 = vmatpush.bf16.xpose.msra.mxu3 %v750_v21 }
  0xc7   : > { %v732_v24 = vpop.f32.mrf.mxu2 }
  0xc8   : > { %v733_v26 = vadd.f32 %v732_v24, %v565_v25 }
  0xca   : > { %v737_v28 = vpack.c.bf16 %v733_v26, %v733_v26 }
  0xcc   : > { %v783_v29 = vsel %vm781_vm1, %v737_v28, 0  ;;  %v836_v4 = vunpack.c.l.b16 %v737_v28 }
  0xcd   : > { %917 = vrot.lane.b32.xlu2 %v744_v19, %s2592_s27  ;;  %800 = vrot.lane.b32.xlu1 %v799_v23, %s2591_s26 }
  0xce   : > { %1998 = vmatmul.msk.bf16.vlgmr.msra.gmra.mxu3 %vm745_vm0, %v736_v16  ;;  %v837_v5 = vpack.c.b16 %v836_v4, %v836_v4  ;;  %v2152_v4 = vld [vmem:[#allocation4 + $0xe0] sm:$0xf] }
  0xcf   : > { %v734_v27 = vpop.f32.mrf.mxu2  ;;  %792 = vmatpush.bf16.msrb.mxu3 %v783_v29 }
  0xd5   : > { %915 = vrot.lane.b32.xlu1 %v799_v23, %s2592_s27 }
 0x11f   : > { %v862_v30 = vpop.permute.xlu2 %861 }
 0x120   : > { %v867_v31 = vsel %vm745_vm0, %v862_v30, 0 }
 0x121   : > { %876 = vmatpush.bf16.xpose.msrb.mxu2 %v867_v31 }
 0x127   : > { %v918_v47 = vpop.permute.xlu2 %917 }
 0x128   : > { %v923_v49 = vsel %vm745_vm0, %v918_v47, 0  ;;  %v2325_v47 = vld [vmem:[%s2881_s4 + $0x28] sm:$0xff] }
 0x137   : > { %v803_v32 = vpop.permute.xlu1 %802 }
 0x138   : > { %v808_v33 = vsel %vm745_vm0, %v803_v32, 0 }
 0x139   : > { %817 = vmatpush.bf16.xpose.msra.mxu3 %v808_v33 }
 0x13f   : > { %v801_v51 = vpop.permute.xlu1 %800 }
 0x147   : > { %v916_v52 = vpop.permute.xlu1 %915 }
 0x151   : > { %v761_v35 = vpop.f32.mrf.mxu3 }
 0x152   : > { %v762_v36 = vadd.f32 %v2440_v34, %v761_v35 }
 0x154   : > { %v766_v37 = vsel %vm765_vm2, %v762_v36, -inf }
 0x155   : > { %767 = vmax.xlane.f32.xlu0 %v766_v37 }
 0x159   : > { %v763_v38 = vpop.f32.mrf.mxu3 }
 0x1c8   : > { %v768_v39 = vpop.xlane.xlu0 %767 }
 0x1c9   : > { %v769_v40 = vsub.f32 %v762_v36, %v768_v39 }
 0x1cb   : > { %v770_v41 = vmul.f32 1.442695, %v769_v40 }
 0x1cd   : > { %2447 = vpow2.f32 %v770_v41 }
 0x1d3   : > { %v2448_v42 = vpop.eup %2447 }
 0x1d4   : > { %v772_v43 = vsel %vm765_vm2, %v2448_v42, 0.0 }
 0x1d5   : > { %773 = vadd.xlane.f32.xlu0 %v772_v43 }
 0x1e9   : > { %859 = vrot.lane.b32.xlu0 %v799_v23, %s2590_s25 }
 0x248   : > { %v774_v44 = vpop.xlane.xlu0 %773 }
 0x249   : > { %2449 = vrcp.f32 %v774_v44 }
 0x24f   : > { %v2450_v45 = vpop.eup %2449 }
 0x250   : > { %v776_v46 = vmul.f32 %v2450_v45, %v2448_v42  ;;  %v2327_v45 = vld [vmem:[%s2881_s4 + $0x38] sm:$0xff] }
 0x251   : > { %1057 = vmatpush.bf16.msrb.mxu1 %v2327_v45 }
 0x252   : > { %v777_v48 = vpack.c.bf16 %v776_v46, %v776_v46  ;;  %v2326_v46 = vld [vmem:[%s2881_s4 + $0x30] sm:$0xff] }
 0x254   : > { %1999 = vmatmul.msk.bf16.vlgmr.msrb.gmra.mxu3 %vm765_vm2, %v777_v48  ;;  %v2324_v48 = vld [vmem:[%s2881_s4 + $0x20] sm:$0xff] }
 0x255   : > { %932 = vmatpush.bf16.xpose.msrb.mxu3 %v923_v49  ;;  %1058 = vmatpush.bf16.msrb.mxu1 %v2326_v46  ;;  %v2323_v49 = vld [vmem:[%s2881_s4 + $0x18] sm:$0xff]  ;;  %v2106_v46 = vld [vmem:[#allocation4 + $0x90] sm:$0xf0] }
 0x259   : > { %1059 = vmatpush.bf16.msrb.mxu1 %v2325_v47  ;;  %v2112_v47 = vld [vmem:[#allocation4 + $0x88] sm:$0xf] }
 0x25b   : > { %v860_v50 = vpop.permute.xlu0 %859 }
 0x25c   : > { %2002 = vmatmul.msk.bf16.vlgmr.msrb.gmra.mxu2 %vm745_vm0, %v860_v50  ;;  %v2322_v50 = vld [vmem:[%s2881_s4 + $0x10] sm:$0xff] }
 0x25d   : > { %1060 = vmatpush.bf16.msrb.mxu1 %v2324_v48  ;;  %v2347_v48 = vld [vmem:[#allocation4 + $0x94] sm:$0xf0] }
 0x261   : > { %1061 = vmatpush.bf16.msrb.mxu1 %v2323_v49 }
 0x264   : > { %2000 = vmatmul.msk.bf16.vlgmr.msra.gmra.mxu3 %vm745_vm0, %v801_v51  ;;  %v2321_v51 = vld [vmem:[%s2881_s4 + $0x8] sm:$0xff] }
 0x265   : > { %1062 = vmatpush.bf16.msrb.mxu1 %v2322_v50  ;;  %v2113_v50 = vor.u32 %v2347_v48, %v2112_v47  ;;  %v2442_v48 = vld [vmem:[%s2883_s6] ss:$0 sm:$0xff] }
 0x269   : > { %1063 = vmatpush.bf16.msrb.mxu1 %v2321_v51  ;;  %v2345_v51 = vld [vmem:[#allocation4 + $0x8c] sm:$0xf] }
 0x274   : > { %2004 = vmatmul.msk.bf16.vlgmr.msrb.gmra.mxu3 %vm745_vm0, %v916_v52  ;;  %v2320_v52 = vld [vmem:[%s2881_s4] sm:$0xff] }
 0x275   : > { %1064 = vmatpush.bf16.msrb.mxu1 %v2320_v52  ;;  %v2114_v52 = vld [vmem:[#allocation4 + $0x98] sm:$0xf0] }
 0x2d7   : > { %v2763_v53 = vpop.f32.mrf.mxu3 }
 0x2df   : > { %v796_v54 = vpop.f32.mrf.mxu3  ;;  %v878_v55 = vpop.f32.mrf.mxu2 }
 0x2e0   : > { %v879_v56 = vadd.f32 %v2440_v34, %v878_v55 }
 0x2e2   : > { %v882_v57 = vsel %vm765_vm2, %v879_v56, -inf }
 0x2e3   : > { %883 = vmax.xlane.f32.xlu1 %v882_v57 }
 0x2e7   : > { %v819_v58 = vpop.f32.mrf.mxu3  ;;  %v880_v59 = vpop.f32.mrf.mxu2 }
 0x2e8   : > { %v820_v60 = vadd.f32 %v2440_v34, %v819_v58 }
 0x2ea   : > { %v823_v61 = vsel %vm765_vm2, %v820_v60, -inf }
 0x2eb   : > { %824 = vmax.xlane.f32.xlu2 %v823_v61  ;;  %v2441_v61 = vld [vmem:[%s2882_s5] ss:$0 sm:$0xff] }
 0x2ef   : > { %v821_v62 = vpop.f32.mrf.mxu3 }
 0x2f0   : > { %v1070_v62 = vunpack.c.l.bf16 %v2732_v2 }
 0x2f7   : > { %v934_v63 = vpop.f32.mrf.mxu3 }
 0x2f8   : > { %v935_v0 = vadd.f32 %v2440_v34, %v934_v63 }
 0x2fa   : > { %v938_v1 = vsel %vm765_vm2, %v935_v0, -inf }
 0x2fb   : > { %939 = vmax.xlane.f32.xlu0 %v938_v1 }
 0x2ff   : > { %v936_v3 = vpop.f32.mrf.mxu3 }
 0x30f   : > { %894 = vrot.lane.b32.xlu0 %v837_v5, %s2590_s25 }
 0x356   : > { %v884_v6 = vpop.xlane.xlu1 %883 }
 0x357   : > { %v885_v7 = vsub.f32 %v879_v56, %v884_v6  ;;  %v2356_v6 = vld [vmem:[#allocation4 + $0xe4] sm:$0xf] }
 0x359   : > { %v886_v8 = vmul.f32 1.442695, %v885_v7  ;;  %v2154_v7 = vld [vmem:[#allocation4 + $0xf0] sm:$0xf0] }
 0x35b   : > { %2451 = vpow2.f32 %v886_v8  ;;  %v2160_v8 = vld [vmem:[#allocation4 + $0xe8] sm:$0xf] }
 0x35e   : > { %v825_v9 = vpop.xlane.xlu2 %824 }
 0x35f   : > { %v826_v10 = vsub.f32 %v820_v60, %v825_v9  ;;  %v2359_v9 = vld [vmem:[#allocation4 + $0xf4] sm:$0xf0] }
 0x361   : > { %v2452_v11 = vpop.eup %2451  ;;  %v827_v12 = vmul.f32 1.442695, %v826_v10  ;;  %v2157_v10 = vor.u32 %v2356_v6, %v2154_v7  ;;  %v2336_v6 = vld [vmem:[#allocation4 + $0x44] sm:$0xf]  ;;  %v2074_v7 = vld [vmem:[#allocation4 + $0x50] sm:$0xf0] }
 0x362   : > { %v888_v13 = vsel %vm765_vm2, %v2452_v11, 0.0 }
 0x363   : > { %2453 = vpow2.f32 %v827_v12  ;;  %889 = vadd.xlane.f32.xlu1 %v888_v13  ;;  %v2357_v12 = vld [vmem:[#allocation4 + $0xec] sm:$0xf]  ;;  %v2162_v13 = vld [vmem:[#allocation4 + $0xf8] sm:$0xf0]  ;;  %1318 = vmatpush.bf16.msra.mxu3 %v2157_v10  ;;  %v2077_v10 = vor.u32 %v2336_v6, %v2074_v7 }
 0x364   : > { %v2389_v6 = vld [vmem:[#allocation6 + $0xe8] sm:$0xff] }
 0x369   : > { %v2454_v14 = vpop.eup %2453 }
 0x36a   : > { %v829_v15 = vsel %vm765_vm2, %v2454_v14, 0.0 }
 0x36b   : > { %830 = vadd.xlane.f32.xlu2 %v829_v15 }
 0x36e   : > { %v940_v16 = vpop.xlane.xlu0 %939 }
 0x36f   : > { %v941_v17 = vsub.f32 %v935_v0, %v940_v16 }
 0x371   : > { %v942_v18 = vmul.f32 1.442695, %v941_v17 }
 0x373   : > { %2455 = vpow2.f32 %v942_v18  ;;  %v2136_v18 = vld [vmem:[#allocation4 + $0xc0] sm:$0xf] }
 0x379   : > { %v2456_v19 = vpop.eup %2455 }
 0x37a   : > { %v944_v20 = vsel %vm765_vm2, %v2456_v19, 0.0 }
 0x37b   : > { %945 = vadd.xlane.f32.xlu1 %v944_v20  ;;  %v2352_v20 = vld [vmem:[#allocation4 + $0xc4] sm:$0xf] }
 0x381   : > { %v895_v21 = vpop.permute.xlu0 %894 }
 0x382   : > { %v900_v22 = vsel %vm781_vm1, %v895_v21, 0 }
 0x383   : > { %838 = vrot.lane.b32.xlu2 %v837_v5, %s2591_s26  ;;  %909 = vmatpush.bf16.msra.mxu2 %v900_v22  ;;  %v2138_v22 = vld [vmem:[#allocation4 + $0xd0] sm:$0xf0] }
 0x394   : > { %950 = vrot.lane.b32.xlu1 %v837_v5, %s2592_s27  ;;  %v2358_v5 = vld [vmem:[#allocation4 + $0xec] sm:$0xf0] }
 0x3d6   : > { %v890_v23 = vpop.xlane.xlu1 %889 }
 0x3d7   : > { %2457 = vrcp.f32 %v890_v23  ;;  %v2144_v23 = vld [vmem:[#allocation4 + $0xc8] sm:$0xf] }
 0x3dd   : > { %v2458_v24 = vpop.eup %2457 }
 0x3de   : > { %v892_v25 = vmul.f32 %v2458_v24, %v2452_v11  ;;  %v831_v26 = vpop.xlane.xlu2 %830  ;;  %v2161_v11 = vor.u32 %v2359_v9, %v2160_v8  ;;  %v2355_v24 = vld [vmem:[#allocation4 + $0xd4] sm:$0xf0]  ;;  %v2080_v8 = vld [vmem:[#allocation4 + $0x48] sm:$0xf] }
 0x3df   : > { %2459 = vrcp.f32 %v831_v26  ;;  %v2145_v26 = vor.u32 %v2355_v24, %v2144_v23  ;;  %v2339_v9 = vld [vmem:[#allocation4 + $0x54] sm:$0xf0]  ;;  %v2333_v24 = vld [vmem:[#allocation4 + $0x2c] sm:$0xf] }
 0x3e0   : > { %v893_v27 = vpack.c.bf16 %v892_v25, %v892_v25  ;;  %v2141_v25 = vor.u32 %v2352_v20, %v2138_v22  ;;  %v2064_v20 = vld [vmem:[#allocation4 + $0x28] sm:$0xf] }
 0x3e2   : > { %2003 = vmatmul.msk.bf16.vlgmr.msra.gmra.mxu2 %vm765_vm2, %v893_v27  ;;  %v2353_v27 = vld [vmem:[#allocation4 + $0xcc] sm:$0xf]  ;;  %1319 = vmatpush.bf16.msra.mxu3 %v2141_v25  ;;  %v2066_v25 = vld [vmem:[#allocation4 + $0x38] sm:$0xf0] }
 0x3e5   : > { %v2460_v28 = vpop.eup %2459 }
 0x3e6   : > { %v833_v29 = vmul.f32 %v2460_v28, %v2454_v14  ;;  %v839_v30 = vpop.permute.xlu2 %838  ;;  %v2165_v14 = vor.u32 %v2357_v12, %v2162_v13  ;;  %v2146_v28 = vld [vmem:[#allocation4 + $0xd8] sm:$0xf0]  ;;  %v2337_v12 = vld [vmem:[#allocation4 + $0x4c] sm:$0xf] }
 0x3e7   : > { %v844_v31 = vsel %vm781_vm1, %v839_v30, 0  ;;  %v2120_v30 = vld [vmem:[#allocation4 + $0xa0] sm:$0xf]  ;;  %v2082_v13 = vld [vmem:[#allocation4 + $0x58] sm:$0xf0] }
 0x3e8   : > { %853 = vmatpush.bf16.msrb.mxu0 %v844_v31  ;;  %v834_v32 = vpack.c.bf16 %v833_v29, %v833_v29  ;;  %1344 = vmatpush.bf16.msra.mxu1 %v2165_v14  ;;  %v2149_v29 = vor.u32 %v2353_v27, %v2146_v28  ;;  %v2350_v31 = vld [vmem:[#allocation4 + $0xac] sm:$0xf0]  ;;  %v2085_v14 = vor.u32 %v2337_v12, %v2082_v13  ;;  %v2040_v27 = vld [vmem:[#allocation4] sm:$0xf] }
 0x3e9   : > { %v2330_v28 = vld [vmem:[#allocation4 + $0xc] sm:$0xf0] }
 0x3eb   : > { %2001 = vmatmul.msk.bf16.vlgmr.msrb.gmra.mxu0 %vm765_vm2, %v834_v32  ;;  %v2348_v32 = vld [vmem:[#allocation4 + $0xa4] sm:$0xf] }
 0x3ec   : > { %1345 = vmatpush.bf16.msra.mxu1 %v2149_v29  ;;  %v2328_v29 = vld [vmem:[#allocation4 + $0x4] sm:$0xf] }
 0x3ee   : > { %v946_v33 = vpop.xlane.xlu1 %945 }
 0x3ef   : > { %2461 = vrcp.f32 %v946_v33  ;;  %v2121_v33 = vor.u32 %v2350_v31, %v2120_v30  ;;  %v2041_v30 = vor.u32 %v2330_v28, %v2040_v27  ;;  %v2042_v31 = vld [vmem:[#allocation4 + $0x10] sm:$0xf0] }
 0x3f5   : > { %v2462_v34 = vpop.eup %2461 }
 0x3f6   : > { %v948_v35 = vmul.f32 %v2462_v34, %v2456_v19  ;;  %v2354_v19 = vld [vmem:[#allocation4 + $0xcc] sm:$0xf0]  ;;  %v2122_v34 = vld [vmem:[#allocation4 + $0xb0] sm:$0xf0] }
 0x3f7   : > { %v2137_v21 = vor.u32 %v2354_v19, %v2136_v18  ;;  %v2058_v19 = vld [vmem:[#allocation4 + $0x30] sm:$0xf0] }
 0x3f8   : > { %v949_v38 = vpack.c.bf16 %v948_v35, %v948_v35  ;;  %v2128_v35 = vld [vmem:[#allocation4 + $0xa8] sm:$0xf] }
 0x406   : > { %v951_v36 = vpop.permute.xlu1 %950 }
 0x407   : > { %v956_v37 = vsel %vm781_vm1, %v951_v36, 0  ;;  %v2351_v36 = vld [vmem:[#allocation4 + $0xb4] sm:$0xf0] }
 0x408   : > { %965 = vmatpush.bf16.msra.mxu0 %v956_v37  ;;  %v2125_v37 = vor.u32 %v2348_v32, %v2122_v34  ;;  %v2048_v32 = vld [vmem:[#allocation4 + $0x8] sm:$0xf]  ;;  %v2045_v34 = vor.u32 %v2328_v29, %v2042_v31  ;;  %v2364_v29 = vld [vmem:[#allocation6 + $0x20] sm:$0xff] }
 0x40a   : > { %1320 = vmatpush.bf16.msra.mxu3 %v2125_v37  ;;  %v2050_v37 = vld [vmem:[#allocation4 + $0x18] sm:$0xf0] }
 0x40b   : > { %2005 = vmatmul.msk.bf16.vlgmr.msra.gmra.mxu0 %vm765_vm2, %v949_v38  ;;  %v2129_v38 = vor.u32 %v2351_v36, %v2128_v35  ;;  %v2329_v36 = vld [vmem:[#allocation4 + $0xc] sm:$0xf] }
 0x40c   : > { %1331 = vmatpush.bf16.msrb.mxu0 %v2161_v11  ;;  %v2081_v11 = vor.u32 %v2339_v9, %v2080_v8  ;;  %v2366_v9 = vld [vmem:[#allocation6 + $0x30] sm:$0xff] }
 0x410   : > { %1332 = vmatpush.bf16.msrb.mxu0 %v2145_v26  ;;  %v2069_v26 = vor.u32 %v2333_v24, %v2066_v25  ;;  %v2387_v24 = vld [vmem:[#allocation6 + $0xd8] sm:$0xff] }
 0x414   : > { %1333 = vmatpush.bf16.msrb.mxu0 %v2129_v38  ;;  %v2053_v38 = vor.u32 %v2329_v36, %v2050_v37  ;;  %v2386_v36 = vld [vmem:[#allocation6 + $0xd0] sm:$0xff] }
 0x418   : > { %1334 = vmatpush.bf16.msrb.mxu0 %v2113_v50 }
 0x465   : > { %v911_v39 = vpop.f32.mrf.mxu2 }
 0x468   : > { %v855_v40 = vpop.f32.mrf.mxu0 }
 0x469   : > { %972 = vrot.lane.b32.xlu2 %v855_v40, %s2592_s27  ;;  %v2130_v40 = vld [vmem:[#allocation4 + $0xb8] sm:$0xf0] }
 0x46d   : > { %v913_v41 = vpop.f32.mrf.mxu2 }
 0x470   : > { %v857_v42 = vpop.f32.mrf.mxu0 }
 0x471   : > { %976 = vrot.lane.b32.xlu2 %v911_v39, %s2590_s25  ;;  %v2349_v39 = vld [vmem:[#allocation4 + $0xac] sm:$0xf]  ;;  %v2104_v42 = vld [vmem:[#allocation4 + $0x80] sm:$0xf] }
 0x472   : > { %v2133_v41 = vor.u32 %v2349_v39, %v2130_v40 }
 0x474   : > { %1346 = vmatpush.bf16.msra.mxu1 %v2133_v41 }
 0x488   : > { %v967_v43 = vpop.f32.mrf.mxu0 }
 0x489   : > { %980 = vrot.lane.b32.xlu0 %v967_v43, %s2591_s26  ;;  %v2346_v43 = vld [vmem:[#allocation4 + $0x8c] sm:$0xf0] }
 0x48a   : > { %v2105_v45 = vor.u32 %v2346_v43, %v2104_v42 }
 0x490   : > { %v969_v44 = vpop.f32.mrf.mxu0 }
 0x491   : > { %v2344_v44 = vld [vmem:[#allocation4 + $0x84] sm:$0xf] }
 0x492   : > { %v2109_v49 = vor.u32 %v2344_v44, %v2106_v46 }
 0x494   : > { %1321 = vmatpush.bf16.msra.mxu3 %v2109_v49 }
 0x4c3   : > { %v973_v54 = vpop.permute.xlu2 %972 }
 0x4c4   : > { %v983_v56 = vsel %vm745_vm0, %v2763_v53, %v973_v54  ;;  %v2153_v53 = vor.u32 %v2358_v5, %v2152_v4  ;;  %v2117_v54 = vor.u32 %v2345_v51, %v2114_v52  ;;  %v2072_v4 = vld [vmem:[#allocation4 + $0x40] sm:$0xf]  ;;  %v2338_v5 = vld [vmem:[#allocation4 + $0x4c] sm:$0xf0] }
 0x4c5   : > { %v2443_v51 = vld [vmem:[%s2884_s7] ss:$0 sm:$0xff] }
 0x4c6   : > { %1305 = vmatpush.bf16.msrb.mxu2 %v2153_v53  ;;  %1347 = vmatpush.bf16.msra.mxu1 %v2117_v54  ;;  %v2073_v53 = vor.u32 %v2338_v5, %v2072_v4  ;;  %v2381_v5 = vld [vmem:[#allocation6 + $0xa8] sm:$0xff] }
 0x4ca   : > { %1306 = vmatpush.bf16.msrb.mxu2 %v2137_v21  ;;  %v2335_v21 = vld [vmem:[#allocation4 + $0x34] sm:$0xf0] }
 0x4cb   : > { %v977_v55 = vpop.permute.xlu2 %976  ;;  %v2065_v23 = vor.u32 %v2335_v21, %v2064_v20  ;;  %v2373_v20 = vld [vmem:[#allocation6 + $0x68] sm:$0xff] }
 0x4cc   : > { %v985_v57 = vsel %vm984_vm3, %v983_v56, %v977_v55  ;;  %v2088_v55 = vld [vmem:[#allocation4 + $0x60] sm:$0xf]  ;;  %v2342_v56 = vld [vmem:[#allocation4 + $0x6c] sm:$0xf0] }
 0x4ce   : > { %1307 = vmatpush.bf16.msrb.mxu2 %v2121_v33  ;;  %v2331_v33 = vld [vmem:[#allocation4 + $0x14] sm:$0xf0] }
 0x4cf   : > { %v2049_v35 = vor.u32 %v2331_v33, %v2048_v32 }
 0x4d2   : > { %1308 = vmatpush.bf16.msrb.mxu2 %v2105_v45 }
 0x4fb   : > { %v981_v58 = vpop.permute.xlu0 %980 }
 0x4fc   : > { %v987_v59 = vsel %vm986_vm4, %v985_v57, %v981_v58  ;;  %v2340_v57 = vld [vmem:[#allocation4 + $0x64] sm:$0xf]  ;;  %v2089_v58 = vor.u32 %v2342_v56, %v2088_v55  ;;  %v2383_v56 = vld [vmem:[#allocation6 + $0xb8] sm:$0xff] }
 0x4fd   : > { %v988_v60 = vpack.c.bf16 %v987_v59, %v987_v59  ;;  %v2090_v59 = vld [vmem:[#allocation4 + $0x70] sm:$0xf0] }
 0x4fe   : > { %1309 = vmatpush.bf16.msrb.mxu2 %v2089_v58 }
 0x4ff   : > { %1065 = vmatmul.bf16.vlgmr.msrb.gmra.mxu1 %v988_v60  ;;  %v2096_v60 = vld [vmem:[#allocation4 + $0x68] sm:$0xf] }
 0x502   : > { %1310 = vmatpush.bf16.msrb.mxu2 %v2073_v53 }
 0x57c   : > { %v1066_v63 = vpop.f32.mrf.mxu1 }
 0x57d   : > { %v1067_v0 = vadd.f32 %v2441_v61, %v1066_v63  ;;  %v2343_v61 = vld [vmem:[#allocation4 + $0x74] sm:$0xf0] }
 0x57e   : > { %v2097_v63 = vor.u32 %v2343_v61, %v2096_v60  ;;  %v2382_v60 = vld [vmem:[#allocation6 + $0xb0] sm:$0xff] }
 0x57f   : > { %v1071_v1 = vadd.f32 %v1070_v62, %v1067_v0  ;;  %v2093_v62 = vor.u32 %v2340_v57, %v2090_v59  ;;  %v2341_v0 = vld [vmem:[#allocation4 + $0x6c] sm:$0xf]  ;;  %v2391_v57 = vld [vmem:[#allocation6 + $0xf8] sm:$0xff]  ;;  %v2390_v61 = vld [vmem:[#allocation6 + $0xf0] sm:$0xff] }
 0x580   : > { %1335 = vmatpush.bf16.msrb.mxu0 %v2097_v63  ;;  %v2375_v63 = vld [vmem:[#allocation6 + $0x78] sm:$0xff] }
 0x581   : > { %1074 = vadd.xlane.f32.xlu2 %v1071_v1  ;;  %1322 = vmatpush.bf16.msra.mxu3 %v2093_v62  ;;  %v2367_v62 = vld [vmem:[#allocation6 + $0x38] sm:$0xff] }
 0x584   : > { %v1068_v3 = vpop.f32.mrf.mxu1  ;;  %1336 = vmatpush.bf16.msrb.mxu0 %v2081_v11 }
 0x585   : > { %1323 = vmatpush.bf16.msra.mxu3 %v2077_v10  ;;  %v2374_v10 = vld [vmem:[#allocation6 + $0x70] sm:$0xff] }
 0x588   : > { %1337 = vmatpush.bf16.msrb.mxu0 %v2065_v23  ;;  %v2379_v23 = vld [vmem:[#allocation6 + $0x98] sm:$0xff] }
 0x58c   : > { %1338 = vmatpush.bf16.msrb.mxu0 %v2049_v35  ;;  %v2378_v35 = vld [vmem:[#allocation6 + $0x90] sm:$0xff] }
 0x590   : > { %1737 = vmatpush.bf16.msra.mxu0 %v2383_v56  ;;  %v2370_v56 = vld [vmem:[#allocation6 + $0x50] sm:$0xff] }
 0x594   : > { %1738 = vmatpush.bf16.msra.mxu0 %v2382_v60  ;;  %v2376_v60 = vld [vmem:[#allocation6 + $0x80] sm:$0xff] }
 0x598   : > { %1739 = vmatpush.bf16.msra.mxu0 %v2381_v5 }
 0x5f4   : > { %v1075_v2 = vpop.xlane.xlu2 %1074 }
 0x5f5   : > { %v1076_v15 = vmul.f32 0.0078125, %v1075_v2  ;;  %v2056_v2 = vld [vmem:[#allocation4 + $0x20] sm:$0xf] }
 0x5f7   : > { %v2813_v16 = vsub.f32 %v1071_v1, %v1076_v15  ;;  %v2098_v1 = vld [vmem:[#allocation4 + $0x78] sm:$0xf0]  ;;  %v2334_v15 = vld [vmem:[#allocation4 + $0x2c] sm:$0xf0] }
 0x5f8   : > { %v2101_v3 = vor.u32 %v2341_v0, %v2098_v1  ;;  %v2057_v18 = vor.u32 %v2334_v15, %v2056_v2  ;;  %v2380_v2 = vld [vmem:[#allocation6 + $0xa0] sm:$0xff] }
 0x5f9   : > { %v1078_v17 = vmul.f32 %v2813_v16, %v2813_v16  ;;  %v2388_v15 = vld [vmem:[#allocation6 + $0xe0] sm:$0xff]  ;;  %1740 = vmatpush.bf16.msra.mxu0 %v2380_v2 }
 0x5fa   : > { %1348 = vmatpush.bf16.msra.mxu1 %v2101_v3  ;;  %1311 = vmatpush.bf16.msrb.mxu2 %v2057_v18  ;;  %v2368_v2 = vld [vmem:[#allocation6 + $0x40] sm:$0xff] }
 0x5fb   : > { %1079 = vadd.xlane.f32.xlu0 %v1078_v17  ;;  %v2332_v17 = vld [vmem:[#allocation4 + $0x24] sm:$0xf] }
 0x5fc   : > { %v2061_v22 = vor.u32 %v2332_v17, %v2058_v19  ;;  %v2365_v19 = vld [vmem:[#allocation6 + $0x28] sm:$0xff] }
 0x5fd   : > { %1741 = vmatpush.bf16.msra.mxu0 %v2379_v23 }
 0x5fe   : > { %1349 = vmatpush.bf16.msra.mxu1 %v2085_v14  ;;  %1324 = vmatpush.bf16.msra.mxu3 %v2061_v22 }
 0x5ff   : > { %1312 = vmatpush.bf16.msrb.mxu2 %v2041_v30  ;;  %v2372_v30 = vld [vmem:[#allocation6 + $0x60] sm:$0xff] }
 0x601   : > { %1742 = vmatpush.bf16.msra.mxu0 %v2378_v35 }
 0x602   : > { %1350 = vmatpush.bf16.msra.mxu1 %v2069_v26  ;;  %1325 = vmatpush.bf16.msra.mxu3 %v2045_v34 }
 0x603   : > { %1711 = vmatpush.bf16.msra.mxu2 %v2367_v62 }
 0x606   : > { %1351 = vmatpush.bf16.msra.mxu1 %v2053_v38  ;;  %1724 = vmatpush.bf16.msrb.mxu3 %v2375_v63 }
 0x607   : > { %1712 = vmatpush.bf16.msra.mxu2 %v2366_v9 }
 0x60a   : > { %1750 = vmatpush.bf16.msrb.mxu1 %v2391_v57  ;;  %1725 = vmatpush.bf16.msrb.mxu3 %v2374_v10 }
 0x60b   : > { %1713 = vmatpush.bf16.msra.mxu2 %v2365_v19 }
 0x60e   : > { %1751 = vmatpush.bf16.msrb.mxu1 %v2390_v61  ;;  %1726 = vmatpush.bf16.msrb.mxu3 %v2373_v20  ;;  %v2384_v61 = vld [vmem:[#allocation6 + $0xc0] sm:$0xff] }
 0x60f   : > { %1714 = vmatpush.bf16.msra.mxu2 %v2364_v29 }
 0x612   : > { %1752 = vmatpush.bf16.msrb.mxu1 %v2389_v6  ;;  %1727 = vmatpush.bf16.msrb.mxu3 %v2372_v30 }
 0x616   : > { %1753 = vmatpush.bf16.msrb.mxu1 %v2388_v15 }
 0x61a   : > { %1754 = vmatpush.bf16.msrb.mxu1 %v2387_v24 }
 0x61e   : > { %1755 = vmatpush.bf16.msrb.mxu1 %v2386_v36 }
 0x66e   : > { %v1080_v39 = vpop.xlane.xlu0 %1079 }
 0x66f   : > { %v1081_v40 = vmul.f32 0.0078125, %v1080_v39 }
 0x671   : > { %v1082_v41 = vadd.f32 1e-12, %v1081_v40 }
 0x673   : > { %2463 = vrsqrt.f32 %v1082_v41  ;;  %vm1089_vm6 = vweird.f32 %v1082_v41 }
 0x679   : > { %v2464_v42 = vpop.eup %2463 }
 0x67a   : > { %v1084_v43 = vmul.f32 %v2464_v42, %v1082_v41  ;;  %vm1090_vm5 = vweird.f32 %v2464_v42 }
 0x67b   : > { %vm1091_vm7 = vmor %vm1089_vm6, %vm1090_vm5 }
 0x67c   : > { %v1085_v44 = vmul.f32 %v2464_v42, %v1084_v43  ;;  %v2363_v43 = vld [vmem:[#allocation6 + $0x18] sm:$0xff] }
 0x67d   : > { %1715 = vmatpush.bf16.msra.mxu2 %v2363_v43 }
 0x67e   : > { %v1086_v45 = vmul.f32 0.5, %v1085_v44  ;;  %v2371_v44 = vld [vmem:[#allocation6 + $0x58] sm:$0xff] }
 0x67f   : > { %1728 = vmatpush.bf16.msrb.mxu3 %v2371_v44 }
 0x680   : > { %v1087_v46 = vsub.f32 1.5, %v1086_v45 }
 0x682   : > { %v1088_v47 = vmul.f32 %v2464_v42, %v1087_v46 }
 0x683   : > { %1729 = vmatpush.bf16.msrb.mxu3 %v2370_v56 }
 0x684   : > { %v1092_v49 = vsel %vm1091_vm7, %v2464_v42, %v1088_v47  ;;  %v2377_v47 = vld [vmem:[#allocation6 + $0x88] sm:$0xff] }
 0x685   : > { %v1093_v50 = vmul.f32 %v1092_v49, %v2813_v16  ;;  %v1135_v16 = vld [vmem:[%s2886_s9] sm:$0xf]  ;;  %1743 = vmatpush.bf16.msra.mxu0 %v2377_v47 }
 0x686   : > { %v1139_v58 = vperm.slane %v1135_v16, 2  ;;  %v1140_v59 = vperm.slane %v1135_v16, 3  ;;  %v1137_v53 = vperm.slane %v1135_v16, 0  ;;  %v1138_v7 = vperm.slane %v1135_v16, 1 }
 0x687   : > { %v1097_v52 = vmul.f32 %v2442_v48, %v1093_v50  ;;  %v2385_v48 = vld [vmem:[#allocation6 + $0xc8] sm:$0xff] }
 0x688   : > { %1756 = vmatpush.bf16.msrb.mxu1 %v2385_v48 }
 0x689   : > { %v2824_v54 = vadd.f32 %v2443_v51, %v1097_v52  ;;  %1744 = vmatpush.bf16.msra.mxu0 %v2376_v60 }
 0x68b   : > { %v1102_v55 = vpack.c.bf16 %v2824_v54, %v2824_v54 }
 0x68c   : > { %1757 = vmatpush.bf16.msrb.mxu1 %v2384_v61 }
 0x68d   : > { %1313 = vmatmul.bf16.vlgmr.msrb.gmra.mxu2 %v1102_v55  ;;  %1326 = vmatmul.bf16.vlgmr.msra.gmra.mxu3 %v1102_v55 }
 0x68e   : > { %1339 = vmatmul.bf16.vlgmr.msrb.gmra.mxu0 %v1102_v55  ;;  %1352 = vmatmul.bf16.vlgmr.msra.gmra.mxu1 %v1102_v55  ;;  %v2362_v55 = vld [vmem:[#allocation6 + $0x10] sm:$0xff] }
 0x68f   : > { %1716 = vmatpush.bf16.msra.mxu2 %v2362_v55 }
 0x70b   : > { %v1340_v0 = vpop.f32.mrf.mxu0  ;;  %v1353_v1 = vpop.f32.mrf.mxu1 }
 0x70c   : > { %v1341_v3 = vadd.f32 %v1340_v0, %v1139_v58  ;;  %v1354_v4 = vadd.f32 %v1353_v1, %v1140_v59  ;;  %v2361_v0 = vld [vmem:[#allocation6 + $0x8] sm:$0xff] }
 0x70d   : > { %v2369_v1 = vld [vmem:[#allocation6 + $0x48] sm:$0xff]  ;;  %1717 = vmatpush.bf16.msra.mxu2 %v2361_v0 }
 0x70e   : > { %v1358_v8 = vpack.c.bf16 %v1354_v4, %v1341_v3  ;;  %1730 = vmatpush.bf16.msrb.mxu3 %v2369_v1 }
 0x710   : > { %v2831_v11 = vunpack.c.l.bf16 %v1358_v8  ;;  %v2833_v12 = vunpack.c.h.bf16 %v1358_v8  ;;  %v1314_v13 = vpop.f32.mrf.mxu2  ;;  %v1327_v14 = vpop.f32.mrf.mxu3 }
 0x711   : > { %v1315_v17 = vadd.f32 %v1314_v13, %v1137_v53  ;;  %v1328_v18 = vadd.f32 %v1327_v14, %v1138_v7  ;;  %v2360_v14 = vld [vmem:[#allocation6] sm:$0xff] }
 0x712   : > { %v1371_v21 = vmul.f32 0.044677734, %v2831_v11  ;;  %v1372_v22 = vmul.f32 0.044677734, %v2833_v12  ;;  %1718 = vmatpush.bf16.msra.mxu2 %v2360_v14  ;;  %1731 = vmatpush.bf16.msrb.mxu3 %v2368_v2  ;;  %v2444_v14 = vld [vmem:[%s2888_s11] ss:$0 sm:$0xff] }
 0x713   : > { %v1357_v25 = vpack.c.bf16 %v1328_v18, %v1315_v17  ;;  %v1342_v26 = vpop.f32.mrf.mxu0  ;;  %v1355_v27 = vpop.f32.mrf.mxu1 }
 0x714   : > { %v1374_v28 = vpack.c.bf16 %v1372_v22, %v1371_v21 }
 0x715   : > { %v2837_v31 = vunpack.c.l.bf16 %v1357_v25  ;;  %v2839_v32 = vunpack.c.h.bf16 %v1357_v25 }
 0x716   : > { %v1377_v33 = vunpack.c.l.bf16 %v1374_v28  ;;  %v1378_v34 = vunpack.c.h.bf16 %v1374_v28 }
 0x717   : > { %v1369_v37 = vmul.f32 0.044677734, %v2837_v31  ;;  %v1370_v38 = vmul.f32 0.044677734, %v2839_v32 }
 0x718   : > { %v1381_v39 = vmul.f32 %v1377_v33, %v2831_v11  ;;  %v1382_v40 = vmul.f32 %v1378_v34, %v2833_v12  ;;  %v1316_v41 = vpop.f32.mrf.mxu2  ;;  %v1329_v42 = vpop.f32.mrf.mxu3 }
 0x719   : > { %v1373_v45 = vpack.c.bf16 %v1370_v38, %v1369_v37 }
 0x71a   : > { %v1384_v46 = vpack.c.bf16 %v1382_v40, %v1381_v39  ;;  %v1365_v39 = vmul.f32 0.5, %v2831_v11  ;;  %v1366_v40 = vmul.f32 0.5, %v2833_v12 }
 0x71b   : > { %v1375_v49 = vunpack.c.l.bf16 %v1373_v45  ;;  %v1376_v50 = vunpack.c.h.bf16 %v1373_v45 }
 0x71c   : > { %v1387_v51 = vunpack.c.l.bf16 %v1384_v46  ;;  %v1388_v52 = vunpack.c.h.bf16 %v1384_v46  ;;  %v1368_v46 = vpack.c.bf16 %v1366_v40, %v1365_v39  ;;  %v2446_v40 = vld [vmem:[%s2890_s13] ss:$0 sm:$0xff] }
 0x71d   : > { %v1379_v57 = vmul.f32 %v1375_v49, %v2837_v31  ;;  %v1380_v16 = vmul.f32 %v1376_v50, %v2839_v32  ;;  %v1363_v49 = vmul.f32 0.5, %v2837_v31  ;;  %v1364_v50 = vmul.f32 0.5, %v2839_v32 }
 0x71e   : > { %v1391_v58 = vmul.f32 %v1387_v51, %v2831_v11  ;;  %v1392_v59 = vmul.f32 %v1388_v52, %v2833_v12 }
 0x71f   : > { %v1383_v62 = vpack.c.bf16 %v1380_v16, %v1379_v57  ;;  %v1437_v57 = vunpack.c.l.bf16 %v1368_v46  ;;  %v1438_v16 = vunpack.c.h.bf16 %v1368_v46 }
 0x720   : > { %v1394_v63 = vpack.c.bf16 %v1392_v59, %v1391_v58  ;;  %v1367_v58 = vpack.c.bf16 %v1364_v50, %v1363_v49 }
 0x721   : > { %v1385_v3 = vunpack.c.l.bf16 %v1383_v62  ;;  %v1386_v4 = vunpack.c.h.bf16 %v1383_v62 }
 0x722   : > { %v1397_v5 = vunpack.c.l.bf16 %v1394_v63  ;;  %v1398_v6 = vunpack.c.h.bf16 %v1394_v63 }
 0x723   : > { %v1389_v53 = vmul.f32 %v1385_v3, %v2837_v31  ;;  %v1390_v7 = vmul.f32 %v1386_v4, %v2839_v32  ;;  %v1435_v3 = vunpack.c.l.bf16 %v1367_v58  ;;  %v1436_v4 = vunpack.c.h.bf16 %v1367_v58 }
 0x724   : > { %v1401_v8 = vadd.f32 %v1397_v5, %v2831_v11  ;;  %v1402_v9 = vadd.f32 %v1398_v6, %v2833_v12 }
 0x725   : > { %v1393_v10 = vpack.c.bf16 %v1390_v7, %v1389_v53 }
 0x726   : > { %v1404_v13 = vpack.c.bf16 %v1402_v9, %v1401_v8 }
 0x727   : > { %v1395_v15 = vunpack.c.l.bf16 %v1393_v10  ;;  %v1396_v17 = vunpack.c.h.bf16 %v1393_v10 }
 0x728   : > { %v1407_v18 = vunpack.c.l.bf16 %v1404_v13  ;;  %v1408_v19 = vunpack.c.h.bf16 %v1404_v13 }
 0x729   : > { %v1399_v20 = vadd.f32 %v1395_v15, %v2837_v31  ;;  %v1400_v21 = vadd.f32 %v1396_v17, %v2839_v32 }
 0x72a   : > { %v1411_v22 = vmul.f32 0.796875, %v1407_v18  ;;  %v1412_v23 = vmul.f32 0.796875, %v1408_v19 }
 0x72b   : > { %v1403_v24 = vpack.c.bf16 %v1400_v21, %v1399_v20 }
 0x72c   : > { %v1414_v25 = vpack.c.bf16 %v1412_v23, %v1411_v22 }
 0x72d   : > { %v1405_v26 = vunpack.c.l.bf16 %v1403_v24  ;;  %v1406_v27 = vunpack.c.h.bf16 %v1403_v24 }
 0x72e   : > { %v1417_v28 = vunpack.c.l.bf16 %v1414_v25  ;;  %v1418_v29 = vunpack.c.h.bf16 %v1414_v25 }
 0x72f   : > { %v1409_v30 = vmul.f32 0.796875, %v1405_v26  ;;  %v1410_v33 = vmul.f32 0.796875, %v1406_v27 }
 0x730   : > { %2465 = vtanh.f32 %v1417_v28 }
 0x731   : > { %v1413_v34 = vpack.c.bf16 %v1410_v33, %v1409_v30  ;;  %2467 = vtanh.f32 %v1418_v29 }
 0x733   : > { %v1415_v35 = vunpack.c.l.bf16 %v1413_v34  ;;  %v1416_v36 = vunpack.c.h.bf16 %v1413_v34 }
 0x735   : > { %2469 = vtanh.f32 %v1415_v35 }
 0x736   : > { %v2466_v37 = vpop.eup %2465  ;;  %2471 = vtanh.f32 %v1416_v36 }
 0x737   : > { %v2468_v38 = vpop.eup %2467 }
 0x738   : > { %v1424_v41 = vpack.c.bf16 %v2468_v38, %v2466_v37 }
 0x73a   : > { %v1427_v42 = vunpack.c.l.bf16 %v1424_v41  ;;  %v1428_v43 = vunpack.c.h.bf16 %v1424_v41 }
 0x73b   : > { %v2470_v44 = vpop.eup %2469 }
 0x73c   : > { %v2472_v45 = vpop.eup %2471  ;;  %v1431_v47 = vadd.f32 1.0, %v1427_v42  ;;  %v1432_v48 = vadd.f32 1.0, %v1428_v43 }
 0x73d   : > { %v1423_v51 = vpack.c.bf16 %v2472_v45, %v2470_v44 }
 0x73e   : > { %v1434_v52 = vpack.c.bf16 %v1432_v48, %v1431_v47 }
 0x73f   : > { %v1425_v55 = vunpack.c.l.bf16 %v1423_v51  ;;  %v1426_v56 = vunpack.c.h.bf16 %v1423_v51 }
 0x740   : > { %v1441_v11 = vunpack.c.l.bf16 %v1434_v52  ;;  %v1442_v12 = vunpack.c.h.bf16 %v1434_v52 }
 0x741   : > { %v1429_v59 = vadd.f32 1.0, %v1425_v55  ;;  %v1430_v60 = vadd.f32 1.0, %v1426_v56 }
 0x742   : > { %v1445_v61 = vmul.f32 %v1441_v11, %v1437_v57  ;;  %v1446_v62 = vmul.f32 %v1442_v12, %v1438_v16 }
 0x743   : > { %v1433_v63 = vpack.c.bf16 %v1430_v60, %v1429_v59 }
 0x744   : > { %v1449_v0 = vpack.c.bf16 %v1445_v61, %v1445_v61  ;;  %v1450_v1 = vpack.c.bf16 %v1446_v62, %v1446_v62 }
 0x745   : > { %v1439_v31 = vunpack.c.l.bf16 %v1433_v63  ;;  %v1440_v32 = vunpack.c.h.bf16 %v1433_v63 }
 0x746   : > { %1745 = vmatmul.bf16.vlgmr.msra.gmra.mxu0 %v1449_v0  ;;  %1758 = vmatmul.bf16.vlgmr.msrb.gmra.mxu1 %v1450_v1 }
 0x747   : > { %v1443_v5 = vmul.f32 %v1439_v31, %v1435_v3  ;;  %v1444_v6 = vmul.f32 %v1440_v32, %v1436_v4 }
 0x749   : > { %v1447_v53 = vpack.c.bf16 %v1443_v5, %v1443_v5  ;;  %v1448_v7 = vpack.c.bf16 %v1444_v6, %v1444_v6 }
 0x74b   : > { %1719 = vmatmul.bf16.vlgmr.msra.gmra.mxu2 %v1447_v53  ;;  %1732 = vmatmul.bf16.vlgmr.msrb.gmra.mxu3 %v1448_v7 }
 0x7c3   : > { %v1746_v8 = vpop.f32.mrf.mxu0  ;;  %v1759_v9 = vpop.f32.mrf.mxu1 }
 0x7cb   : > { %v1748_v10 = vpop.f32.mrf.mxu0  ;;  %v1761_v13 = vpop.f32.mrf.mxu1 }
 0x7ce   : > { %v1720_v2 = vpop.f32.mrf.mxu2  ;;  %v1733_v15 = vpop.f32.mrf.mxu3 }
 0x7cf   : > { %v1721_v17 = vadd.f32 %v2444_v14, %v1720_v2 }
 0x7d1   : > { %v1734_v18 = vadd.f32 %v1733_v15, %v1721_v17 }
 0x7d3   : > { %v1747_v19 = vadd.f32 %v1746_v8, %v1734_v18 }
 0x7d5   : > { %v1760_v20 = vadd.f32 %v1759_v9, %v1747_v19 }
 0x7d6   : > { %v1722_v21 = vpop.f32.mrf.mxu2  ;;  %v1735_v22 = vpop.f32.mrf.mxu3 }
 0x7d7   : > { %v1763_v23 = vadd.f32 %v1760_v20, %v2824_v54  ;;  %v2445_v54 = vld [vmem:[%s2889_s12] ss:$0 sm:$0xff] }
 0x7d9   : > { %1766 = vadd.xlane.f32.xlu1 %v1763_v23 }
 0x84c   : > { %v1767_v24 = vpop.xlane.xlu1 %1766 }
 0x84d   : > { %v1768_v25 = vmul.f32 0.0078125, %v1767_v24 }
 0x84f   : > { %v1769_v26 = vsub.f32 %v1763_v23, %v1768_v25 }
 0x851   : > { %v1770_v27 = vmul.f32 %v1769_v26, %v1769_v26 }
 0x853   : > { %1771 = vadd.xlane.f32.xlu2 %v1770_v27 }
 0x8c6   : > { %v1772_v28 = vpop.xlane.xlu2 %1771 }
 0x8c7   : > { %v1773_v29 = vmul.f32 0.0078125, %v1772_v28 }
 0x8c9   : > { %v1774_v30 = vadd.f32 1e-12, %v1773_v29 }
 0x8cb   : > { %2473 = vrsqrt.f32 %v1774_v30  ;;  %vm1781_vm9 = vweird.f32 %v1774_v30 }
 0x8d1   : > { %v2474_v33 = vpop.eup %2473 }
 0x8d2   : > { %v1776_v34 = vmul.f32 %v2474_v33, %v1774_v30  ;;  %vm1782_vm8 = vweird.f32 %v2474_v33 }
 0x8d3   : > { %vm1783_vm10 = vmor %vm1781_vm9, %vm1782_vm8 }
 0x8d4   : > { %v1777_v35 = vmul.f32 %v2474_v33, %v1776_v34 }
 0x8d6   : > { %v1778_v36 = vmul.f32 0.5, %v1777_v35 }
 0x8d8   : > { %v1779_v37 = vsub.f32 1.5, %v1778_v36 }
 0x8da   : > { %v1780_v38 = vmul.f32 %v2474_v33, %v1779_v37 }
 0x8dc   : > { %v1784_v39 = vsel %vm1783_vm10, %v2474_v33, %v1780_v38 }
 0x8dd   : > { %v1785_v41 = vmul.f32 %v1784_v39, %v1769_v26 }
 0x8df   : > { %v1789_v42 = vmul.f32 %v2445_v54, %v1785_v41 }
 0x8e1   : > { %v1793_v43 = vadd.f32 %v2446_v40, %v1789_v42 }
 0x8e3   : > { %v1794_v44 = vpack.c.bf16 %v1793_v43, %v1793_v43 }
 0x8e5   : > { %1795 = vst [vmem:[%s526_s30] sm:$0xf] %v1794_v44 }
 0x8e6 PF: > { %s2902_s15 = sld [smem:[#allocation9_spill]] }
 0x8ec   : > { %s26_s29 = sadd.s32 1, %s2902_s15  }
 0x8ed   : > { %p23_p7 = scmp.ge.s32.totalorder %s26_s29, 4  }
 0x8ef   :  { %25 = sbr.rel (!%p23_p7) target bundleno = 6 (0x6), region = 122 }
 0x8f4   :  { %1815 = vsyncpa [#allocation3], 1 }
 0x8f5   :  { %1817 = vsyncpa [#allocation3 + $0x1], 1 }
 0x8f6   :  { %1818 = vsyncpa [#allocation5], 1 }

// kernel: _lambda_.6
= control target key start
LH: loop header
LB: loop body
LE: loop exit
PB: predicated region body
PF: predicated region fallthrough
CT: control target
= control target key end

     0   :  { %s3023_s0 = inlined_call_operand.vmem [shape: bf16[16,128], index: 0, kind: input, shape index: {}]   ;;  %s3024_s1 = inlined_call_operand.hbm [shape: bf16[128,384], index: 1, kind: input, shape index: {}]   ;;  %s3025_s2 = inlined_call_operand.vmem [shape: f32[1,384], index: 2, kind: input, shape index: {}]   ;;  %s3026_s3 = inlined_call_operand.vmem [shape: f32[2,1,8], index: 3, kind: input, shape index: {}]   ;;  %s3027_s4 = inlined_call_operand.vmem [shape: bf16[128,128], index: 4, kind: input, shape index: {}]   ;;  %s3028_s5 = inlined_call_operand.vmem [shape: f32[1,128], index: 5, kind: input, shape index: {}]   ;;  %s3029_s6 = inlined_call_operand.vmem [shape: f32[1,128], index: 6, kind: input, shape index: {}]   ;;  %s3030_s7 = inlined_call_operand.vmem [shape: f32[1,128], index: 7, kind: input, shape index: {}]   ;;  %s3031_s8 = inlined_call_operand.hbm [shape: bf16[128,512], index: 8, kind: input, shape index: {}]   ;;  %s3032_s9 = inlined_call_operand.vmem [shape: f32[1,512], index: 9, kind: input, shape index: {}]   ;;  %s3033_s10 = inlined_call_operand.hbm [shape: bf16[512,128], index: 10, kind: input, shape index: {}]   ;;  %s3034_s11 = inlined_call_operand.vmem [shape: f32[1,128], index: 11, kind: input, shape index: {}]   ;;  %s3035_s12 = inlined_call_operand.hbm [shape: f32[1,128], index: 12, kind: input, shape index: {}]   ;;  %s3036_s13 = inlined_call_operand.hbm [shape: f32[1,128], index: 13, kind: input, shape index: {}]   ;;  %s3037_s14 = inlined_call_operand.vmem [shape: bf16[16,128], index: 14, kind: output, shape index: {}]  }
   0x1   :  { %3039 = sst [smem:[#allocation14_spill]] %s3024_s1 }
   0x2   :  { %3040 = sst [smem:[#allocation15_spill]] %s3031_s8 }
   0x3   :  { %3041 = sst [smem:[#allocation16_spill]] %s3035_s12 }
   0x4   :  { %19 = vsyncpa [#allocation3], 0 }
   0x5   :  { %20 = vsyncpa [#allocation5], 0 }
   0x6   :  { %21 = vsyncpa [#allocation8], 0  ;;  %s2806_s29 = smov 0  }
   0x7 LB: > { %3042 = sst [smem:[#allocation13_spill]] %s2715_s29  ;;  %s2815_s17 = sadd.s32 4294967295, %s2715_s29   ;;  %s2715_s29 = sphi %s2806_s29, %s27_s29  }
   0x8   : > { %s3043_s8 = sld [smem:[#allocation15_spill]]  ;;  %p1939_p0 = scmp.ge.s32.totalorder %s2715_s29, 1 }
   0x9   : > { %p362_p1 = scmp.lt.s32.totalorder %s2715_s29, 3  ;;  %p2480_p2 = scmp.eq.s32.totalorder %s2815_s17, 0 }
   0xa   : > { %s2717_s19 = smov [#allocation4]   ;;  %s3045_s12 = sld [smem:[#allocation16_spill]] }
   0xb   : > { %p2820_p3 = pnand %p1939_p0, %p362_p1  ;;  %s404_s20 = sshll.u32 %s2717_s19, 4  ;;  %s405_s20 = int_to_ptr.vmem [resolvable:$true] %s404_s20 }
   0xc   : > { %s2718_s25 = smov [#allocation7]   ;;  %s3047_s1 = sld [smem:[#allocation14_spill]] }
   0xd   : > { %p2464_p4 = pneg %p2820_p3  ;;  %s439_s26 = sshll.u32 %s2718_s25, 4  ;;  %s440_s26 = int_to_ptr.vmem [resolvable:$true] %s439_s26 }
   0xe   : > { %s402_s16 = sshll.u32 %s3043_s8, 4  ;;  %s2719_s15 = smov 256   ;;  %s403_s16 = int_to_ptr.hbm [resolvable:$true] %s402_s16 }
   0xf   : > { %p2831_p5 = pnand %p2480_p2, %p2464_p4  ;;  %s2720_s19 = smov 16  }
  0x10   : > { %s437_s23 = sshll.u32 %s3045_s12, 4  ;;  %s2721_s21 = smov [#allocation2]   ;;  %s438_s23 = int_to_ptr.hbm [resolvable:$true] %s437_s23 }
  0x11   : > { %2470 = dma.hbm_to_vmem [thread:$0]  (!%p2831_p5), %s403_s16, 4096, %s405_s20, [#allocation5], %s2719_s15, %s2719_s15, %s2720_s19  }
  0x12   : > { %s373_s30 = sshll.u32 %s3047_s1, 4  ;;  %s375_s22 = sshll.u32 %s2721_s21, 4  ;;  %s374_s30 = int_to_ptr.hbm [resolvable:$true] %s373_s30  ;;  %s376_s22 = int_to_ptr.vmem [resolvable:$true] %s375_s22 }
  0x13   : > { %2476 = dma.hbm_to_vmem [thread:$0]  (!%p2831_p5), %s438_s23, 16, %s440_s26, [#allocation8]  }
  0x14   : > { %s2722_s8 = smov 192   ;;  %s2723_s12 = smov 12  }
  0x15   : > { %2467 = dma.hbm_to_vmem [thread:$0]  (!%p2831_p5), %s374_s30, 3072, %s376_s22, [#allocation3], %s2722_s8, %s2722_s8, %s2723_s12  }
  0x16   : > { %s419_s28 = sshll.u32 %s3033_s10, 4  ;;  %s2724_s1 = smov [#allocation6]   ;;  %s420_s28 = int_to_ptr.hbm [resolvable:$true] %s419_s28 }
  0x17   : > { %s421_s29 = sshll.u32 %s2724_s1, 4  ;;  %s449_s23 = sshll.u32 %s3036_s13, 4  ;;  %s422_s29 = int_to_ptr.vmem [resolvable:$true] %s421_s29  ;;  %s450_s23 = int_to_ptr.hbm [resolvable:$true] %s449_s23 }
  0x18   : > { %s2725_s26 = smov 64   ;;  %s2726_s15 = smov 4  }
  0x19   : > { %2473 = dma.hbm_to_vmem [thread:$0]  (!%p2831_p5), %s420_s28, 4096, %s422_s29, [#allocation5], %s2725_s26, %s2725_s26, %s2726_s15  }
  0x1a   : > { %s2727_s19 = smov [#allocation9]   ;;  %477 = sbr.rel (%p2820_p3) target bundleno = 2286 (0x8ee), region = 76 }
  0x1b   : > { %s451_s21 = sshll.u32 %s2727_s19, 4  ;;  %s452_s21 = int_to_ptr.vmem [resolvable:$true] %s451_s21 }
  0x1c   : > { %2479 = dma.hbm_to_vmem [thread:$0]  (!%p2831_p5), %s450_s23, 16, %s452_s21, [#allocation8]  }
  0x1f   : > { %2702 = dma.done.wait (%p2480_p2), [#allocation3], 3072  }
  0x20   : > { %2704 = vsyncadd (%p2480_p2), [#allocation3], 4294964224 }
  0x21   : > { %2706 = dma.done.wait (%p2480_p2), [#allocation5], 8192  }
  0x22   : > { %2708 = vsyncadd (%p2480_p2), [#allocation5], 4294959104 }
  0x23   : > { %2710 = dma.done.wait (%p2480_p2), [#allocation8], 32  }
  0x24   : > { %2712 = vsyncadd (%p2480_p2), [#allocation8], 4294967264  ;;  %v2040_v0 = vld [vmem:[#allocation2 + $0xa8] sm:$0xf]  ;;  %v2370_v1 = vld [vmem:[#allocation2 + $0xb0] sm:$0xf0] }
  0x25   : > { %v2369_v2 = vld [vmem:[#allocation2 + $0xac] sm:$0xf]  ;;  %v2041_v3 = vor.u32 %v2370_v1, %v2040_v0  ;;  %v2042_v4 = vld [vmem:[#allocation2 + $0xb4] sm:$0xf0]  ;;  %v2028_v5 = vld [vmem:[#allocation2 + $0x90] sm:$0xf] }
  0x26   : > { %v2367_v6 = vld [vmem:[#allocation2 + $0x98] sm:$0xf0]  ;;  %v2045_v7 = vor.u32 %v2369_v2, %v2042_v4  ;;  %v2366_v8 = vld [vmem:[#allocation2 + $0x94] sm:$0xf]  ;;  %v2030_v9 = vld [vmem:[#allocation2 + $0x9c] sm:$0xf0] }
  0x27   : > { %726 = vmatpush.bf16.msra.mxu0 %v2041_v3  ;;  %v2029_v10 = vor.u32 %v2367_v6, %v2028_v5  ;;  %v2033_v11 = vor.u32 %v2366_v8, %v2030_v9  ;;  %v2016_v12 = vld [vmem:[#allocation2 + $0x78] sm:$0xf]  ;;  %v2364_v13 = vld [vmem:[#allocation2 + $0x80] sm:$0xf0]  ;;  %v2363_v14 = vld [vmem:[#allocation2 + $0x7c] sm:$0xf] }
  0x28   : > { %739 = vmatpush.bf16.msra.mxu1 %v2045_v7  ;;  %v2018_v15 = vld [vmem:[#allocation2 + $0x84] sm:$0xf0]  ;;  %v2017_v16 = vor.u32 %v2364_v13, %v2016_v12  ;;  %v2004_v18 = vld [vmem:[#allocation2 + $0x60] sm:$0xf]  ;;  %v2361_v19 = vld [vmem:[#allocation2 + $0x68] sm:$0xf0] }
  0x29   : > { %v2021_v17 = vor.u32 %v2363_v14, %v2018_v15  ;;  %v2360_v20 = vld [vmem:[#allocation2 + $0x64] sm:$0xf]  ;;  %v2006_v21 = vld [vmem:[#allocation2 + $0x6c] sm:$0xf0]  ;;  %p545_p6 = scmp.lt.s32.totalorder %s2815_s17, 1  ;;  %v2005_v22 = vor.u32 %v2361_v19, %v2004_v18  ;;  %vm774_vm0 = vcmask 261120  }
  0x2a   : > { %v2048_v23 = vld [vmem:[#allocation2 + $0xb0] sm:$0xf]  ;;  %v2371_v24 = vld [vmem:[#allocation2 + $0xb8] sm:$0xf0]  ;;  %v2036_v25 = vld [vmem:[#allocation2 + $0x98] sm:$0xf]  ;;  %v2009_v26 = vor.u32 %v2360_v20, %v2006_v21 }
  0x2b   : > { %727 = vmatpush.bf16.msra.mxu0 %v2029_v10  ;;  %v1992_v27 = vld [vmem:[#allocation2 + $0x48] sm:$0xf]  ;;  %v2358_v28 = vld [vmem:[#allocation2 + $0x50] sm:$0xf0]  ;;  %v2049_v29 = vor.u32 %v2371_v24, %v2048_v23  ;;  %v2368_v30 = vld [vmem:[#allocation2 + $0xa0] sm:$0xf0] }
  0x2c   : > { %740 = vmatpush.bf16.msra.mxu1 %v2033_v11  ;;  %v2357_v31 = vld [vmem:[#allocation2 + $0x4c] sm:$0xf]  ;;  %v1994_v32 = vld [vmem:[#allocation2 + $0x54] sm:$0xf0]  ;;  %s3050_s17 = smov (!%p545_p6, %s2815_s17), 1  ;;  %v2037_v33 = vor.u32 %v2368_v30, %v2036_v25  ;;  %v1993_v34 = vor.u32 %v2358_v28, %v1992_v27  ;;  %s2728_s27 = smov 64  }
  0x2d   : > { %752 = vmatpush.bf16.msra.mxu2 %v2049_v29  ;;  %v1980_v35 = vld [vmem:[#allocation2 + $0x30] sm:$0xf]  ;;  %s551_s12 = scalar_lea.vmem %s3026_s3, %s3050_s17  ;;  %v2024_v36 = vld [vmem:[#allocation2 + $0x80] sm:$0xf]  ;;  %v2365_v37 = vld [vmem:[#allocation2 + $0x88] sm:$0xf0]  ;;  %v1997_v38 = vor.u32 %v2357_v31, %v1994_v32 }
  0x2e   : > { %v2355_v39 = vld [vmem:[#allocation2 + $0x38] sm:$0xf0]  ;;  %v2354_v40 = vld [vmem:[#allocation2 + $0x34] sm:$0xf]  ;;  %v1982_v41 = vld [vmem:[#allocation2 + $0x3c] sm:$0xf0]  ;;  %v2025_v42 = vor.u32 %v2365_v37, %v2024_v36 }
  0x2f   : > { %728 = vmatpush.bf16.msra.mxu0 %v2017_v16  ;;  %v1981_v43 = vor.u32 %v2355_v39, %v1980_v35  ;;  %v2012_v44 = vld [vmem:[#allocation2 + $0x68] sm:$0xf]  ;;  %v2362_v45 = vld [vmem:[#allocation2 + $0x70] sm:$0xf0]  ;;  %v1985_v46 = vor.u32 %v2354_v40, %v1982_v41  ;;  %v1968_v47 = vld [vmem:[#allocation2 + $0x18] sm:$0xf] }
  0x30   : > { %741 = vmatpush.bf16.msra.mxu1 %v2021_v17  ;;  %v2352_v48 = vld [vmem:[#allocation2 + $0x20] sm:$0xf0]  ;;  %v2351_v49 = vld [vmem:[#allocation2 + $0x1c] sm:$0xf]  ;;  %v1970_v50 = vld [vmem:[#allocation2 + $0x24] sm:$0xf0]  ;;  %v2013_v51 = vor.u32 %v2362_v45, %v2012_v44 }
  0x31   : > { %753 = vmatpush.bf16.msra.mxu2 %v2037_v33  ;;  %v1969_v52 = vor.u32 %v2352_v48, %v1968_v47  ;;  %v2000_v53 = vld [vmem:[#allocation2 + $0x50] sm:$0xf]  ;;  %v2359_v54 = vld [vmem:[#allocation2 + $0x58] sm:$0xf0]  ;;  %v1973_v55 = vor.u32 %v2351_v49, %v1970_v50  ;;  %v1956_v56 = vld [vmem:[#allocation2] sm:$0xf] }
  0x32   : > { %v2349_v57 = vld [vmem:[#allocation2 + $0x8] sm:$0xf0]  ;;  %v2348_v58 = vld [vmem:[#allocation2 + $0x4] sm:$0xf]  ;;  %v1958_v59 = vld [vmem:[#allocation2 + $0xc] sm:$0xf0]  ;;  %v2001_v60 = vor.u32 %v2359_v54, %v2000_v53 }
  0x33   : > { %729 = vmatpush.bf16.msra.mxu0 %v2005_v22  ;;  %s1952_s29 = sshll.u32 %s3050_s17, 2  ;;  %v1957_v61 = vor.u32 %v2349_v57, %v1956_v56  ;;  %v1988_v62 = vld [vmem:[#allocation2 + $0x38] sm:$0xf]  ;;  %v2356_v63 = vld [vmem:[#allocation2 + $0x40] sm:$0xf0]  ;;  %v1961_v0 = vor.u32 %v2348_v58, %v1958_v59  ;;  %s2729_s28 = smov 96  }
  0x34   : > { %742 = vmatpush.bf16.msra.mxu1 %v2009_v26  ;;  %s548_s30 = scalar_lea.vmem %s3023_s0, %s1952_s29  ;;  %v1989_v1 = vor.u32 %v2356_v63, %v1988_v62  ;;  %v1976_v3 = vld [vmem:[#allocation2 + $0x20] sm:$0xf]  ;;  %v2353_v4 = vld [vmem:[#allocation2 + $0x28] sm:$0xf0]  ;;  %v1964_v6 = vld [vmem:[#allocation2 + $0x8] sm:$0xf]  ;;  %s555_s25 = scalar_lea.vmem %s3037_s14, %s1952_s29 }
  0x35   : > { %754 = vmatpush.bf16.msra.mxu2 %v2025_v42  ;;  %v2884_v2 = vld [vmem:[%s548_s30] sm:$0xf]  ;;  %v1977_v5 = vor.u32 %v2353_v4, %v1976_v3  ;;  %v2350_v7 = vld [vmem:[#allocation2 + $0x10] sm:$0xf0]  ;;  %s2730_s16 = smov 32   ;;  %vm810_vm1 = vcmask 1043456  }
  0x36   : > { %v1965_v8 = vor.u32 %v2350_v7, %v1964_v6  ;;  %v590_v9 = vld [vmem:[%s3025_s2] sm:$0x7]  ;;  %vm794_vm2 = vcmask 64512   ;;  %vm1013_vm3 = vcmask 523264   ;;  %vm1015_vm4 = vcmask 785408  }
  0x37   : > { %730 = vmatpush.bf16.msra.mxu0 %v1993_v34  ;;  %v592_v10 = vperm.slane %v590_v9, 0  ;;  %v593_v11 = vperm.slane %v590_v9, 1  ;;  %v594_v25 = vperm.slane %v590_v9, 2  ;;  %v2512_v34 = vld [vmem:[%s551_s12] ss:$0 sm:$0xff] }
  0x38   : > { %743 = vmatpush.bf16.msra.mxu1 %v1997_v38 }
  0x39   : > { %755 = vmatpush.bf16.msra.mxu2 %v2013_v51 }
  0x3b   : > { %731 = vmatpush.bf16.msra.mxu0 %v1981_v43 }
  0x3c   : > { %744 = vmatpush.bf16.msra.mxu1 %v1985_v46 }
  0x3d   : > { %756 = vmatpush.bf16.msra.mxu2 %v2001_v60 }
  0x3f   : > { %732 = vmatpush.bf16.msra.mxu0 %v1969_v52 }
  0x40   : > { %745 = vmatpush.bf16.msra.mxu1 %v1973_v55 }
  0x41   : > { %757 = vmatpush.bf16.msra.mxu2 %v1989_v1 }
  0x43   : > { %733 = vmatpush.bf16.msra.mxu0 %v1957_v61 }
  0x44   : > { %746 = vmatpush.bf16.msra.mxu1 %v1961_v0 }
  0x45   : > { %758 = vmatpush.bf16.msra.mxu2 %v1977_v5 }
  0x46   : > { %734 = vmatmul.bf16.vlgmr.msra.gmra.mxu0 %v2884_v2 }
  0x47   : > { %747 = vmatmul.bf16.vlgmr.msra.gmra.mxu1 %v2884_v2 }
  0x49   : > { %759 = vmatpush.bf16.msra.mxu2 %v1965_v8 }
  0x4c   : > { %760 = vmatmul.bf16.vlgmr.msra.gmra.mxu2 %v2884_v2 }
  0xc3   : > { %v735_v12 = vpop.f32.mrf.mxu0 }
  0xc4   : > { %v736_v13 = vadd.f32 %v735_v12, %v592_v10  ;;  %v748_v14 = vpop.f32.mrf.mxu1 }
  0xc5   : > { %v749_v15 = vadd.f32 %v748_v14, %v593_v11 }
  0xc7   : > { %v765_v16 = vpack.c.bf16 %v749_v15, %v736_v13 }
  0xc9   : > { %v772_v17 = vunpack.c.h.b16 %v765_v16  ;;  %v827_v22 = vunpack.c.l.b16 %v765_v16 }
  0xcb   : > { %v737_v18 = vpop.f32.mrf.mxu0  ;;  %v773_v19 = vpack.c.b16 %v772_v17, %v772_v17  ;;  %v828_v23 = vpack.c.b16 %v827_v22, %v827_v22 }
  0xcc   : > { %v750_v20 = vpop.f32.mrf.mxu1 }
  0xcd   : > { %890 = vrot.lane.b32.xlu2 %v773_v19, %s2728_s27  ;;  %831 = vrot.lane.b32.xlu1 %v773_v19, %s2729_s28  ;;  %v779_v21 = vsel %vm774_vm0, %v773_v19, 0 }
  0xce   : > { %788 = vmatpush.bf16.xpose.msra.mxu3 %v779_v21 }
  0xcf   : > { %v761_v24 = vpop.f32.mrf.mxu2 }
  0xd0   : > { %v762_v26 = vadd.f32 %v761_v24, %v594_v25 }
  0xd2   : > { %v766_v28 = vpack.c.bf16 %v762_v26, %v762_v26 }
  0xd4   : > { %v812_v29 = vsel %vm810_vm1, %v766_v28, 0  ;;  %v865_v4 = vunpack.c.l.b16 %v766_v28 }
  0xd5   : > { %946 = vrot.lane.b32.xlu2 %v773_v19, %s2730_s16  ;;  %829 = vrot.lane.b32.xlu1 %v828_v23, %s2729_s28 }
  0xd6   : > { %2050 = vmatmul.msk.bf16.vlgmr.msra.gmra.mxu3 %vm774_vm0, %v765_v16  ;;  %v866_v5 = vpack.c.b16 %v865_v4, %v865_v4  ;;  %v2204_v4 = vld [vmem:[#allocation4 + $0xe0] sm:$0xf] }
  0xd7   : > { %v763_v27 = vpop.f32.mrf.mxu2  ;;  %821 = vmatpush.bf16.msrb.mxu3 %v812_v29 }
  0xdd   : > { %944 = vrot.lane.b32.xlu1 %v828_v23, %s2730_s16 }
 0x127   : > { %v891_v30 = vpop.permute.xlu2 %890 }
 0x128   : > { %v896_v31 = vsel %vm774_vm0, %v891_v30, 0 }
 0x129   : > { %905 = vmatpush.bf16.xpose.msrb.mxu2 %v896_v31 }
 0x12f   : > { %v947_v47 = vpop.permute.xlu2 %946 }
 0x130   : > { %v952_v49 = vsel %vm774_vm0, %v947_v47, 0  ;;  %v2377_v47 = vld [vmem:[%s3027_s4 + $0x28] sm:$0xff] }
 0x13f   : > { %v832_v32 = vpop.permute.xlu1 %831 }
 0x140   : > { %v837_v33 = vsel %vm774_vm0, %v832_v32, 0 }
 0x141   : > { %846 = vmatpush.bf16.xpose.msra.mxu3 %v837_v33 }
 0x147   : > { %v830_v51 = vpop.permute.xlu1 %829 }
 0x14f   : > { %v945_v52 = vpop.permute.xlu1 %944 }
 0x159   : > { %v790_v35 = vpop.f32.mrf.mxu3 }
 0x15a   : > { %v791_v36 = vadd.f32 %v2512_v34, %v790_v35 }
 0x15c   : > { %v795_v37 = vsel %vm794_vm2, %v791_v36, -inf }
 0x15d   : > { %796 = vmax.xlane.f32.xlu0 %v795_v37 }
 0x161   : > { %v792_v38 = vpop.f32.mrf.mxu3 }
 0x1d0   : > { %v797_v39 = vpop.xlane.xlu0 %796 }
 0x1d1   : > { %v798_v40 = vsub.f32 %v791_v36, %v797_v39 }
 0x1d3   : > { %v799_v41 = vmul.f32 1.442695, %v798_v40 }
 0x1d5   : > { %2519 = vpow2.f32 %v799_v41 }
 0x1db   : > { %v2520_v42 = vpop.eup %2519 }
 0x1dc   : > { %v801_v43 = vsel %vm794_vm2, %v2520_v42, 0.0 }
 0x1dd   : > { %802 = vadd.xlane.f32.xlu0 %v801_v43 }
 0x1f1   : > { %888 = vrot.lane.b32.xlu0 %v828_v23, %s2728_s27 }
 0x250   : > { %v803_v44 = vpop.xlane.xlu0 %802 }
 0x251   : > { %2521 = vrcp.f32 %v803_v44 }
 0x257   : > { %v2522_v45 = vpop.eup %2521 }
 0x258   : > { %v805_v46 = vmul.f32 %v2522_v45, %v2520_v42  ;;  %v2379_v45 = vld [vmem:[%s3027_s4 + $0x38] sm:$0xff] }
 0x259   : > { %1086 = vmatpush.bf16.msrb.mxu1 %v2379_v45 }
 0x25a   : > { %v806_v48 = vpack.c.bf16 %v805_v46, %v805_v46  ;;  %v2378_v46 = vld [vmem:[%s3027_s4 + $0x30] sm:$0xff] }
 0x25c   : > { %2051 = vmatmul.msk.bf16.vlgmr.msrb.gmra.mxu3 %vm794_vm2, %v806_v48  ;;  %v2376_v48 = vld [vmem:[%s3027_s4 + $0x20] sm:$0xff] }
 0x25d   : > { %961 = vmatpush.bf16.xpose.msrb.mxu3 %v952_v49  ;;  %1087 = vmatpush.bf16.msrb.mxu1 %v2378_v46  ;;  %v2375_v49 = vld [vmem:[%s3027_s4 + $0x18] sm:$0xff]  ;;  %v2158_v46 = vld [vmem:[#allocation4 + $0x90] sm:$0xf0] }
 0x261   : > { %1088 = vmatpush.bf16.msrb.mxu1 %v2377_v47  ;;  %v2164_v47 = vld [vmem:[#allocation4 + $0x88] sm:$0xf] }
 0x263   : > { %v889_v50 = vpop.permute.xlu0 %888 }
 0x264   : > { %2054 = vmatmul.msk.bf16.vlgmr.msrb.gmra.mxu2 %vm774_vm0, %v889_v50  ;;  %v2374_v50 = vld [vmem:[%s3027_s4 + $0x10] sm:$0xff] }
 0x265   : > { %1089 = vmatpush.bf16.msrb.mxu1 %v2376_v48  ;;  %v2399_v48 = vld [vmem:[#allocation4 + $0x94] sm:$0xf0] }
 0x269   : > { %1090 = vmatpush.bf16.msrb.mxu1 %v2375_v49 }
 0x26c   : > { %2052 = vmatmul.msk.bf16.vlgmr.msra.gmra.mxu3 %vm774_vm0, %v830_v51  ;;  %v2373_v51 = vld [vmem:[%s3027_s4 + $0x8] sm:$0xff] }
 0x26d   : > { %1091 = vmatpush.bf16.msrb.mxu1 %v2374_v50  ;;  %v2165_v50 = vor.u32 %v2399_v48, %v2164_v47  ;;  %v2514_v48 = vld [vmem:[%s3029_s6] ss:$0 sm:$0xff] }
 0x271   : > { %1092 = vmatpush.bf16.msrb.mxu1 %v2373_v51  ;;  %v2397_v51 = vld [vmem:[#allocation4 + $0x8c] sm:$0xf] }
 0x27c   : > { %2056 = vmatmul.msk.bf16.vlgmr.msrb.gmra.mxu3 %vm774_vm0, %v945_v52  ;;  %v2372_v52 = vld [vmem:[%s3027_s4] sm:$0xff] }
 0x27d   : > { %1093 = vmatpush.bf16.msrb.mxu1 %v2372_v52  ;;  %v2166_v52 = vld [vmem:[#allocation4 + $0x98] sm:$0xf0] }
 0x2df   : > { %v2915_v53 = vpop.f32.mrf.mxu3 }
 0x2e7   : > { %v825_v54 = vpop.f32.mrf.mxu3  ;;  %v907_v55 = vpop.f32.mrf.mxu2 }
 0x2e8   : > { %v908_v56 = vadd.f32 %v2512_v34, %v907_v55 }
 0x2ea   : > { %v911_v57 = vsel %vm794_vm2, %v908_v56, -inf }
 0x2eb   : > { %912 = vmax.xlane.f32.xlu1 %v911_v57 }
 0x2ef   : > { %v848_v58 = vpop.f32.mrf.mxu3  ;;  %v909_v59 = vpop.f32.mrf.mxu2 }
 0x2f0   : > { %v849_v60 = vadd.f32 %v2512_v34, %v848_v58 }
 0x2f2   : > { %v852_v61 = vsel %vm794_vm2, %v849_v60, -inf }
 0x2f3   : > { %853 = vmax.xlane.f32.xlu2 %v852_v61  ;;  %v2513_v61 = vld [vmem:[%s3028_s5] ss:$0 sm:$0xff] }
 0x2f7   : > { %v850_v62 = vpop.f32.mrf.mxu3 }
 0x2f8   : > { %v1099_v62 = vunpack.c.l.bf16 %v2884_v2 }
 0x2ff   : > { %v963_v63 = vpop.f32.mrf.mxu3 }
 0x300   : > { %v964_v0 = vadd.f32 %v2512_v34, %v963_v63 }
 0x302   : > { %v967_v1 = vsel %vm794_vm2, %v964_v0, -inf }
 0x303   : > { %968 = vmax.xlane.f32.xlu0 %v967_v1 }
 0x307   : > { %v965_v3 = vpop.f32.mrf.mxu3 }
 0x317   : > { %923 = vrot.lane.b32.xlu0 %v866_v5, %s2728_s27 }
 0x35e   : > { %v913_v6 = vpop.xlane.xlu1 %912 }
 0x35f   : > { %v914_v7 = vsub.f32 %v908_v56, %v913_v6  ;;  %v2408_v6 = vld [vmem:[#allocation4 + $0xe4] sm:$0xf] }
 0x361   : > { %v915_v8 = vmul.f32 1.442695, %v914_v7  ;;  %v2206_v7 = vld [vmem:[#allocation4 + $0xf0] sm:$0xf0] }
 0x363   : > { %2523 = vpow2.f32 %v915_v8  ;;  %v2212_v8 = vld [vmem:[#allocation4 + $0xe8] sm:$0xf] }
 0x366   : > { %v854_v9 = vpop.xlane.xlu2 %853 }
 0x367   : > { %v855_v10 = vsub.f32 %v849_v60, %v854_v9  ;;  %v2411_v9 = vld [vmem:[#allocation4 + $0xf4] sm:$0xf0] }
 0x369   : > { %v2524_v11 = vpop.eup %2523  ;;  %v856_v12 = vmul.f32 1.442695, %v855_v10  ;;  %v2209_v10 = vor.u32 %v2408_v6, %v2206_v7  ;;  %v2388_v6 = vld [vmem:[#allocation4 + $0x44] sm:$0xf]  ;;  %v2126_v7 = vld [vmem:[#allocation4 + $0x50] sm:$0xf0] }
 0x36a   : > { %v917_v13 = vsel %vm794_vm2, %v2524_v11, 0.0 }
 0x36b   : > { %2525 = vpow2.f32 %v856_v12  ;;  %918 = vadd.xlane.f32.xlu1 %v917_v13  ;;  %v2409_v12 = vld [vmem:[#allocation4 + $0xec] sm:$0xf]  ;;  %v2214_v13 = vld [vmem:[#allocation4 + $0xf8] sm:$0xf0]  ;;  %1347 = vmatpush.bf16.msra.mxu3 %v2209_v10  ;;  %v2129_v10 = vor.u32 %v2388_v6, %v2126_v7 }
 0x36c   : > { %v2441_v6 = vld [vmem:[#allocation6 + $0xe8] sm:$0xff] }
 0x371   : > { %v2526_v14 = vpop.eup %2525 }
 0x372   : > { %v858_v15 = vsel %vm794_vm2, %v2526_v14, 0.0 }
 0x373   : > { %859 = vadd.xlane.f32.xlu2 %v858_v15 }
 0x376   : > { %v969_v16 = vpop.xlane.xlu0 %968 }
 0x377   : > { %v970_v17 = vsub.f32 %v964_v0, %v969_v16 }
 0x379   : > { %v971_v18 = vmul.f32 1.442695, %v970_v17 }
 0x37b   : > { %2527 = vpow2.f32 %v971_v18  ;;  %v2188_v18 = vld [vmem:[#allocation4 + $0xc0] sm:$0xf] }
 0x381   : > { %v2528_v19 = vpop.eup %2527 }
 0x382   : > { %v973_v20 = vsel %vm794_vm2, %v2528_v19, 0.0 }
 0x383   : > { %974 = vadd.xlane.f32.xlu1 %v973_v20  ;;  %v2404_v20 = vld [vmem:[#allocation4 + $0xc4] sm:$0xf] }
 0x389   : > { %v924_v21 = vpop.permute.xlu0 %923 }
 0x38a   : > { %v929_v22 = vsel %vm810_vm1, %v924_v21, 0 }
 0x38b   : > { %867 = vrot.lane.b32.xlu2 %v866_v5, %s2729_s28  ;;  %938 = vmatpush.bf16.msra.mxu2 %v929_v22  ;;  %v2190_v22 = vld [vmem:[#allocation4 + $0xd0] sm:$0xf0] }
 0x39c   : > { %979 = vrot.lane.b32.xlu1 %v866_v5, %s2730_s16  ;;  %v2410_v5 = vld [vmem:[#allocation4 + $0xec] sm:$0xf0] }
 0x3de   : > { %v919_v23 = vpop.xlane.xlu1 %918 }
 0x3df   : > { %2529 = vrcp.f32 %v919_v23  ;;  %v2196_v23 = vld [vmem:[#allocation4 + $0xc8] sm:$0xf] }
 0x3e5   : > { %v2530_v24 = vpop.eup %2529 }
 0x3e6   : > { %v921_v25 = vmul.f32 %v2530_v24, %v2524_v11  ;;  %v860_v26 = vpop.xlane.xlu2 %859  ;;  %v2213_v11 = vor.u32 %v2411_v9, %v2212_v8  ;;  %v2407_v24 = vld [vmem:[#allocation4 + $0xd4] sm:$0xf0]  ;;  %v2132_v8 = vld [vmem:[#allocation4 + $0x48] sm:$0xf] }
 0x3e7   : > { %2531 = vrcp.f32 %v860_v26  ;;  %v2197_v26 = vor.u32 %v2407_v24, %v2196_v23  ;;  %v2391_v9 = vld [vmem:[#allocation4 + $0x54] sm:$0xf0]  ;;  %v2385_v24 = vld [vmem:[#allocation4 + $0x2c] sm:$0xf] }
 0x3e8   : > { %v922_v27 = vpack.c.bf16 %v921_v25, %v921_v25  ;;  %v2193_v25 = vor.u32 %v2404_v20, %v2190_v22  ;;  %v2116_v20 = vld [vmem:[#allocation4 + $0x28] sm:$0xf] }
 0x3ea   : > { %2055 = vmatmul.msk.bf16.vlgmr.msra.gmra.mxu2 %vm794_vm2, %v922_v27  ;;  %v2405_v27 = vld [vmem:[#allocation4 + $0xcc] sm:$0xf]  ;;  %1348 = vmatpush.bf16.msra.mxu3 %v2193_v25  ;;  %v2118_v25 = vld [vmem:[#allocation4 + $0x38] sm:$0xf0] }
 0x3ed   : > { %v2532_v28 = vpop.eup %2531 }
 0x3ee   : > { %v862_v29 = vmul.f32 %v2532_v28, %v2526_v14  ;;  %v868_v30 = vpop.permute.xlu2 %867  ;;  %v2217_v14 = vor.u32 %v2409_v12, %v2214_v13  ;;  %v2198_v28 = vld [vmem:[#allocation4 + $0xd8] sm:$0xf0]  ;;  %v2389_v12 = vld [vmem:[#allocation4 + $0x4c] sm:$0xf] }
 0x3ef   : > { %v873_v31 = vsel %vm810_vm1, %v868_v30, 0  ;;  %v2172_v30 = vld [vmem:[#allocation4 + $0xa0] sm:$0xf]  ;;  %v2134_v13 = vld [vmem:[#allocation4 + $0x58] sm:$0xf0] }
 0x3f0   : > { %882 = vmatpush.bf16.msrb.mxu0 %v873_v31  ;;  %v863_v32 = vpack.c.bf16 %v862_v29, %v862_v29  ;;  %1373 = vmatpush.bf16.msra.mxu1 %v2217_v14  ;;  %v2201_v29 = vor.u32 %v2405_v27, %v2198_v28  ;;  %v2402_v31 = vld [vmem:[#allocation4 + $0xac] sm:$0xf0]  ;;  %v2137_v14 = vor.u32 %v2389_v12, %v2134_v13  ;;  %v2092_v27 = vld [vmem:[#allocation4] sm:$0xf] }
 0x3f1   : > { %v2382_v28 = vld [vmem:[#allocation4 + $0xc] sm:$0xf0] }
 0x3f3   : > { %2053 = vmatmul.msk.bf16.vlgmr.msrb.gmra.mxu0 %vm794_vm2, %v863_v32  ;;  %v2400_v32 = vld [vmem:[#allocation4 + $0xa4] sm:$0xf] }
 0x3f4   : > { %1374 = vmatpush.bf16.msra.mxu1 %v2201_v29  ;;  %v2380_v29 = vld [vmem:[#allocation4 + $0x4] sm:$0xf] }
 0x3f6   : > { %v975_v33 = vpop.xlane.xlu1 %974 }
 0x3f7   : > { %2533 = vrcp.f32 %v975_v33  ;;  %v2173_v33 = vor.u32 %v2402_v31, %v2172_v30  ;;  %v2093_v30 = vor.u32 %v2382_v28, %v2092_v27  ;;  %v2094_v31 = vld [vmem:[#allocation4 + $0x10] sm:$0xf0] }
 0x3fd   : > { %v2534_v34 = vpop.eup %2533 }
 0x3fe   : > { %v977_v35 = vmul.f32 %v2534_v34, %v2528_v19  ;;  %v2406_v19 = vld [vmem:[#allocation4 + $0xcc] sm:$0xf0]  ;;  %v2174_v34 = vld [vmem:[#allocation4 + $0xb0] sm:$0xf0] }
 0x3ff   : > { %v2189_v21 = vor.u32 %v2406_v19, %v2188_v18  ;;  %v2110_v19 = vld [vmem:[#allocation4 + $0x30] sm:$0xf0] }
 0x400   : > { %v978_v38 = vpack.c.bf16 %v977_v35, %v977_v35  ;;  %v2180_v35 = vld [vmem:[#allocation4 + $0xa8] sm:$0xf] }
 0x40e   : > { %v980_v36 = vpop.permute.xlu1 %979 }
 0x40f   : > { %v985_v37 = vsel %vm810_vm1, %v980_v36, 0  ;;  %v2403_v36 = vld [vmem:[#allocation4 + $0xb4] sm:$0xf0] }
 0x410   : > { %994 = vmatpush.bf16.msra.mxu0 %v985_v37  ;;  %v2177_v37 = vor.u32 %v2400_v32, %v2174_v34  ;;  %v2100_v32 = vld [vmem:[#allocation4 + $0x8] sm:$0xf]  ;;  %v2097_v34 = vor.u32 %v2380_v29, %v2094_v31  ;;  %v2416_v29 = vld [vmem:[#allocation6 + $0x20] sm:$0xff] }
 0x412   : > { %1349 = vmatpush.bf16.msra.mxu3 %v2177_v37  ;;  %v2102_v37 = vld [vmem:[#allocation4 + $0x18] sm:$0xf0] }
 0x413   : > { %2057 = vmatmul.msk.bf16.vlgmr.msra.gmra.mxu0 %vm794_vm2, %v978_v38  ;;  %v2181_v38 = vor.u32 %v2403_v36, %v2180_v35  ;;  %v2381_v36 = vld [vmem:[#allocation4 + $0xc] sm:$0xf] }
 0x414   : > { %1360 = vmatpush.bf16.msrb.mxu0 %v2213_v11  ;;  %v2133_v11 = vor.u32 %v2391_v9, %v2132_v8  ;;  %v2418_v9 = vld [vmem:[#allocation6 + $0x30] sm:$0xff] }
 0x418   : > { %1361 = vmatpush.bf16.msrb.mxu0 %v2197_v26  ;;  %v2121_v26 = vor.u32 %v2385_v24, %v2118_v25  ;;  %v2439_v24 = vld [vmem:[#allocation6 + $0xd8] sm:$0xff] }
 0x41c   : > { %1362 = vmatpush.bf16.msrb.mxu0 %v2181_v38  ;;  %v2105_v38 = vor.u32 %v2381_v36, %v2102_v37  ;;  %v2438_v36 = vld [vmem:[#allocation6 + $0xd0] sm:$0xff] }
 0x420   : > { %1363 = vmatpush.bf16.msrb.mxu0 %v2165_v50 }
 0x46d   : > { %v940_v39 = vpop.f32.mrf.mxu2 }
 0x470   : > { %v884_v40 = vpop.f32.mrf.mxu0 }
 0x471   : > { %1001 = vrot.lane.b32.xlu2 %v884_v40, %s2730_s16  ;;  %v2182_v40 = vld [vmem:[#allocation4 + $0xb8] sm:$0xf0] }
 0x475   : > { %v942_v41 = vpop.f32.mrf.mxu2 }
 0x478   : > { %v886_v42 = vpop.f32.mrf.mxu0 }
 0x479   : > { %1005 = vrot.lane.b32.xlu2 %v940_v39, %s2728_s27  ;;  %v2401_v39 = vld [vmem:[#allocation4 + $0xac] sm:$0xf]  ;;  %v2156_v42 = vld [vmem:[#allocation4 + $0x80] sm:$0xf] }
 0x47a   : > { %v2185_v41 = vor.u32 %v2401_v39, %v2182_v40 }
 0x47c   : > { %1375 = vmatpush.bf16.msra.mxu1 %v2185_v41 }
 0x490   : > { %v996_v43 = vpop.f32.mrf.mxu0 }
 0x491   : > { %1009 = vrot.lane.b32.xlu0 %v996_v43, %s2729_s28  ;;  %v2398_v43 = vld [vmem:[#allocation4 + $0x8c] sm:$0xf0] }
 0x492   : > { %v2157_v45 = vor.u32 %v2398_v43, %v2156_v42 }
 0x498   : > { %v998_v44 = vpop.f32.mrf.mxu0 }
 0x499   : > { %v2396_v44 = vld [vmem:[#allocation4 + $0x84] sm:$0xf] }
 0x49a   : > { %v2161_v49 = vor.u32 %v2396_v44, %v2158_v46 }
 0x49c   : > { %1350 = vmatpush.bf16.msra.mxu3 %v2161_v49 }
 0x4cb   : > { %v1002_v54 = vpop.permute.xlu2 %1001 }
 0x4cc   : > { %v1012_v56 = vsel %vm774_vm0, %v2915_v53, %v1002_v54  ;;  %v2205_v53 = vor.u32 %v2410_v5, %v2204_v4  ;;  %v2169_v54 = vor.u32 %v2397_v51, %v2166_v52  ;;  %v2124_v4 = vld [vmem:[#allocation4 + $0x40] sm:$0xf]  ;;  %v2390_v5 = vld [vmem:[#allocation4 + $0x4c] sm:$0xf0] }
 0x4cd   : > { %v2515_v51 = vld [vmem:[%s3030_s7] ss:$0 sm:$0xff] }
 0x4ce   : > { %1334 = vmatpush.bf16.msrb.mxu2 %v2205_v53  ;;  %1376 = vmatpush.bf16.msra.mxu1 %v2169_v54  ;;  %v2125_v53 = vor.u32 %v2390_v5, %v2124_v4  ;;  %v2433_v5 = vld [vmem:[#allocation6 + $0xa8] sm:$0xff] }
 0x4d2   : > { %1335 = vmatpush.bf16.msrb.mxu2 %v2189_v21  ;;  %v2387_v21 = vld [vmem:[#allocation4 + $0x34] sm:$0xf0] }
 0x4d3   : > { %v1006_v55 = vpop.permute.xlu2 %1005  ;;  %v2117_v23 = vor.u32 %v2387_v21, %v2116_v20  ;;  %v2425_v20 = vld [vmem:[#allocation6 + $0x68] sm:$0xff] }
 0x4d4   : > { %v1014_v57 = vsel %vm1013_vm3, %v1012_v56, %v1006_v55  ;;  %v2140_v55 = vld [vmem:[#allocation4 + $0x60] sm:$0xf]  ;;  %v2394_v56 = vld [vmem:[#allocation4 + $0x6c] sm:$0xf0] }
 0x4d6   : > { %1336 = vmatpush.bf16.msrb.mxu2 %v2173_v33  ;;  %v2383_v33 = vld [vmem:[#allocation4 + $0x14] sm:$0xf0] }
 0x4d7   : > { %v2101_v35 = vor.u32 %v2383_v33, %v2100_v32 }
 0x4da   : > { %1337 = vmatpush.bf16.msrb.mxu2 %v2157_v45 }
 0x503   : > { %v1010_v58 = vpop.permute.xlu0 %1009 }
 0x504   : > { %v1016_v59 = vsel %vm1015_vm4, %v1014_v57, %v1010_v58  ;;  %v2392_v57 = vld [vmem:[#allocation4 + $0x64] sm:$0xf]  ;;  %v2141_v58 = vor.u32 %v2394_v56, %v2140_v55  ;;  %v2435_v56 = vld [vmem:[#allocation6 + $0xb8] sm:$0xff] }
 0x505   : > { %v1017_v60 = vpack.c.bf16 %v1016_v59, %v1016_v59  ;;  %v2142_v59 = vld [vmem:[#allocation4 + $0x70] sm:$0xf0] }
 0x506   : > { %1338 = vmatpush.bf16.msrb.mxu2 %v2141_v58 }
 0x507   : > { %1094 = vmatmul.bf16.vlgmr.msrb.gmra.mxu1 %v1017_v60  ;;  %v2148_v60 = vld [vmem:[#allocation4 + $0x68] sm:$0xf] }
 0x50a   : > { %1339 = vmatpush.bf16.msrb.mxu2 %v2125_v53 }
 0x584   : > { %v1095_v63 = vpop.f32.mrf.mxu1 }
 0x585   : > { %v1096_v0 = vadd.f32 %v2513_v61, %v1095_v63  ;;  %v2395_v61 = vld [vmem:[#allocation4 + $0x74] sm:$0xf0] }
 0x586   : > { %v2149_v63 = vor.u32 %v2395_v61, %v2148_v60  ;;  %v2434_v60 = vld [vmem:[#allocation6 + $0xb0] sm:$0xff] }
 0x587   : > { %v1100_v1 = vadd.f32 %v1099_v62, %v1096_v0  ;;  %v2145_v62 = vor.u32 %v2392_v57, %v2142_v59  ;;  %v2393_v0 = vld [vmem:[#allocation4 + $0x6c] sm:$0xf]  ;;  %v2443_v57 = vld [vmem:[#allocation6 + $0xf8] sm:$0xff]  ;;  %v2442_v61 = vld [vmem:[#allocation6 + $0xf0] sm:$0xff] }
 0x588   : > { %1364 = vmatpush.bf16.msrb.mxu0 %v2149_v63  ;;  %v2427_v63 = vld [vmem:[#allocation6 + $0x78] sm:$0xff] }
 0x589   : > { %1103 = vadd.xlane.f32.xlu2 %v1100_v1  ;;  %1351 = vmatpush.bf16.msra.mxu3 %v2145_v62  ;;  %v2419_v62 = vld [vmem:[#allocation6 + $0x38] sm:$0xff] }
 0x58c   : > { %v1097_v3 = vpop.f32.mrf.mxu1  ;;  %1365 = vmatpush.bf16.msrb.mxu0 %v2133_v11 }
 0x58d   : > { %1352 = vmatpush.bf16.msra.mxu3 %v2129_v10  ;;  %v2426_v10 = vld [vmem:[#allocation6 + $0x70] sm:$0xff] }
 0x590   : > { %1366 = vmatpush.bf16.msrb.mxu0 %v2117_v23  ;;  %v2431_v23 = vld [vmem:[#allocation6 + $0x98] sm:$0xff] }
 0x594   : > { %1367 = vmatpush.bf16.msrb.mxu0 %v2101_v35  ;;  %v2430_v35 = vld [vmem:[#allocation6 + $0x90] sm:$0xff] }
 0x598   : > { %1766 = vmatpush.bf16.msra.mxu0 %v2435_v56  ;;  %v2422_v56 = vld [vmem:[#allocation6 + $0x50] sm:$0xff] }
 0x59c   : > { %1767 = vmatpush.bf16.msra.mxu0 %v2434_v60  ;;  %v2428_v60 = vld [vmem:[#allocation6 + $0x80] sm:$0xff] }
 0x5a0   : > { %1768 = vmatpush.bf16.msra.mxu0 %v2433_v5 }
 0x5fc   : > { %v1104_v2 = vpop.xlane.xlu2 %1103 }
 0x5fd   : > { %v1105_v15 = vmul.f32 0.0078125, %v1104_v2  ;;  %v2108_v2 = vld [vmem:[#allocation4 + $0x20] sm:$0xf] }
 0x5ff   : > { %v2965_v16 = vsub.f32 %v1100_v1, %v1105_v15  ;;  %v2150_v1 = vld [vmem:[#allocation4 + $0x78] sm:$0xf0]  ;;  %v2386_v15 = vld [vmem:[#allocation4 + $0x2c] sm:$0xf0] }
 0x600   : > { %v2153_v3 = vor.u32 %v2393_v0, %v2150_v1  ;;  %v2109_v18 = vor.u32 %v2386_v15, %v2108_v2  ;;  %v2432_v2 = vld [vmem:[#allocation6 + $0xa0] sm:$0xff] }
 0x601   : > { %v1107_v17 = vmul.f32 %v2965_v16, %v2965_v16  ;;  %v2440_v15 = vld [vmem:[#allocation6 + $0xe0] sm:$0xff]  ;;  %1769 = vmatpush.bf16.msra.mxu0 %v2432_v2 }
 0x602   : > { %1377 = vmatpush.bf16.msra.mxu1 %v2153_v3  ;;  %1340 = vmatpush.bf16.msrb.mxu2 %v2109_v18  ;;  %v2420_v2 = vld [vmem:[#allocation6 + $0x40] sm:$0xff] }
 0x603   : > { %1108 = vadd.xlane.f32.xlu0 %v1107_v17  ;;  %v2384_v17 = vld [vmem:[#allocation4 + $0x24] sm:$0xf] }
 0x604   : > { %v2113_v22 = vor.u32 %v2384_v17, %v2110_v19  ;;  %v2417_v19 = vld [vmem:[#allocation6 + $0x28] sm:$0xff] }
 0x605   : > { %1770 = vmatpush.bf16.msra.mxu0 %v2431_v23 }
 0x606   : > { %1378 = vmatpush.bf16.msra.mxu1 %v2137_v14  ;;  %1353 = vmatpush.bf16.msra.mxu3 %v2113_v22 }
 0x607   : > { %1341 = vmatpush.bf16.msrb.mxu2 %v2093_v30  ;;  %v2424_v30 = vld [vmem:[#allocation6 + $0x60] sm:$0xff] }
 0x609   : > { %1771 = vmatpush.bf16.msra.mxu0 %v2430_v35 }
 0x60a   : > { %1379 = vmatpush.bf16.msra.mxu1 %v2121_v26  ;;  %1354 = vmatpush.bf16.msra.mxu3 %v2097_v34 }
 0x60b   : > { %1740 = vmatpush.bf16.msra.mxu2 %v2419_v62 }
 0x60e   : > { %1380 = vmatpush.bf16.msra.mxu1 %v2105_v38  ;;  %1753 = vmatpush.bf16.msrb.mxu3 %v2427_v63 }
 0x60f   : > { %1741 = vmatpush.bf16.msra.mxu2 %v2418_v9 }
 0x612   : > { %1779 = vmatpush.bf16.msrb.mxu1 %v2443_v57  ;;  %1754 = vmatpush.bf16.msrb.mxu3 %v2426_v10 }
 0x613   : > { %1742 = vmatpush.bf16.msra.mxu2 %v2417_v19 }
 0x616   : > { %1780 = vmatpush.bf16.msrb.mxu1 %v2442_v61  ;;  %1755 = vmatpush.bf16.msrb.mxu3 %v2425_v20  ;;  %v2436_v61 = vld [vmem:[#allocation6 + $0xc0] sm:$0xff] }
 0x617   : > { %1743 = vmatpush.bf16.msra.mxu2 %v2416_v29 }
 0x61a   : > { %1781 = vmatpush.bf16.msrb.mxu1 %v2441_v6  ;;  %1756 = vmatpush.bf16.msrb.mxu3 %v2424_v30 }
 0x61e   : > { %1782 = vmatpush.bf16.msrb.mxu1 %v2440_v15 }
 0x622   : > { %1783 = vmatpush.bf16.msrb.mxu1 %v2439_v24 }
 0x626   : > { %1784 = vmatpush.bf16.msrb.mxu1 %v2438_v36 }
 0x676   : > { %v1109_v39 = vpop.xlane.xlu0 %1108 }
 0x677   : > { %v1110_v40 = vmul.f32 0.0078125, %v1109_v39 }
 0x679   : > { %v1111_v41 = vadd.f32 1e-12, %v1110_v40 }
 0x67b   : > { %2535 = vrsqrt.f32 %v1111_v41  ;;  %vm1118_vm6 = vweird.f32 %v1111_v41 }
 0x681   : > { %v2536_v42 = vpop.eup %2535 }
 0x682   : > { %v1113_v43 = vmul.f32 %v2536_v42, %v1111_v41  ;;  %vm1119_vm5 = vweird.f32 %v2536_v42 }
 0x683   : > { %vm1120_vm7 = vmor %vm1118_vm6, %vm1119_vm5 }
 0x684   : > { %v1114_v44 = vmul.f32 %v2536_v42, %v1113_v43  ;;  %v2415_v43 = vld [vmem:[#allocation6 + $0x18] sm:$0xff] }
 0x685   : > { %1744 = vmatpush.bf16.msra.mxu2 %v2415_v43 }
 0x686   : > { %v1115_v45 = vmul.f32 0.5, %v1114_v44  ;;  %v2423_v44 = vld [vmem:[#allocation6 + $0x58] sm:$0xff] }
 0x687   : > { %1757 = vmatpush.bf16.msrb.mxu3 %v2423_v44 }
 0x688   : > { %v1116_v46 = vsub.f32 1.5, %v1115_v45 }
 0x68a   : > { %v1117_v47 = vmul.f32 %v2536_v42, %v1116_v46 }
 0x68b   : > { %1758 = vmatpush.bf16.msrb.mxu3 %v2422_v56 }
 0x68c   : > { %v1121_v49 = vsel %vm1120_vm7, %v2536_v42, %v1117_v47  ;;  %v2429_v47 = vld [vmem:[#allocation6 + $0x88] sm:$0xff] }
 0x68d   : > { %v1122_v50 = vmul.f32 %v1121_v49, %v2965_v16  ;;  %v1164_v16 = vld [vmem:[%s3032_s9] sm:$0xf]  ;;  %1772 = vmatpush.bf16.msra.mxu0 %v2429_v47 }
 0x68e   : > { %v1168_v58 = vperm.slane %v1164_v16, 2  ;;  %v1169_v59 = vperm.slane %v1164_v16, 3  ;;  %v1166_v53 = vperm.slane %v1164_v16, 0  ;;  %v1167_v7 = vperm.slane %v1164_v16, 1 }
 0x68f   : > { %v1126_v52 = vmul.f32 %v2514_v48, %v1122_v50  ;;  %v2437_v48 = vld [vmem:[#allocation6 + $0xc8] sm:$0xff] }
 0x690   : > { %1785 = vmatpush.bf16.msrb.mxu1 %v2437_v48 }
 0x691   : > { %v2976_v54 = vadd.f32 %v2515_v51, %v1126_v52  ;;  %1773 = vmatpush.bf16.msra.mxu0 %v2428_v60 }
 0x693   : > { %v1131_v55 = vpack.c.bf16 %v2976_v54, %v2976_v54 }
 0x694   : > { %1786 = vmatpush.bf16.msrb.mxu1 %v2436_v61 }
 0x695   : > { %1342 = vmatmul.bf16.vlgmr.msrb.gmra.mxu2 %v1131_v55  ;;  %1355 = vmatmul.bf16.vlgmr.msra.gmra.mxu3 %v1131_v55 }
 0x696   : > { %1368 = vmatmul.bf16.vlgmr.msrb.gmra.mxu0 %v1131_v55  ;;  %1381 = vmatmul.bf16.vlgmr.msra.gmra.mxu1 %v1131_v55  ;;  %v2414_v55 = vld [vmem:[#allocation6 + $0x10] sm:$0xff] }
 0x697   : > { %1745 = vmatpush.bf16.msra.mxu2 %v2414_v55 }
 0x713   : > { %v1369_v0 = vpop.f32.mrf.mxu0  ;;  %v1382_v1 = vpop.f32.mrf.mxu1 }
 0x714   : > { %v1370_v3 = vadd.f32 %v1369_v0, %v1168_v58  ;;  %v1383_v4 = vadd.f32 %v1382_v1, %v1169_v59  ;;  %v2413_v0 = vld [vmem:[#allocation6 + $0x8] sm:$0xff] }
 0x715   : > { %v2421_v1 = vld [vmem:[#allocation6 + $0x48] sm:$0xff]  ;;  %1746 = vmatpush.bf16.msra.mxu2 %v2413_v0 }
 0x716   : > { %v1387_v8 = vpack.c.bf16 %v1383_v4, %v1370_v3  ;;  %1759 = vmatpush.bf16.msrb.mxu3 %v2421_v1 }
 0x718   : > { %v2983_v11 = vunpack.c.l.bf16 %v1387_v8  ;;  %v2985_v12 = vunpack.c.h.bf16 %v1387_v8  ;;  %v1343_v13 = vpop.f32.mrf.mxu2  ;;  %v1356_v14 = vpop.f32.mrf.mxu3 }
 0x719   : > { %v1344_v17 = vadd.f32 %v1343_v13, %v1166_v53  ;;  %v1357_v18 = vadd.f32 %v1356_v14, %v1167_v7  ;;  %v2412_v14 = vld [vmem:[#allocation6] sm:$0xff] }
 0x71a   : > { %v1400_v21 = vmul.f32 0.044677734, %v2983_v11  ;;  %v1401_v22 = vmul.f32 0.044677734, %v2985_v12  ;;  %1747 = vmatpush.bf16.msra.mxu2 %v2412_v14  ;;  %1760 = vmatpush.bf16.msrb.mxu3 %v2420_v2  ;;  %v2516_v14 = vld [vmem:[%s3034_s11] ss:$0 sm:$0xff] }
 0x71b   : > { %v1386_v25 = vpack.c.bf16 %v1357_v18, %v1344_v17  ;;  %v1371_v26 = vpop.f32.mrf.mxu0  ;;  %v1384_v27 = vpop.f32.mrf.mxu1 }
 0x71c   : > { %v1403_v28 = vpack.c.bf16 %v1401_v22, %v1400_v21 }
 0x71d   : > { %v2989_v31 = vunpack.c.l.bf16 %v1386_v25  ;;  %v2991_v32 = vunpack.c.h.bf16 %v1386_v25 }
 0x71e   : > { %v1406_v33 = vunpack.c.l.bf16 %v1403_v28  ;;  %v1407_v34 = vunpack.c.h.bf16 %v1403_v28 }
 0x71f   : > { %v1398_v37 = vmul.f32 0.044677734, %v2989_v31  ;;  %v1399_v38 = vmul.f32 0.044677734, %v2991_v32 }
 0x720   : > { %v1410_v39 = vmul.f32 %v1406_v33, %v2983_v11  ;;  %v1411_v40 = vmul.f32 %v1407_v34, %v2985_v12  ;;  %v1345_v41 = vpop.f32.mrf.mxu2  ;;  %v1358_v42 = vpop.f32.mrf.mxu3 }
 0x721   : > { %v1402_v45 = vpack.c.bf16 %v1399_v38, %v1398_v37 }
 0x722   : > { %v1413_v46 = vpack.c.bf16 %v1411_v40, %v1410_v39  ;;  %v1394_v39 = vmul.f32 0.5, %v2983_v11  ;;  %v1395_v40 = vmul.f32 0.5, %v2985_v12 }
 0x723   : > { %v1404_v49 = vunpack.c.l.bf16 %v1402_v45  ;;  %v1405_v50 = vunpack.c.h.bf16 %v1402_v45 }
 0x724   : > { %v1416_v51 = vunpack.c.l.bf16 %v1413_v46  ;;  %v1417_v52 = vunpack.c.h.bf16 %v1413_v46  ;;  %v1397_v46 = vpack.c.bf16 %v1395_v40, %v1394_v39  ;;  %v2518_v40 = vld [vmem:[#allocation9] ss:$0 sm:$0xff] }
 0x725   : > { %v1408_v57 = vmul.f32 %v1404_v49, %v2989_v31  ;;  %v1409_v16 = vmul.f32 %v1405_v50, %v2991_v32  ;;  %v1392_v49 = vmul.f32 0.5, %v2989_v31  ;;  %v1393_v50 = vmul.f32 0.5, %v2991_v32 }
 0x726   : > { %v1420_v58 = vmul.f32 %v1416_v51, %v2983_v11  ;;  %v1421_v59 = vmul.f32 %v1417_v52, %v2985_v12 }
 0x727   : > { %v1412_v62 = vpack.c.bf16 %v1409_v16, %v1408_v57  ;;  %v1466_v57 = vunpack.c.l.bf16 %v1397_v46  ;;  %v1467_v16 = vunpack.c.h.bf16 %v1397_v46 }
 0x728   : > { %v1423_v63 = vpack.c.bf16 %v1421_v59, %v1420_v58  ;;  %v1396_v58 = vpack.c.bf16 %v1393_v50, %v1392_v49 }
 0x729   : > { %v1414_v3 = vunpack.c.l.bf16 %v1412_v62  ;;  %v1415_v4 = vunpack.c.h.bf16 %v1412_v62 }
 0x72a   : > { %v1426_v5 = vunpack.c.l.bf16 %v1423_v63  ;;  %v1427_v6 = vunpack.c.h.bf16 %v1423_v63 }
 0x72b   : > { %v1418_v53 = vmul.f32 %v1414_v3, %v2989_v31  ;;  %v1419_v7 = vmul.f32 %v1415_v4, %v2991_v32  ;;  %v1464_v3 = vunpack.c.l.bf16 %v1396_v58  ;;  %v1465_v4 = vunpack.c.h.bf16 %v1396_v58 }
 0x72c   : > { %v1430_v8 = vadd.f32 %v1426_v5, %v2983_v11  ;;  %v1431_v9 = vadd.f32 %v1427_v6, %v2985_v12 }
 0x72d   : > { %v1422_v10 = vpack.c.bf16 %v1419_v7, %v1418_v53 }
 0x72e   : > { %v1433_v13 = vpack.c.bf16 %v1431_v9, %v1430_v8 }
 0x72f   : > { %v1424_v15 = vunpack.c.l.bf16 %v1422_v10  ;;  %v1425_v17 = vunpack.c.h.bf16 %v1422_v10 }
 0x730   : > { %v1436_v18 = vunpack.c.l.bf16 %v1433_v13  ;;  %v1437_v19 = vunpack.c.h.bf16 %v1433_v13 }
 0x731   : > { %v1428_v20 = vadd.f32 %v1424_v15, %v2989_v31  ;;  %v1429_v21 = vadd.f32 %v1425_v17, %v2991_v32 }
 0x732   : > { %v1440_v22 = vmul.f32 0.796875, %v1436_v18  ;;  %v1441_v23 = vmul.f32 0.796875, %v1437_v19 }
 0x733   : > { %v1432_v24 = vpack.c.bf16 %v1429_v21, %v1428_v20 }
 0x734   : > { %v1443_v25 = vpack.c.bf16 %v1441_v23, %v1440_v22 }
 0x735   : > { %v1434_v26 = vunpack.c.l.bf16 %v1432_v24  ;;  %v1435_v27 = vunpack.c.h.bf16 %v1432_v24 }
 0x736   : > { %v1446_v28 = vunpack.c.l.bf16 %v1443_v25  ;;  %v1447_v29 = vunpack.c.h.bf16 %v1443_v25 }
 0x737   : > { %v1438_v30 = vmul.f32 0.796875, %v1434_v26  ;;  %v1439_v33 = vmul.f32 0.796875, %v1435_v27 }
 0x738   : > { %2537 = vtanh.f32 %v1446_v28 }
 0x739   : > { %v1442_v34 = vpack.c.bf16 %v1439_v33, %v1438_v30  ;;  %2539 = vtanh.f32 %v1447_v29 }
 0x73b   : > { %v1444_v35 = vunpack.c.l.bf16 %v1442_v34  ;;  %v1445_v36 = vunpack.c.h.bf16 %v1442_v34 }
 0x73d   : > { %2541 = vtanh.f32 %v1444_v35 }
 0x73e   : > { %v2538_v37 = vpop.eup %2537  ;;  %2543 = vtanh.f32 %v1445_v36 }
 0x73f   : > { %v2540_v38 = vpop.eup %2539 }
 0x740   : > { %v1453_v41 = vpack.c.bf16 %v2540_v38, %v2538_v37 }
 0x742   : > { %v1456_v42 = vunpack.c.l.bf16 %v1453_v41  ;;  %v1457_v43 = vunpack.c.h.bf16 %v1453_v41 }
 0x743   : > { %v2542_v44 = vpop.eup %2541 }
 0x744   : > { %v2544_v45 = vpop.eup %2543  ;;  %v1460_v47 = vadd.f32 1.0, %v1456_v42  ;;  %v1461_v48 = vadd.f32 1.0, %v1457_v43 }
 0x745   : > { %v1452_v51 = vpack.c.bf16 %v2544_v45, %v2542_v44 }
 0x746   : > { %v1463_v52 = vpack.c.bf16 %v1461_v48, %v1460_v47 }
 0x747   : > { %v1454_v55 = vunpack.c.l.bf16 %v1452_v51  ;;  %v1455_v56 = vunpack.c.h.bf16 %v1452_v51 }
 0x748   : > { %v1470_v11 = vunpack.c.l.bf16 %v1463_v52  ;;  %v1471_v12 = vunpack.c.h.bf16 %v1463_v52 }
 0x749   : > { %v1458_v59 = vadd.f32 1.0, %v1454_v55  ;;  %v1459_v60 = vadd.f32 1.0, %v1455_v56 }
 0x74a   : > { %v1474_v61 = vmul.f32 %v1470_v11, %v1466_v57  ;;  %v1475_v62 = vmul.f32 %v1471_v12, %v1467_v16 }
 0x74b   : > { %v1462_v63 = vpack.c.bf16 %v1459_v60, %v1458_v59 }
 0x74c   : > { %v1478_v0 = vpack.c.bf16 %v1474_v61, %v1474_v61  ;;  %v1479_v1 = vpack.c.bf16 %v1475_v62, %v1475_v62 }
 0x74d   : > { %v1468_v31 = vunpack.c.l.bf16 %v1462_v63  ;;  %v1469_v32 = vunpack.c.h.bf16 %v1462_v63 }
 0x74e   : > { %1774 = vmatmul.bf16.vlgmr.msra.gmra.mxu0 %v1478_v0  ;;  %1787 = vmatmul.bf16.vlgmr.msrb.gmra.mxu1 %v1479_v1 }
 0x74f   : > { %v1472_v5 = vmul.f32 %v1468_v31, %v1464_v3  ;;  %v1473_v6 = vmul.f32 %v1469_v32, %v1465_v4 }
 0x751   : > { %v1476_v53 = vpack.c.bf16 %v1472_v5, %v1472_v5  ;;  %v1477_v7 = vpack.c.bf16 %v1473_v6, %v1473_v6 }
 0x753   : > { %1748 = vmatmul.bf16.vlgmr.msra.gmra.mxu2 %v1476_v53  ;;  %1761 = vmatmul.bf16.vlgmr.msrb.gmra.mxu3 %v1477_v7 }
 0x7cb   : > { %v1775_v8 = vpop.f32.mrf.mxu0  ;;  %v1788_v9 = vpop.f32.mrf.mxu1 }
 0x7d3   : > { %v1777_v10 = vpop.f32.mrf.mxu0  ;;  %v1790_v13 = vpop.f32.mrf.mxu1 }
 0x7d6   : > { %v1749_v2 = vpop.f32.mrf.mxu2  ;;  %v1762_v15 = vpop.f32.mrf.mxu3 }
 0x7d7   : > { %v1750_v17 = vadd.f32 %v2516_v14, %v1749_v2 }
 0x7d9   : > { %v1763_v18 = vadd.f32 %v1762_v15, %v1750_v17 }
 0x7db   : > { %v1776_v19 = vadd.f32 %v1775_v8, %v1763_v18 }
 0x7dd   : > { %v1789_v20 = vadd.f32 %v1788_v9, %v1776_v19 }
 0x7de   : > { %v1751_v21 = vpop.f32.mrf.mxu2  ;;  %v1764_v22 = vpop.f32.mrf.mxu3 }
 0x7df   : > { %v1792_v23 = vadd.f32 %v1789_v20, %v2976_v54  ;;  %v2517_v54 = vld [vmem:[#allocation7] ss:$0 sm:$0xff] }
 0x7e1   : > { %1795 = vadd.xlane.f32.xlu1 %v1792_v23 }
 0x854   : > { %v1796_v24 = vpop.xlane.xlu1 %1795 }
 0x855   : > { %v1797_v25 = vmul.f32 0.0078125, %v1796_v24 }
 0x857   : > { %v1798_v26 = vsub.f32 %v1792_v23, %v1797_v25 }
 0x859   : > { %v1799_v27 = vmul.f32 %v1798_v26, %v1798_v26 }
 0x85b   : > { %1800 = vadd.xlane.f32.xlu2 %v1799_v27 }
 0x8ce   : > { %v1801_v28 = vpop.xlane.xlu2 %1800 }
 0x8cf   : > { %v1802_v29 = vmul.f32 0.0078125, %v1801_v28 }
 0x8d1   : > { %v1803_v30 = vadd.f32 1e-12, %v1802_v29 }
 0x8d3   : > { %2545 = vrsqrt.f32 %v1803_v30  ;;  %vm1810_vm9 = vweird.f32 %v1803_v30 }
 0x8d9   : > { %v2546_v33 = vpop.eup %2545 }
 0x8da   : > { %v1805_v34 = vmul.f32 %v2546_v33, %v1803_v30  ;;  %vm1811_vm8 = vweird.f32 %v2546_v33 }
 0x8db   : > { %vm1812_vm10 = vmor %vm1810_vm9, %vm1811_vm8 }
 0x8dc   : > { %v1806_v35 = vmul.f32 %v2546_v33, %v1805_v34 }
 0x8de   : > { %v1807_v36 = vmul.f32 0.5, %v1806_v35 }
 0x8e0   : > { %v1808_v37 = vsub.f32 1.5, %v1807_v36 }
 0x8e2   : > { %v1809_v38 = vmul.f32 %v2546_v33, %v1808_v37 }
 0x8e4   : > { %v1813_v39 = vsel %vm1812_vm10, %v2546_v33, %v1809_v38 }
 0x8e5   : > { %v1814_v41 = vmul.f32 %v1813_v39, %v1798_v26 }
 0x8e7   : > { %v1818_v42 = vmul.f32 %v2517_v54, %v1814_v41 }
 0x8e9   : > { %v1822_v43 = vadd.f32 %v2518_v40, %v1818_v42 }
 0x8eb   : > { %v1823_v44 = vpack.c.bf16 %v1822_v43, %v1822_v43 }
 0x8ed   : > { %1824 = vst [vmem:[%s555_s25] sm:$0xf] %v1823_v44 }
 0x8ee PF: > { %s3048_s27 = sld [smem:[#allocation13_spill]] }
 0x8f4   : > { %s27_s29 = sadd.s32 1, %s3048_s27  }
 0x8f5   : > { %p24_p7 = scmp.ge.s32.totalorder %s27_s29, 4  }
 0x8f7   :  { %26 = sbr.rel (!%p24_p7) target bundleno = 7 (0x7), region = 130 }
 0x8fc   :  { %1844 = vsyncpa [#allocation3], 1 }
 0x8fd   :  { %1846 = vsyncpa [#allocation3 + $0x1], 1 }
 0x8fe   :  { %1847 = vsyncpa [#allocation5], 1 }
 0x8ff   :  { %1848 = vsyncpa [#allocation8], 1 }

</bundles_post_ra>
